<compile_context>
chip_gen: v7x
topology: tpu7x:2x2x1
jax: 0.10.0
libtpu: 0.0.40
codegen_flags: <defaults>
</compile_context>

<pallas_src>
import functools

import jax
import jax.numpy as jnp
from jax.experimental import pallas as pl
from jax.experimental.pallas import tpu as pltpu


# -----------------------------------------------------------------------------
# Bidirectional GRU recurrence kernel.
# Grid iterates sequentially over time blocks ("arbitrary").  Per grid step the
# kernel advances the forward recurrence through its block (local steps
# 0..Tt-1) and the backward recurrence through the time-mirrored block (local
# steps Tt-1..0).  Hidden states live in VMEM scratch and persist across steps.
# Input projections gi = x @ W_ih + b_ih are precomputed outside the kernel.
# PyTorch gate order (r, z, n) and equations are used.
# -----------------------------------------------------------------------------
def gru_block_kernel(gif_ref, gir_ref, mf_ref, mr_ref, whh_ref, bhh_ref,
                     of_ref, or_ref, hf_scr, hr_scr, *, Tt, H):
    tb = pl.program_id(0)

    @pl.when(tb == 0)
    def _():
        hf_scr[...] = jnp.zeros_like(hf_scr)
        hr_scr[...] = jnp.zeros_like(hr_scr)

    whh_f = whh_ref[0]          # (H, 3H) fused gate weights, forward dir
    whh_r = whh_ref[1]          # (H, 3H) fused gate weights, reverse dir
    bhh_f = bhh_ref[0]          # (1, 3H)
    bhh_r = bhh_ref[1]          # (1, 3H)

    def gru_cell(gi, h, whh, bhh, m):
        # gi already contains x @ W_ih + b_ih for all three gates (r|z|n).
        gh = jnp.dot(h, whh, preferred_element_type=jnp.float32) + bhh
        r = jax.nn.sigmoid(gi[:, :H] + gh[:, :H])
        z = jax.nn.sigmoid(gi[:, H:2 * H] + gh[:, H:2 * H])
        n = jnp.tanh(gi[:, 2 * H:] + r * gh[:, 2 * H:])
        h_new = (1.0 - z) * n + z * h
        # padded steps (m == 0): emit zeros and keep the hidden state unchanged
        return h_new * m, jnp.where(m > 0.0, h_new, h)

    # Static unrolled loop over the time block; the two directions are
    # independent recurrences so their matmuls overlap on the MXU.
    for j in range(Tt):
        out_f, h_f = gru_cell(gif_ref[j], hf_scr[...], whh_f, bhh_f, mf_ref[j])
        hf_scr[...] = h_f
        of_ref[:, j, :] = out_f

        jj = Tt - 1 - j          # reverse direction walks its block backwards
        out_r, h_r = gru_cell(gir_ref[jj], hr_scr[...], whh_r, bhh_r, mr_ref[jj])
        hr_scr[...] = h_r
        or_ref[:, jj, :] = out_r


def _pick_time_block(T, cap=32):
    if T <= cap:
        return T
    for tt in range(cap - cap % 8, 7, -8):   # multiples of 8 dividing T
        if T % tt == 0:
            return tt
    return T                                  # fallback: whole sequence in one block


def run_gru(gi, mask, w_hh, b_hh, *, H):
    # gi:   (2, T, B, 3H)  precomputed input projections (fwd, rev)
    # mask: (T, B, 1)      1.0 while t < length else 0.0
    D, T, B, H3 = gi.shape
    Tt = _pick_time_block(T)
    Tb = T // Tt

    kernel = functools.partial(gru_block_kernel, Tt=Tt, H=H)
    out_sds = jax.ShapeDtypeStruct((B, T, H), jnp.float32)

    return pl.pallas_call(
        kernel,
        out_shape=(out_sds, out_sds),
        grid_spec=pltpu.PrefetchScalarGridSpec(
            num_scalar_prefetch=0,
            grid=(Tb,),
            in_specs=[
                # gi, forward direction, time blocks in increasing order
                pl.BlockSpec((None, Tt, B, H3), lambda tb: (0, tb, 0, 0)),
                # gi, reverse direction, time blocks in decreasing order
                pl.BlockSpec((None, Tt, B, H3), lambda tb: (1, Tb - 1 - tb, 0, 0)),
                # mask, forward / reverse views of the same array
                pl.BlockSpec((Tt, B, 1), lambda tb: (tb, 0, 0)),
                pl.BlockSpec((Tt, B, 1), lambda tb: (Tb - 1 - tb, 0, 0)),
                # fused recurrent weights / biases (grid-invariant)
                pl.BlockSpec((2, H, H3), lambda tb: (0, 0, 0)),
                pl.BlockSpec((2, 1, H3), lambda tb: (0, 0, 0)),
            ],
            out_specs=(
                pl.BlockSpec((B, Tt, H), lambda tb: (0, tb, 0)),
                pl.BlockSpec((B, Tt, H), lambda tb: (0, Tb - 1 - tb, 0)),
            ),
            scratch_shapes=[pltpu.VMEM((B, H), jnp.float32),
                            pltpu.VMEM((B, H), jnp.float32)],
        ),
        compiler_params=pltpu.CompilerParams(
            dimension_semantics=("arbitrary",)),     # recurrence: strictly sequential
    )(gi, gi, mask, mask, w_hh, b_hh)


# -----------------------------------------------------------------------------
# MultiheadAttention (self-attention, no key padding mask — same as reference)
# fused with the output projection and ReLU, tiled over batch blocks.
# -----------------------------------------------------------------------------
def mha_relu_kernel(of_ref, or_ref, wqkv_ref, bqkv_ref, wo_ref, bo_ref, out_ref,
                    *, heads, head_dim):
    Bb, T, H = of_ref.shape
    E = 2 * H
    scale = 1.0 / (head_dim ** 0.5)

    # y = concat([fwd, rev], -1); y @ W_qkv computed without materializing the concat.
    g0 = of_ref[...].reshape(Bb * T, H)          # batch-major rows
    g1 = or_ref[...].reshape(Bb * T, H)
    qkv = (jnp.dot(g0, wqkv_ref[0], preferred_element_type=jnp.float32)
           + jnp.dot(g1, wqkv_ref[1], preferred_element_type=jnp.float32)
           + bqkv_ref[...])                      # (Bb*T, 3E)

    ctx_parts = []
    for h in range(heads):
        lo = h * head_dim
        hi = lo + head_dim
        qh = (qkv[:, lo:hi] * scale).reshape(Bb, T, head_dim)
        kh = qkv[:, E + lo:E + hi].reshape(Bb, T, head_dim)
        vh = qkv[:, 2 * E + lo:2 * E + hi].reshape(Bb, T, head_dim)

        s = jnp.einsum('btd,bsd->bts', qh, kh, preferred_element_type=jnp.float32)
        s = s - jnp.max(s, axis=-1, keepdims=True)
        p = jnp.exp(s)
        attn = p * pl.reciprocal(jnp.sum(p, axis=-1, keepdims=True), approx=True)
        ctx_h = jnp.einsum('bts,bsd->btd', attn, vh,
                           preferred_element_type=jnp.float32)
        ctx_parts.append(ctx_h.reshape(Bb * T, head_dim))

    ctx = jnp.concatenate(ctx_parts, axis=-1)                       # (Bb*T, E)
    out = jnp.dot(ctx, wo_ref[...], preferred_element_type=jnp.float32) + bo_ref[...]
    out_ref[...] = jnp.maximum(out, 0.0).reshape(Bb, T, E)          # ReLU


def run_attention(out_f, out_r, mha):
    B, T, H = out_f.shape
    E = 2 * H
    heads = mha["heads"]
    head_dim = E // heads
    Bb = 8 if (B % 8 == 0) else B                # batch tile (mult of 8 or full B)
    grid_b = B // Bb

    kernel = functools.partial(mha_relu_kernel, heads=heads, head_dim=head_dim)
    return pl.pallas_call(
        kernel,
        out_shape=jax.ShapeDtypeStruct((B, T, E), jnp.float32),
        grid=(grid_b,),
        in_specs=[
            pl.BlockSpec((Bb, T, H), lambda b: (b, 0, 0)),
            pl.BlockSpec((Bb, T, H), lambda b: (b, 0, 0)),
            pl.BlockSpec((2, H, 3 * E), lambda b: (0, 0, 0)),
            pl.BlockSpec((1, 3 * E), lambda b: (0, 0)),
            pl.BlockSpec((E, E), lambda b: (0, 0)),
            pl.BlockSpec((1, E), lambda b: (0, 0)),
        ],
        out_specs=pl.BlockSpec((Bb, T, E), lambda b: (b, 0, 0)),
        compiler_params=pltpu.CompilerParams(
            dimension_semantics=("parallel",),
            vmem_limit_bytes=64 * 1024 * 1024),
    )(out_f, out_r, mha["wqkv"], mha["bqkv"], mha["wo"], mha["bo"])


# -----------------------------------------------------------------------------
# Parameter construction (deterministic, PyTorch-shaped), rearranged into fused
# kernel-friendly tensors.
# -----------------------------------------------------------------------------
def _uniform(key, shape, scale):
    return jax.random.uniform(key, shape, jnp.float32, -scale, scale)


def build_params(key, emb_dims, hidden, heads):
    H = hidden // 2
    keys = jax.random.split(key, 12)
    s_gru = 1.0 / (H ** 0.5)
    s_attn = 1.0 / (hidden ** 0.5)

    def gru_dir(kb):
        w_ih = _uniform(keys[kb + 0], (3 * H, emb_dims), s_gru)   # rows [r|z|n]
        w_hh = _uniform(keys[kb + 1], (3 * H, H), s_gru)
        b_ih = _uniform(keys[kb + 2], (3 * H,), s_gru)
        b_hh = _uniform(keys[kb + 3], (3 * H,), s_gru)
        return w_ih.T, w_hh.T, b_ih, b_hh.reshape(1, 3 * H)

    wi_f, wh_f, bi_f, bh_f = gru_dir(0)
    wi_r, wh_r, bi_r, bh_r = gru_dir(4)

    in_proj_w = _uniform(keys[8], (3 * hidden, hidden), s_attn)
    in_proj_b = _uniform(keys[9], (3 * hidden,), s_attn)
    out_proj_w = _uniform(keys[10], (hidden, hidden), s_attn)
    out_proj_b = _uniform(keys[11], (hidden,), s_attn)

    mha = dict(
        heads=heads,
        # y @ in_proj_w.T split into the fwd-half / rev-half row blocks of (E, 3E)
        wqkv=in_proj_w.T.reshape(2, H, 3 * hidden),
        bqkv=in_proj_b.reshape(1, 3 * hidden),
        wo=out_proj_w.T,
        bo=out_proj_b.reshape(1, hidden),
    )
    return dict(
        H=H,
        w_ih=jnp.stack([wi_f, wi_r]),          # (2, E, 3H)
        b_ih=jnp.stack([bi_f, bi_r]),          # (2, 3H)
        w_hh=jnp.stack([wh_f, wh_r]),          # (2, H, 3H)
        b_hh=jnp.stack([bh_f, bh_r]),          # (2, 1, 3H)
        mha=mha,
    )


# -----------------------------------------------------------------------------
# Full forward pass (mirrors GruAttnBlock.forward).
# -----------------------------------------------------------------------------
def gru_attn_block_forward(x, lengths, params):
    # x: (B, T, emb_dims) batch_first; lengths sorted descending (pack_padded_sequence).
    B, T, _ = x.shape
    H = params["H"]
    x = x.astype(jnp.float32)

    # length mask, time-major (T, B, 1)
    mask = (jnp.arange(T)[:, None] < lengths[None, :]).astype(jnp.float32)[:, :, None]

    # Hoisted GRU input projections for both directions: one batched matmul over
    # all (B*T) positions (includes b_ih for gates r|z|n).
    gi = (jnp.einsum('bte,deh->dtbh', x, params["w_ih"])
          + params["b_ih"][:, None, None, :])                       # (2, T, B, 3H)

    out_f, out_r = run_gru(gi, mask, params["w_hh"], params["b_hh"], H=H)  # 2 x (B, T, H)
    out = run_attention(out_f, out_r, params["mha"])                       # (B, T, 2H)
    return out, lengths


if __name__ == "__main__":
    emb_dims, hidden, heads = 32, 32, 8
    B, T = 2, 8

    key = jax.random.PRNGKey(0)
    k_x, k_p = jax.random.split(key)
    x = jax.random.normal(k_x, (B, T, emb_dims), jnp.float32)
    lengths = jnp.array([8, 5], dtype=jnp.int32)   # sorted descending, as pack_padded_sequence requires

    params = build_params(k_p, emb_dims, hidden, heads)

    out, out_lengths = gru_attn_block_forward(x, lengths, params)
    out = jax.block_until_ready(out)

    assert out.shape == (B, T, hidden), out.shape
    assert bool(jnp.all(out >= 0.0))                     # ReLU
    print("KERNEL_OK")
</pallas_src>

<mosaic_0001>
module attributes {stable_mosaic.version = 11 : i64} {
  func.func @gru_block_kernel(%arg0: i32, %arg1: memref<1x8x2x48xf32, #tpu.memory_space<vmem>>, %arg2: memref<1x8x2x48xf32, #tpu.memory_space<vmem>>, %arg3: memref<8x2x1xf32, #tpu.memory_space<vmem>>, %arg4: memref<8x2x1xf32, #tpu.memory_space<vmem>>, %arg5: memref<2x16x48xf32, #tpu.memory_space<vmem>>, %arg6: memref<2x1x48xf32, #tpu.memory_space<vmem>>, %arg7: memref<2x8x16xf32, #tpu.memory_space<vmem>>, %arg8: memref<2x8x16xf32, #tpu.memory_space<vmem>>, %arg9: memref<2x16xf32, #tpu.memory_space<vmem>>, %arg10: memref<2x16xf32, #tpu.memory_space<vmem>>) attributes {dimension_semantics = [#tpu.dimension_semantics<arbitrary>], iteration_bounds = array<i64: 1>, scalar_prefetch = 0 : i64, scratch_operands = 2 : i64, tpu.core_type = #tpu.core_type<tc>, window_params = [{transform_indices = @transform_0, window_bounds = array<i64: 1, 8, 2, 48>}, {transform_indices = @transform_1, window_bounds = array<i64: 1, 8, 2, 48>}, {transform_indices = @transform_2, window_bounds = array<i64: 8, 2, 1>}, {transform_indices = @transform_3, window_bounds = array<i64: 8, 2, 1>}, {pipeline_mode = #tpu.pipeline_mode<synchronous>, transform_indices = @transform_4, window_bounds = array<i64: 2, 16, 48>}, {pipeline_mode = #tpu.pipeline_mode<synchronous>, transform_indices = @transform_5, window_bounds = array<i64: 2, 1, 48>}, {transform_indices = @transform_6, window_bounds = array<i64: 2, 8, 16>}, {transform_indices = @transform_7, window_bounds = array<i64: 2, 8, 16>}]} {
    %c0_i32 = arith.constant 0 : i32
    %0 = arith.cmpi eq, %arg0, %c0_i32 : i32
    %1 = arith.extui %0 : i1 to i32
    %c0_i32_0 = arith.constant 0 : i32
    %2 = arith.cmpi ne, %1, %c0_i32_0 : i32
    scf.if %2 {
      %cst_308 = arith.constant 0.000000e+00 : f32
      %731 = vector.broadcast %cst_308 : f32 to vector<2x16xf32>
      %c0_309 = arith.constant 0 : index
      %c0_310 = arith.constant 0 : index
      %732 = vector.load %arg9[%c0_309, %c0_310] : memref<2x16xf32, #tpu.memory_space<vmem>>, vector<2x16xf32>
      tpu.vector_store %arg9[%c0_309, %c0_310], %731 {strides = array<i32>} : memref<2x16xf32, #tpu.memory_space<vmem>>, vector<2x16xf32>,
      %cst_311 = arith.constant 0.000000e+00 : f32
      %733 = vector.broadcast %cst_311 : f32 to vector<2x16xf32>
      %c0_312 = arith.constant 0 : index
      %c0_313 = arith.constant 0 : index
      %734 = vector.load %arg10[%c0_312, %c0_313] : memref<2x16xf32, #tpu.memory_space<vmem>>, vector<2x16xf32>
      tpu.vector_store %arg10[%c0_312, %c0_313], %733 {strides = array<i32>} : memref<2x16xf32, #tpu.memory_space<vmem>>, vector<2x16xf32>,
    } else {
    }
    %c0 = arith.constant 0 : index
    %c0_1 = arith.constant 0 : index
    %c0_2 = arith.constant 0 : index
    %3 = vector.load %arg5[%c0, %c0_1, %c0_2] : memref<2x16x48xf32, #tpu.memory_space<vmem>>, vector<1x16x48xf32>
    %4 = vector.shape_cast %3 : vector<1x16x48xf32> to vector<16x48xf32>
    %c1 = arith.constant 1 : index
    %c0_3 = arith.constant 0 : index
    %c0_4 = arith.constant 0 : index
    %5 = vector.load %arg5[%c1, %c0_3, %c0_4] : memref<2x16x48xf32, #tpu.memory_space<vmem>>, vector<1x16x48xf32>
    %6 = vector.shape_cast %5 : vector<1x16x48xf32> to vector<16x48xf32>
    %c0_5 = arith.constant 0 : index
    %c0_6 = arith.constant 0 : index
    %c0_7 = arith.constant 0 : index
    %7 = vector.load %arg6[%c0_5, %c0_6, %c0_7] : memref<2x1x48xf32, #tpu.memory_space<vmem>>, vector<1x1x48xf32>
    %8 = vector.shape_cast %7 : vector<1x1x48xf32> to vector<1x48xf32>
    %c1_8 = arith.constant 1 : index
    %c0_9 = arith.constant 0 : index
    %c0_10 = arith.constant 0 : index
    %9 = vector.load %arg6[%c1_8, %c0_9, %c0_10] : memref<2x1x48xf32, #tpu.memory_space<vmem>>, vector<1x1x48xf32>
    %10 = vector.shape_cast %9 : vector<1x1x48xf32> to vector<1x48xf32>
    %c0_11 = arith.constant 0 : index
    %c0_12 = arith.constant 0 : index
    %c0_13 = arith.constant 0 : index
    %c0_14 = arith.constant 0 : index
    %11 = vector.load %arg1[%c0_11, %c0_12, %c0_13, %c0_14] : memref<1x8x2x48xf32, #tpu.memory_space<vmem>>, vector<1x1x2x48xf32>
    %12 = vector.shape_cast %11 : vector<1x1x2x48xf32> to vector<2x48xf32>
    %c0_15 = arith.constant 0 : index
    %c0_16 = arith.constant 0 : index
    %13 = vector.load %arg9[%c0_15, %c0_16] : memref<2x16xf32, #tpu.memory_space<vmem>>, vector<2x16xf32>
    %c0_17 = arith.constant 0 : index
    %c0_18 = arith.constant 0 : index
    %c0_19 = arith.constant 0 : index
    %14 = vector.load %arg3[%c0_17, %c0_18, %c0_19] : memref<8x2x1xf32, #tpu.memory_space<vmem>>, vector<1x2x1xf32>
    %15 = vector.shape_cast %14 : vector<1x2x1xf32> to vector<2x1xf32>
    %cst = arith.constant dense<0.000000e+00> : vector<2x48xf32>
    %16 = tpu.matmul %13, %4, %cst {dimension_numbers = #tpu.dot_dimension_numbers<[1], [0], [0], [1], [0, 0, 1, 1], [], []>} : vector<2x16xf32>, vector<16x48xf32>, vector<2x48xf32> -> vector<2x48xf32>
    %17 = vector.broadcast %8 : vector<1x48xf32> to vector<2x48xf32>
    %18 = arith.addf %16, %17 : vector<2x48xf32>
    %19 = vector.extract_strided_slice %12 {offsets = [0, 0], sizes = [2, 16], strides = [1, 1]} : vector<2x48xf32> to vector<2x16xf32>
    %20 = vector.extract_strided_slice %18 {offsets = [0, 0], sizes = [2, 16], strides = [1, 1]} : vector<2x48xf32> to vector<2x16xf32>
    %21 = arith.addf %19, %20 : vector<2x16xf32>
    %22 = arith.negf %21 : vector<2x16xf32>
    %23 = math.exp %22 : vector<2x16xf32>
    %cst_20 = arith.constant 1.000000e+00 : f32
    %24 = vector.broadcast %cst_20 : f32 to vector<2x16xf32>
    %25 = arith.addf %24, %23 : vector<2x16xf32>
    %26 = arith.divf %24, %25 : vector<2x16xf32>
    %27 = vector.extract_strided_slice %12 {offsets = [0, 16], sizes = [2, 16], strides = [1, 1]} : vector<2x48xf32> to vector<2x16xf32>
    %28 = vector.extract_strided_slice %18 {offsets = [0, 16], sizes = [2, 16], strides = [1, 1]} : vector<2x48xf32> to vector<2x16xf32>
    %29 = arith.addf %27, %28 : vector<2x16xf32>
    %30 = arith.negf %29 : vector<2x16xf32>
    %31 = math.exp %30 : vector<2x16xf32>
    %cst_21 = arith.constant 1.000000e+00 : f32
    %32 = vector.broadcast %cst_21 : f32 to vector<2x16xf32>
    %33 = arith.addf %32, %31 : vector<2x16xf32>
    %34 = arith.divf %32, %33 : vector<2x16xf32>
    %35 = vector.extract_strided_slice %12 {offsets = [0, 32], sizes = [2, 16], strides = [1, 1]} : vector<2x48xf32> to vector<2x16xf32>
    %36 = vector.extract_strided_slice %18 {offsets = [0, 32], sizes = [2, 16], strides = [1, 1]} : vector<2x48xf32> to vector<2x16xf32>
    %37 = arith.mulf %26, %36 : vector<2x16xf32>
    %38 = arith.addf %35, %37 : vector<2x16xf32>
    %39 = math.tanh %38 : vector<2x16xf32>
    %cst_22 = arith.constant 1.000000e+00 : f32
    %40 = vector.broadcast %cst_22 : f32 to vector<2x16xf32>
    %41 = arith.subf %40, %34 : vector<2x16xf32>
    %42 = arith.mulf %41, %39 : vector<2x16xf32>
    %43 = arith.mulf %34, %13 : vector<2x16xf32>
    %44 = arith.addf %42, %43 : vector<2x16xf32>
    %45 = vector.broadcast %15 : vector<2x1xf32> to vector<2x16xf32>
    %46 = arith.mulf %44, %45 : vector<2x16xf32>
    %cst_23 = arith.constant 0.000000e+00 : f32
    %47 = vector.broadcast %cst_23 : f32 to vector<2x1xf32>
    %48 = arith.cmpf ogt, %15, %47 : vector<2x1xf32>
    %49 = vector.shape_cast %48 : vector<2x1xi1> to vector<2x1xi1>
    %50 = vector.broadcast %49 : vector<2x1xi1> to vector<2x16xi1>
    %51 = arith.select %50, %44, %13 : vector<2x16xi1>, vector<2x16xf32>
    %c0_24 = arith.constant 0 : index
    %c0_25 = arith.constant 0 : index
    %52 = vector.load %arg9[%c0_24, %c0_25] : memref<2x16xf32, #tpu.memory_space<vmem>>, vector<2x16xf32>
    tpu.vector_store %arg9[%c0_24, %c0_25], %51 {strides = array<i32>} : memref<2x16xf32, #tpu.memory_space<vmem>>, vector<2x16xf32>,
    %c0_26 = arith.constant 0 : index
    %c0_27 = arith.constant 0 : index
    %c0_28 = arith.constant 0 : index
    %53 = vector.load %arg7[%c0_26, %c0_27, %c0_28] : memref<2x8x16xf32, #tpu.memory_space<vmem>>, vector<2x1x16xf32>
    %54 = vector.shape_cast %53 : vector<2x1x16xf32> to vector<2x16xf32>
    %55 = vector.shape_cast %46 : vector<2x16xf32> to vector<2x1x16xf32>
    tpu.vector_store %arg7[%c0_26, %c0_27, %c0_28], %55 {strides = array<i32>} : memref<2x8x16xf32, #tpu.memory_space<vmem>>, vector<2x1x16xf32>,
    %c0_29 = arith.constant 0 : index
    %c7 = arith.constant 7 : index
    %c0_30 = arith.constant 0 : index
    %c0_31 = arith.constant 0 : index
    %56 = vector.load %arg2[%c0_29, %c7, %c0_30, %c0_31] : memref<1x8x2x48xf32, #tpu.memory_space<vmem>>, vector<1x1x2x48xf32>
    %57 = vector.shape_cast %56 : vector<1x1x2x48xf32> to vector<2x48xf32>
    %c0_32 = arith.constant 0 : index
    %c0_33 = arith.constant 0 : index
    %58 = vector.load %arg10[%c0_32, %c0_33] : memref<2x16xf32, #tpu.memory_space<vmem>>, vector<2x16xf32>
    %c7_34 = arith.constant 7 : index
    %c0_35 = arith.constant 0 : index
    %c0_36 = arith.constant 0 : index
    %59 = vector.load %arg4[%c7_34, %c0_35, %c0_36] : memref<8x2x1xf32, #tpu.memory_space<vmem>>, vector<1x2x1xf32>
    %60 = vector.shape_cast %59 : vector<1x2x1xf32> to vector<2x1xf32>
    %cst_37 = arith.constant dense<0.000000e+00> : vector<2x48xf32>
    %61 = tpu.matmul %58, %6, %cst_37 {dimension_numbers = #tpu.dot_dimension_numbers<[1], [0], [0], [1], [0, 0, 1, 1], [], []>} : vector<2x16xf32>, vector<16x48xf32>, vector<2x48xf32> -> vector<2x48xf32>
    %62 = vector.broadcast %10 : vector<1x48xf32> to vector<2x48xf32>
    %63 = arith.addf %61, %62 : vector<2x48xf32>
    %64 = vector.extract_strided_slice %57 {offsets = [0, 0], sizes = [2, 16], strides = [1, 1]} : vector<2x48xf32> to vector<2x16xf32>
    %65 = vector.extract_strided_slice %63 {offsets = [0, 0], sizes = [2, 16], strides = [1, 1]} : vector<2x48xf32> to vector<2x16xf32>
    %66 = arith.addf %64, %65 : vector<2x16xf32>
    %67 = arith.negf %66 : vector<2x16xf32>
    %68 = math.exp %67 : vector<2x16xf32>
    %cst_38 = arith.constant 1.000000e+00 : f32
    %69 = vector.broadcast %cst_38 : f32 to vector<2x16xf32>
    %70 = arith.addf %69, %68 : vector<2x16xf32>
    %71 = arith.divf %69, %70 : vector<2x16xf32>
    %72 = vector.extract_strided_slice %57 {offsets = [0, 16], sizes = [2, 16], strides = [1, 1]} : vector<2x48xf32> to vector<2x16xf32>
    %73 = vector.extract_strided_slice %63 {offsets = [0, 16], sizes = [2, 16], strides = [1, 1]} : vector<2x48xf32> to vector<2x16xf32>
    %74 = arith.addf %72, %73 : vector<2x16xf32>
    %75 = arith.negf %74 : vector<2x16xf32>
    %76 = math.exp %75 : vector<2x16xf32>
    %cst_39 = arith.constant 1.000000e+00 : f32
    %77 = vector.broadcast %cst_39 : f32 to vector<2x16xf32>
    %78 = arith.addf %77, %76 : vector<2x16xf32>
    %79 = arith.divf %77, %78 : vector<2x16xf32>
    %80 = vector.extract_strided_slice %57 {offsets = [0, 32], sizes = [2, 16], strides = [1, 1]} : vector<2x48xf32> to vector<2x16xf32>
    %81 = vector.extract_strided_slice %63 {offsets = [0, 32], sizes = [2, 16], strides = [1, 1]} : vector<2x48xf32> to vector<2x16xf32>
    %82 = arith.mulf %71, %81 : vector<2x16xf32>
    %83 = arith.addf %80, %82 : vector<2x16xf32>
    %84 = math.tanh %83 : vector<2x16xf32>
    %cst_40 = arith.constant 1.000000e+00 : f32
    %85 = vector.broadcast %cst_40 : f32 to vector<2x16xf32>
    %86 = arith.subf %85, %79 : vector<2x16xf32>
    %87 = arith.mulf %86, %84 : vector<2x16xf32>
    %88 = arith.mulf %79, %58 : vector<2x16xf32>
    %89 = arith.addf %87, %88 : vector<2x16xf32>
    %90 = vector.broadcast %60 : vector<2x1xf32> to vector<2x16xf32>
    %91 = arith.mulf %89, %90 : vector<2x16xf32>
    %cst_41 = arith.constant 0.000000e+00 : f32
    %92 = vector.broadcast %cst_41 : f32 to vector<2x1xf32>
    %93 = arith.cmpf ogt, %60, %92 : vector<2x1xf32>
    %94 = vector.shape_cast %93 : vector<2x1xi1> to vector<2x1xi1>
    %95 = vector.broadcast %94 : vector<2x1xi1> to vector<2x16xi1>
    %96 = arith.select %95, %89, %58 : vector<2x16xi1>, vector<2x16xf32>
    %c0_42 = arith.constant 0 : index
    %c0_43 = arith.constant 0 : index
    %97 = vector.load %arg10[%c0_42, %c0_43] : memref<2x16xf32, #tpu.memory_space<vmem>>, vector<2x16xf32>
    tpu.vector_store %arg10[%c0_42, %c0_43], %96 {strides = array<i32>} : memref<2x16xf32, #tpu.memory_space<vmem>>, vector<2x16xf32>,
    %c0_44 = arith.constant 0 : index
    %c7_45 = arith.constant 7 : index
    %c0_46 = arith.constant 0 : index
    %98 = vector.load %arg8[%c0_44, %c7_45, %c0_46] : memref<2x8x16xf32, #tpu.memory_space<vmem>>, vector<2x1x16xf32>
    %99 = vector.shape_cast %98 : vector<2x1x16xf32> to vector<2x16xf32>
    %100 = vector.shape_cast %91 : vector<2x16xf32> to vector<2x1x16xf32>
    tpu.vector_store %arg8[%c0_44, %c7_45, %c0_46], %100 {strides = array<i32>} : memref<2x8x16xf32, #tpu.memory_space<vmem>>, vector<2x1x16xf32>,
    %c0_47 = arith.constant 0 : index
    %c1_48 = arith.constant 1 : index
    %c0_49 = arith.constant 0 : index
    %c0_50 = arith.constant 0 : index
    %101 = vector.load %arg1[%c0_47, %c1_48, %c0_49, %c0_50] : memref<1x8x2x48xf32, #tpu.memory_space<vmem>>, vector<1x1x2x48xf32>
    %102 = vector.shape_cast %101 : vector<1x1x2x48xf32> to vector<2x48xf32>
    %c0_51 = arith.constant 0 : index
    %c0_52 = arith.constant 0 : index
    %103 = vector.load %arg9[%c0_51, %c0_52] : memref<2x16xf32, #tpu.memory_space<vmem>>, vector<2x16xf32>
    %c1_53 = arith.constant 1 : index
    %c0_54 = arith.constant 0 : index
    %c0_55 = arith.constant 0 : index
    %104 = vector.load %arg3[%c1_53, %c0_54, %c0_55] : memref<8x2x1xf32, #tpu.memory_space<vmem>>, vector<1x2x1xf32>
    %105 = vector.shape_cast %104 : vector<1x2x1xf32> to vector<2x1xf32>
    %cst_56 = arith.constant dense<0.000000e+00> : vector<2x48xf32>
    %106 = tpu.matmul %103, %4, %cst_56 {dimension_numbers = #tpu.dot_dimension_numbers<[1], [0], [0], [1], [0, 0, 1, 1], [], []>} : vector<2x16xf32>, vector<16x48xf32>, vector<2x48xf32> -> vector<2x48xf32>
    %107 = vector.broadcast %8 : vector<1x48xf32> to vector<2x48xf32>
    %108 = arith.addf %106, %107 : vector<2x48xf32>
    %109 = vector.extract_strided_slice %102 {offsets = [0, 0], sizes = [2, 16], strides = [1, 1]} : vector<2x48xf32> to vector<2x16xf32>
    %110 = vector.extract_strided_slice %108 {offsets = [0, 0], sizes = [2, 16], strides = [1, 1]} : vector<2x48xf32> to vector<2x16xf32>
    %111 = arith.addf %109, %110 : vector<2x16xf32>
    %112 = arith.negf %111 : vector<2x16xf32>
    %113 = math.exp %112 : vector<2x16xf32>
    %cst_57 = arith.constant 1.000000e+00 : f32
    %114 = vector.broadcast %cst_57 : f32 to vector<2x16xf32>
    %115 = arith.addf %114, %113 : vector<2x16xf32>
    %116 = arith.divf %114, %115 : vector<2x16xf32>
    %117 = vector.extract_strided_slice %102 {offsets = [0, 16], sizes = [2, 16], strides = [1, 1]} : vector<2x48xf32> to vector<2x16xf32>
    %118 = vector.extract_strided_slice %108 {offsets = [0, 16], sizes = [2, 16], strides = [1, 1]} : vector<2x48xf32> to vector<2x16xf32>
    %119 = arith.addf %117, %118 : vector<2x16xf32>
    %120 = arith.negf %119 : vector<2x16xf32>
    %121 = math.exp %120 : vector<2x16xf32>
    %cst_58 = arith.constant 1.000000e+00 : f32
    %122 = vector.broadcast %cst_58 : f32 to vector<2x16xf32>
    %123 = arith.addf %122, %121 : vector<2x16xf32>
    %124 = arith.divf %122, %123 : vector<2x16xf32>
    %125 = vector.extract_strided_slice %102 {offsets = [0, 32], sizes = [2, 16], strides = [1, 1]} : vector<2x48xf32> to vector<2x16xf32>
    %126 = vector.extract_strided_slice %108 {offsets = [0, 32], sizes = [2, 16], strides = [1, 1]} : vector<2x48xf32> to vector<2x16xf32>
    %127 = arith.mulf %116, %126 : vector<2x16xf32>
    %128 = arith.addf %125, %127 : vector<2x16xf32>
    %129 = math.tanh %128 : vector<2x16xf32>
    %cst_59 = arith.constant 1.000000e+00 : f32
    %130 = vector.broadcast %cst_59 : f32 to vector<2x16xf32>
    %131 = arith.subf %130, %124 : vector<2x16xf32>
    %132 = arith.mulf %131, %129 : vector<2x16xf32>
    %133 = arith.mulf %124, %103 : vector<2x16xf32>
    %134 = arith.addf %132, %133 : vector<2x16xf32>
    %135 = vector.broadcast %105 : vector<2x1xf32> to vector<2x16xf32>
    %136 = arith.mulf %134, %135 : vector<2x16xf32>
    %cst_60 = arith.constant 0.000000e+00 : f32
    %137 = vector.broadcast %cst_60 : f32 to vector<2x1xf32>
    %138 = arith.cmpf ogt, %105, %137 : vector<2x1xf32>
    %139 = vector.shape_cast %138 : vector<2x1xi1> to vector<2x1xi1>
    %140 = vector.broadcast %139 : vector<2x1xi1> to vector<2x16xi1>
    %141 = arith.select %140, %134, %103 : vector<2x16xi1>, vector<2x16xf32>
    %c0_61 = arith.constant 0 : index
    %c0_62 = arith.constant 0 : index
    %142 = vector.load %arg9[%c0_61, %c0_62] : memref<2x16xf32, #tpu.memory_space<vmem>>, vector<2x16xf32>
    tpu.vector_store %arg9[%c0_61, %c0_62], %141 {strides = array<i32>} : memref<2x16xf32, #tpu.memory_space<vmem>>, vector<2x16xf32>,
    %c0_63 = arith.constant 0 : index
    %c1_64 = arith.constant 1 : index
    %c0_65 = arith.constant 0 : index
    %143 = vector.load %arg7[%c0_63, %c1_64, %c0_65] : memref<2x8x16xf32, #tpu.memory_space<vmem>>, vector<2x1x16xf32>
    %144 = vector.shape_cast %143 : vector<2x1x16xf32> to vector<2x16xf32>
    %145 = vector.shape_cast %136 : vector<2x16xf32> to vector<2x1x16xf32>
    tpu.vector_store %arg7[%c0_63, %c1_64, %c0_65], %145 {strides = array<i32>} : memref<2x8x16xf32, #tpu.memory_space<vmem>>, vector<2x1x16xf32>,
    %c0_66 = arith.constant 0 : index
    %c6 = arith.constant 6 : index
    %c0_67 = arith.constant 0 : index
    %c0_68 = arith.constant 0 : index
    %146 = vector.load %arg2[%c0_66, %c6, %c0_67, %c0_68] : memref<1x8x2x48xf32, #tpu.memory_space<vmem>>, vector<1x1x2x48xf32>
    %147 = vector.shape_cast %146 : vector<1x1x2x48xf32> to vector<2x48xf32>
    %c0_69 = arith.constant 0 : index
    %c0_70 = arith.constant 0 : index
    %148 = vector.load %arg10[%c0_69, %c0_70] : memref<2x16xf32, #tpu.memory_space<vmem>>, vector<2x16xf32>
    %c6_71 = arith.constant 6 : index
    %c0_72 = arith.constant 0 : index
    %c0_73 = arith.constant 0 : index
    %149 = vector.load %arg4[%c6_71, %c0_72, %c0_73] : memref<8x2x1xf32, #tpu.memory_space<vmem>>, vector<1x2x1xf32>
    %150 = vector.shape_cast %149 : vector<1x2x1xf32> to vector<2x1xf32>
    %cst_74 = arith.constant dense<0.000000e+00> : vector<2x48xf32>
    %151 = tpu.matmul %148, %6, %cst_74 {dimension_numbers = #tpu.dot_dimension_numbers<[1], [0], [0], [1], [0, 0, 1, 1], [], []>} : vector<2x16xf32>, vector<16x48xf32>, vector<2x48xf32> -> vector<2x48xf32>
    %152 = vector.broadcast %10 : vector<1x48xf32> to vector<2x48xf32>
    %153 = arith.addf %151, %152 : vector<2x48xf32>
    %154 = vector.extract_strided_slice %147 {offsets = [0, 0], sizes = [2, 16], strides = [1, 1]} : vector<2x48xf32> to vector<2x16xf32>
    %155 = vector.extract_strided_slice %153 {offsets = [0, 0], sizes = [2, 16], strides = [1, 1]} : vector<2x48xf32> to vector<2x16xf32>
    %156 = arith.addf %154, %155 : vector<2x16xf32>
    %157 = arith.negf %156 : vector<2x16xf32>
    %158 = math.exp %157 : vector<2x16xf32>
    %cst_75 = arith.constant 1.000000e+00 : f32
    %159 = vector.broadcast %cst_75 : f32 to vector<2x16xf32>
    %160 = arith.addf %159, %158 : vector<2x16xf32>
    %161 = arith.divf %159, %160 : vector<2x16xf32>
    %162 = vector.extract_strided_slice %147 {offsets = [0, 16], sizes = [2, 16], strides = [1, 1]} : vector<2x48xf32> to vector<2x16xf32>
    %163 = vector.extract_strided_slice %153 {offsets = [0, 16], sizes = [2, 16], strides = [1, 1]} : vector<2x48xf32> to vector<2x16xf32>
    %164 = arith.addf %162, %163 : vector<2x16xf32>
    %165 = arith.negf %164 : vector<2x16xf32>
    %166 = math.exp %165 : vector<2x16xf32>
    %cst_76 = arith.constant 1.000000e+00 : f32
    %167 = vector.broadcast %cst_76 : f32 to vector<2x16xf32>
    %168 = arith.addf %167, %166 : vector<2x16xf32>
    %169 = arith.divf %167, %168 : vector<2x16xf32>
    %170 = vector.extract_strided_slice %147 {offsets = [0, 32], sizes = [2, 16], strides = [1, 1]} : vector<2x48xf32> to vector<2x16xf32>
    %171 = vector.extract_strided_slice %153 {offsets = [0, 32], sizes = [2, 16], strides = [1, 1]} : vector<2x48xf32> to vector<2x16xf32>
    %172 = arith.mulf %161, %171 : vector<2x16xf32>
    %173 = arith.addf %170, %172 : vector<2x16xf32>
    %174 = math.tanh %173 : vector<2x16xf32>
    %cst_77 = arith.constant 1.000000e+00 : f32
    %175 = vector.broadcast %cst_77 : f32 to vector<2x16xf32>
    %176 = arith.subf %175, %169 : vector<2x16xf32>
    %177 = arith.mulf %176, %174 : vector<2x16xf32>
    %178 = arith.mulf %169, %148 : vector<2x16xf32>
    %179 = arith.addf %177, %178 : vector<2x16xf32>
    %180 = vector.broadcast %150 : vector<2x1xf32> to vector<2x16xf32>
    %181 = arith.mulf %179, %180 : vector<2x16xf32>
    %cst_78 = arith.constant 0.000000e+00 : f32
    %182 = vector.broadcast %cst_78 : f32 to vector<2x1xf32>
    %183 = arith.cmpf ogt, %150, %182 : vector<2x1xf32>
    %184 = vector.shape_cast %183 : vector<2x1xi1> to vector<2x1xi1>
    %185 = vector.broadcast %184 : vector<2x1xi1> to vector<2x16xi1>
    %186 = arith.select %185, %179, %148 : vector<2x16xi1>, vector<2x16xf32>
    %c0_79 = arith.constant 0 : index
    %c0_80 = arith.constant 0 : index
    %187 = vector.load %arg10[%c0_79, %c0_80] : memref<2x16xf32, #tpu.memory_space<vmem>>, vector<2x16xf32>
    tpu.vector_store %arg10[%c0_79, %c0_80], %186 {strides = array<i32>} : memref<2x16xf32, #tpu.memory_space<vmem>>, vector<2x16xf32>,
    %c0_81 = arith.constant 0 : index
    %c6_82 = arith.constant 6 : index
    %c0_83 = arith.constant 0 : index
    %188 = vector.load %arg8[%c0_81, %c6_82, %c0_83] : memref<2x8x16xf32, #tpu.memory_space<vmem>>, vector<2x1x16xf32>
    %189 = vector.shape_cast %188 : vector<2x1x16xf32> to vector<2x16xf32>
    %190 = vector.shape_cast %181 : vector<2x16xf32> to vector<2x1x16xf32>
    tpu.vector_store %arg8[%c0_81, %c6_82, %c0_83], %190 {strides = array<i32>} : memref<2x8x16xf32, #tpu.memory_space<vmem>>, vector<2x1x16xf32>,
    %c0_84 = arith.constant 0 : index
    %c2 = arith.constant 2 : index
    %c0_85 = arith.constant 0 : index
    %c0_86 = arith.constant 0 : index
    %191 = vector.load %arg1[%c0_84, %c2, %c0_85, %c0_86] : memref<1x8x2x48xf32, #tpu.memory_space<vmem>>, vector<1x1x2x48xf32>
    %192 = vector.shape_cast %191 : vector<1x1x2x48xf32> to vector<2x48xf32>
    %c0_87 = arith.constant 0 : index
    %c0_88 = arith.constant 0 : index
    %193 = vector.load %arg9[%c0_87, %c0_88] : memref<2x16xf32, #tpu.memory_space<vmem>>, vector<2x16xf32>
    %c2_89 = arith.constant 2 : index
    %c0_90 = arith.constant 0 : index
    %c0_91 = arith.constant 0 : index
    %194 = vector.load %arg3[%c2_89, %c0_90, %c0_91] : memref<8x2x1xf32, #tpu.memory_space<vmem>>, vector<1x2x1xf32>
    %195 = vector.shape_cast %194 : vector<1x2x1xf32> to vector<2x1xf32>
    %cst_92 = arith.constant dense<0.000000e+00> : vector<2x48xf32>
    %196 = tpu.matmul %193, %4, %cst_92 {dimension_numbers = #tpu.dot_dimension_numbers<[1], [0], [0], [1], [0, 0, 1, 1], [], []>} : vector<2x16xf32>, vector<16x48xf32>, vector<2x48xf32> -> vector<2x48xf32>
    %197 = vector.broadcast %8 : vector<1x48xf32> to vector<2x48xf32>
    %198 = arith.addf %196, %197 : vector<2x48xf32>
    %199 = vector.extract_strided_slice %192 {offsets = [0, 0], sizes = [2, 16], strides = [1, 1]} : vector<2x48xf32> to vector<2x16xf32>
    %200 = vector.extract_strided_slice %198 {offsets = [0, 0], sizes = [2, 16], strides = [1, 1]} : vector<2x48xf32> to vector<2x16xf32>
    %201 = arith.addf %199, %200 : vector<2x16xf32>
    %202 = arith.negf %201 : vector<2x16xf32>
    %203 = math.exp %202 : vector<2x16xf32>
    %cst_93 = arith.constant 1.000000e+00 : f32
    %204 = vector.broadcast %cst_93 : f32 to vector<2x16xf32>
    %205 = arith.addf %204, %203 : vector<2x16xf32>
    %206 = arith.divf %204, %205 : vector<2x16xf32>
    %207 = vector.extract_strided_slice %192 {offsets = [0, 16], sizes = [2, 16], strides = [1, 1]} : vector<2x48xf32> to vector<2x16xf32>
    %208 = vector.extract_strided_slice %198 {offsets = [0, 16], sizes = [2, 16], strides = [1, 1]} : vector<2x48xf32> to vector<2x16xf32>
    %209 = arith.addf %207, %208 : vector<2x16xf32>
    %210 = arith.negf %209 : vector<2x16xf32>
    %211 = math.exp %210 : vector<2x16xf32>
    %cst_94 = arith.constant 1.000000e+00 : f32
    %212 = vector.broadcast %cst_94 : f32 to vector<2x16xf32>
    %213 = arith.addf %212, %211 : vector<2x16xf32>
    %214 = arith.divf %212, %213 : vector<2x16xf32>
    %215 = vector.extract_strided_slice %192 {offsets = [0, 32], sizes = [2, 16], strides = [1, 1]} : vector<2x48xf32> to vector<2x16xf32>
    %216 = vector.extract_strided_slice %198 {offsets = [0, 32], sizes = [2, 16], strides = [1, 1]} : vector<2x48xf32> to vector<2x16xf32>
    %217 = arith.mulf %206, %216 : vector<2x16xf32>
    %218 = arith.addf %215, %217 : vector<2x16xf32>
    %219 = math.tanh %218 : vector<2x16xf32>
    %cst_95 = arith.constant 1.000000e+00 : f32
    %220 = vector.broadcast %cst_95 : f32 to vector<2x16xf32>
    %221 = arith.subf %220, %214 : vector<2x16xf32>
    %222 = arith.mulf %221, %219 : vector<2x16xf32>
    %223 = arith.mulf %214, %193 : vector<2x16xf32>
    %224 = arith.addf %222, %223 : vector<2x16xf32>
    %225 = vector.broadcast %195 : vector<2x1xf32> to vector<2x16xf32>
    %226 = arith.mulf %224, %225 : vector<2x16xf32>
    %cst_96 = arith.constant 0.000000e+00 : f32
    %227 = vector.broadcast %cst_96 : f32 to vector<2x1xf32>
    %228 = arith.cmpf ogt, %195, %227 : vector<2x1xf32>
    %229 = vector.shape_cast %228 : vector<2x1xi1> to vector<2x1xi1>
    %230 = vector.broadcast %229 : vector<2x1xi1> to vector<2x16xi1>
    %231 = arith.select %230, %224, %193 : vector<2x16xi1>, vector<2x16xf32>
    %c0_97 = arith.constant 0 : index
    %c0_98 = arith.constant 0 : index
    %232 = vector.load %arg9[%c0_97, %c0_98] : memref<2x16xf32, #tpu.memory_space<vmem>>, vector<2x16xf32>
    tpu.vector_store %arg9[%c0_97, %c0_98], %231 {strides = array<i32>} : memref<2x16xf32, #tpu.memory_space<vmem>>, vector<2x16xf32>,
    %c0_99 = arith.constant 0 : index
    %c2_100 = arith.constant 2 : index
    %c0_101 = arith.constant 0 : index
    %233 = vector.load %arg7[%c0_99, %c2_100, %c0_101] : memref<2x8x16xf32, #tpu.memory_space<vmem>>, vector<2x1x16xf32>
    %234 = vector.shape_cast %233 : vector<2x1x16xf32> to vector<2x16xf32>
    %235 = vector.shape_cast %226 : vector<2x16xf32> to vector<2x1x16xf32>
    tpu.vector_store %arg7[%c0_99, %c2_100, %c0_101], %235 {strides = array<i32>} : memref<2x8x16xf32, #tpu.memory_space<vmem>>, vector<2x1x16xf32>,
    %c0_102 = arith.constant 0 : index
    %c5 = arith.constant 5 : index
    %c0_103 = arith.constant 0 : index
    %c0_104 = arith.constant 0 : index
    %236 = vector.load %arg2[%c0_102, %c5, %c0_103, %c0_104] : memref<1x8x2x48xf32, #tpu.memory_space<vmem>>, vector<1x1x2x48xf32>
    %237 = vector.shape_cast %236 : vector<1x1x2x48xf32> to vector<2x48xf32>
    %c0_105 = arith.constant 0 : index
    %c0_106 = arith.constant 0 : index
    %238 = vector.load %arg10[%c0_105, %c0_106] : memref<2x16xf32, #tpu.memory_space<vmem>>, vector<2x16xf32>
    %c5_107 = arith.constant 5 : index
    %c0_108 = arith.constant 0 : index
    %c0_109 = arith.constant 0 : index
    %239 = vector.load %arg4[%c5_107, %c0_108, %c0_109] : memref<8x2x1xf32, #tpu.memory_space<vmem>>, vector<1x2x1xf32>
    %240 = vector.shape_cast %239 : vector<1x2x1xf32> to vector<2x1xf32>
    %cst_110 = arith.constant dense<0.000000e+00> : vector<2x48xf32>
    %241 = tpu.matmul %238, %6, %cst_110 {dimension_numbers = #tpu.dot_dimension_numbers<[1], [0], [0], [1], [0, 0, 1, 1], [], []>} : vector<2x16xf32>, vector<16x48xf32>, vector<2x48xf32> -> vector<2x48xf32>
    %242 = vector.broadcast %10 : vector<1x48xf32> to vector<2x48xf32>
    %243 = arith.addf %241, %242 : vector<2x48xf32>
    %244 = vector.extract_strided_slice %237 {offsets = [0, 0], sizes = [2, 16], strides = [1, 1]} : vector<2x48xf32> to vector<2x16xf32>
    %245 = vector.extract_strided_slice %243 {offsets = [0, 0], sizes = [2, 16], strides = [1, 1]} : vector<2x48xf32> to vector<2x16xf32>
    %246 = arith.addf %244, %245 : vector<2x16xf32>
    %247 = arith.negf %246 : vector<2x16xf32>
    %248 = math.exp %247 : vector<2x16xf32>
    %cst_111 = arith.constant 1.000000e+00 : f32
    %249 = vector.broadcast %cst_111 : f32 to vector<2x16xf32>
    %250 = arith.addf %249, %248 : vector<2x16xf32>
    %251 = arith.divf %249, %250 : vector<2x16xf32>
    %252 = vector.extract_strided_slice %237 {offsets = [0, 16], sizes = [2, 16], strides = [1, 1]} : vector<2x48xf32> to vector<2x16xf32>
    %253 = vector.extract_strided_slice %243 {offsets = [0, 16], sizes = [2, 16], strides = [1, 1]} : vector<2x48xf32> to vector<2x16xf32>
    %254 = arith.addf %252, %253 : vector<2x16xf32>
    %255 = arith.negf %254 : vector<2x16xf32>
    %256 = math.exp %255 : vector<2x16xf32>
    %cst_112 = arith.constant 1.000000e+00 : f32
    %257 = vector.broadcast %cst_112 : f32 to vector<2x16xf32>
    %258 = arith.addf %257, %256 : vector<2x16xf32>
    %259 = arith.divf %257, %258 : vector<2x16xf32>
    %260 = vector.extract_strided_slice %237 {offsets = [0, 32], sizes = [2, 16], strides = [1, 1]} : vector<2x48xf32> to vector<2x16xf32>
    %261 = vector.extract_strided_slice %243 {offsets = [0, 32], sizes = [2, 16], strides = [1, 1]} : vector<2x48xf32> to vector<2x16xf32>
    %262 = arith.mulf %251, %261 : vector<2x16xf32>
    %263 = arith.addf %260, %262 : vector<2x16xf32>
    %264 = math.tanh %263 : vector<2x16xf32>
    %cst_113 = arith.constant 1.000000e+00 : f32
    %265 = vector.broadcast %cst_113 : f32 to vector<2x16xf32>
    %266 = arith.subf %265, %259 : vector<2x16xf32>
    %267 = arith.mulf %266, %264 : vector<2x16xf32>
    %268 = arith.mulf %259, %238 : vector<2x16xf32>
    %269 = arith.addf %267, %268 : vector<2x16xf32>
    %270 = vector.broadcast %240 : vector<2x1xf32> to vector<2x16xf32>
    %271 = arith.mulf %269, %270 : vector<2x16xf32>
    %cst_114 = arith.constant 0.000000e+00 : f32
    %272 = vector.broadcast %cst_114 : f32 to vector<2x1xf32>
    %273 = arith.cmpf ogt, %240, %272 : vector<2x1xf32>
    %274 = vector.shape_cast %273 : vector<2x1xi1> to vector<2x1xi1>
    %275 = vector.broadcast %274 : vector<2x1xi1> to vector<2x16xi1>
    %276 = arith.select %275, %269, %238 : vector<2x16xi1>, vector<2x16xf32>
    %c0_115 = arith.constant 0 : index
    %c0_116 = arith.constant 0 : index
    %277 = vector.load %arg10[%c0_115, %c0_116] : memref<2x16xf32, #tpu.memory_space<vmem>>, vector<2x16xf32>
    tpu.vector_store %arg10[%c0_115, %c0_116], %276 {strides = array<i32>} : memref<2x16xf32, #tpu.memory_space<vmem>>, vector<2x16xf32>,
    %c0_117 = arith.constant 0 : index
    %c5_118 = arith.constant 5 : index
    %c0_119 = arith.constant 0 : index
    %278 = vector.load %arg8[%c0_117, %c5_118, %c0_119] : memref<2x8x16xf32, #tpu.memory_space<vmem>>, vector<2x1x16xf32>
    %279 = vector.shape_cast %278 : vector<2x1x16xf32> to vector<2x16xf32>
    %280 = vector.shape_cast %271 : vector<2x16xf32> to vector<2x1x16xf32>
    tpu.vector_store %arg8[%c0_117, %c5_118, %c0_119], %280 {strides = array<i32>} : memref<2x8x16xf32, #tpu.memory_space<vmem>>, vector<2x1x16xf32>,
    %c0_120 = arith.constant 0 : index
    %c3 = arith.constant 3 : index
    %c0_121 = arith.constant 0 : index
    %c0_122 = arith.constant 0 : index
    %281 = vector.load %arg1[%c0_120, %c3, %c0_121, %c0_122] : memref<1x8x2x48xf32, #tpu.memory_space<vmem>>, vector<1x1x2x48xf32>
    %282 = vector.shape_cast %281 : vector<1x1x2x48xf32> to vector<2x48xf32>
    %c0_123 = arith.constant 0 : index
    %c0_124 = arith.constant 0 : index
    %283 = vector.load %arg9[%c0_123, %c0_124] : memref<2x16xf32, #tpu.memory_space<vmem>>, vector<2x16xf32>
    %c3_125 = arith.constant 3 : index
    %c0_126 = arith.constant 0 : index
    %c0_127 = arith.constant 0 : index
    %284 = vector.load %arg3[%c3_125, %c0_126, %c0_127] : memref<8x2x1xf32, #tpu.memory_space<vmem>>, vector<1x2x1xf32>
    %285 = vector.shape_cast %284 : vector<1x2x1xf32> to vector<2x1xf32>
    %cst_128 = arith.constant dense<0.000000e+00> : vector<2x48xf32>
    %286 = tpu.matmul %283, %4, %cst_128 {dimension_numbers = #tpu.dot_dimension_numbers<[1], [0], [0], [1], [0, 0, 1, 1], [], []>} : vector<2x16xf32>, vector<16x48xf32>, vector<2x48xf32> -> vector<2x48xf32>
    %287 = vector.broadcast %8 : vector<1x48xf32> to vector<2x48xf32>
    %288 = arith.addf %286, %287 : vector<2x48xf32>
    %289 = vector.extract_strided_slice %282 {offsets = [0, 0], sizes = [2, 16], strides = [1, 1]} : vector<2x48xf32> to vector<2x16xf32>
    %290 = vector.extract_strided_slice %288 {offsets = [0, 0], sizes = [2, 16], strides = [1, 1]} : vector<2x48xf32> to vector<2x16xf32>
    %291 = arith.addf %289, %290 : vector<2x16xf32>
    %292 = arith.negf %291 : vector<2x16xf32>
    %293 = math.exp %292 : vector<2x16xf32>
    %cst_129 = arith.constant 1.000000e+00 : f32
    %294 = vector.broadcast %cst_129 : f32 to vector<2x16xf32>
    %295 = arith.addf %294, %293 : vector<2x16xf32>
    %296 = arith.divf %294, %295 : vector<2x16xf32>
    %297 = vector.extract_strided_slice %282 {offsets = [0, 16], sizes = [2, 16], strides = [1, 1]} : vector<2x48xf32> to vector<2x16xf32>
    %298 = vector.extract_strided_slice %288 {offsets = [0, 16], sizes = [2, 16], strides = [1, 1]} : vector<2x48xf32> to vector<2x16xf32>
    %299 = arith.addf %297, %298 : vector<2x16xf32>
    %300 = arith.negf %299 : vector<2x16xf32>
    %301 = math.exp %300 : vector<2x16xf32>
    %cst_130 = arith.constant 1.000000e+00 : f32
    %302 = vector.broadcast %cst_130 : f32 to vector<2x16xf32>
    %303 = arith.addf %302, %301 : vector<2x16xf32>
    %304 = arith.divf %302, %303 : vector<2x16xf32>
    %305 = vector.extract_strided_slice %282 {offsets = [0, 32], sizes = [2, 16], strides = [1, 1]} : vector<2x48xf32> to vector<2x16xf32>
    %306 = vector.extract_strided_slice %288 {offsets = [0, 32], sizes = [2, 16], strides = [1, 1]} : vector<2x48xf32> to vector<2x16xf32>
    %307 = arith.mulf %296, %306 : vector<2x16xf32>
    %308 = arith.addf %305, %307 : vector<2x16xf32>
    %309 = math.tanh %308 : vector<2x16xf32>
    %cst_131 = arith.constant 1.000000e+00 : f32
    %310 = vector.broadcast %cst_131 : f32 to vector<2x16xf32>
    %311 = arith.subf %310, %304 : vector<2x16xf32>
    %312 = arith.mulf %311, %309 : vector<2x16xf32>
    %313 = arith.mulf %304, %283 : vector<2x16xf32>
    %314 = arith.addf %312, %313 : vector<2x16xf32>
    %315 = vector.broadcast %285 : vector<2x1xf32> to vector<2x16xf32>
    %316 = arith.mulf %314, %315 : vector<2x16xf32>
    %cst_132 = arith.constant 0.000000e+00 : f32
    %317 = vector.broadcast %cst_132 : f32 to vector<2x1xf32>
    %318 = arith.cmpf ogt, %285, %317 : vector<2x1xf32>
    %319 = vector.shape_cast %318 : vector<2x1xi1> to vector<2x1xi1>
    %320 = vector.broadcast %319 : vector<2x1xi1> to vector<2x16xi1>
    %321 = arith.select %320, %314, %283 : vector<2x16xi1>, vector<2x16xf32>
    %c0_133 = arith.constant 0 : index
    %c0_134 = arith.constant 0 : index
    %322 = vector.load %arg9[%c0_133, %c0_134] : memref<2x16xf32, #tpu.memory_space<vmem>>, vector<2x16xf32>
    tpu.vector_store %arg9[%c0_133, %c0_134], %321 {strides = array<i32>} : memref<2x16xf32, #tpu.memory_space<vmem>>, vector<2x16xf32>,
    %c0_135 = arith.constant 0 : index
    %c3_136 = arith.constant 3 : index
    %c0_137 = arith.constant 0 : index
    %323 = vector.load %arg7[%c0_135, %c3_136, %c0_137] : memref<2x8x16xf32, #tpu.memory_space<vmem>>, vector<2x1x16xf32>
    %324 = vector.shape_cast %323 : vector<2x1x16xf32> to vector<2x16xf32>
    %325 = vector.shape_cast %316 : vector<2x16xf32> to vector<2x1x16xf32>
    tpu.vector_store %arg7[%c0_135, %c3_136, %c0_137], %325 {strides = array<i32>} : memref<2x8x16xf32, #tpu.memory_space<vmem>>, vector<2x1x16xf32>,
    %c0_138 = arith.constant 0 : index
    %c4 = arith.constant 4 : index
    %c0_139 = arith.constant 0 : index
    %c0_140 = arith.constant 0 : index
    %326 = vector.load %arg2[%c0_138, %c4, %c0_139, %c0_140] : memref<1x8x2x48xf32, #tpu.memory_space<vmem>>, vector<1x1x2x48xf32>
    %327 = vector.shape_cast %326 : vector<1x1x2x48xf32> to vector<2x48xf32>
    %c0_141 = arith.constant 0 : index
    %c0_142 = arith.constant 0 : index
    %328 = vector.load %arg10[%c0_141, %c0_142] : memref<2x16xf32, #tpu.memory_space<vmem>>, vector<2x16xf32>
    %c4_143 = arith.constant 4 : index
    %c0_144 = arith.constant 0 : index
    %c0_145 = arith.constant 0 : index
    %329 = vector.load %arg4[%c4_143, %c0_144, %c0_145] : memref<8x2x1xf32, #tpu.memory_space<vmem>>, vector<1x2x1xf32>
    %330 = vector.shape_cast %329 : vector<1x2x1xf32> to vector<2x1xf32>
    %cst_146 = arith.constant dense<0.000000e+00> : vector<2x48xf32>
    %331 = tpu.matmul %328, %6, %cst_146 {dimension_numbers = #tpu.dot_dimension_numbers<[1], [0], [0], [1], [0, 0, 1, 1], [], []>} : vector<2x16xf32>, vector<16x48xf32>, vector<2x48xf32> -> vector<2x48xf32>
    %332 = vector.broadcast %10 : vector<1x48xf32> to vector<2x48xf32>
    %333 = arith.addf %331, %332 : vector<2x48xf32>
    %334 = vector.extract_strided_slice %327 {offsets = [0, 0], sizes = [2, 16], strides = [1, 1]} : vector<2x48xf32> to vector<2x16xf32>
    %335 = vector.extract_strided_slice %333 {offsets = [0, 0], sizes = [2, 16], strides = [1, 1]} : vector<2x48xf32> to vector<2x16xf32>
    %336 = arith.addf %334, %335 : vector<2x16xf32>
    %337 = arith.negf %336 : vector<2x16xf32>
    %338 = math.exp %337 : vector<2x16xf32>
    %cst_147 = arith.constant 1.000000e+00 : f32
    %339 = vector.broadcast %cst_147 : f32 to vector<2x16xf32>
    %340 = arith.addf %339, %338 : vector<2x16xf32>
    %341 = arith.divf %339, %340 : vector<2x16xf32>
    %342 = vector.extract_strided_slice %327 {offsets = [0, 16], sizes = [2, 16], strides = [1, 1]} : vector<2x48xf32> to vector<2x16xf32>
    %343 = vector.extract_strided_slice %333 {offsets = [0, 16], sizes = [2, 16], strides = [1, 1]} : vector<2x48xf32> to vector<2x16xf32>
    %344 = arith.addf %342, %343 : vector<2x16xf32>
    %345 = arith.negf %344 : vector<2x16xf32>
    %346 = math.exp %345 : vector<2x16xf32>
    %cst_148 = arith.constant 1.000000e+00 : f32
    %347 = vector.broadcast %cst_148 : f32 to vector<2x16xf32>
    %348 = arith.addf %347, %346 : vector<2x16xf32>
    %349 = arith.divf %347, %348 : vector<2x16xf32>
    %350 = vector.extract_strided_slice %327 {offsets = [0, 32], sizes = [2, 16], strides = [1, 1]} : vector<2x48xf32> to vector<2x16xf32>
    %351 = vector.extract_strided_slice %333 {offsets = [0, 32], sizes = [2, 16], strides = [1, 1]} : vector<2x48xf32> to vector<2x16xf32>
    %352 = arith.mulf %341, %351 : vector<2x16xf32>
    %353 = arith.addf %350, %352 : vector<2x16xf32>
    %354 = math.tanh %353 : vector<2x16xf32>
    %cst_149 = arith.constant 1.000000e+00 : f32
    %355 = vector.broadcast %cst_149 : f32 to vector<2x16xf32>
    %356 = arith.subf %355, %349 : vector<2x16xf32>
    %357 = arith.mulf %356, %354 : vector<2x16xf32>
    %358 = arith.mulf %349, %328 : vector<2x16xf32>
    %359 = arith.addf %357, %358 : vector<2x16xf32>
    %360 = vector.broadcast %330 : vector<2x1xf32> to vector<2x16xf32>
    %361 = arith.mulf %359, %360 : vector<2x16xf32>
    %cst_150 = arith.constant 0.000000e+00 : f32
    %362 = vector.broadcast %cst_150 : f32 to vector<2x1xf32>
    %363 = arith.cmpf ogt, %330, %362 : vector<2x1xf32>
    %364 = vector.shape_cast %363 : vector<2x1xi1> to vector<2x1xi1>
    %365 = vector.broadcast %364 : vector<2x1xi1> to vector<2x16xi1>
    %366 = arith.select %365, %359, %328 : vector<2x16xi1>, vector<2x16xf32>
    %c0_151 = arith.constant 0 : index
    %c0_152 = arith.constant 0 : index
    %367 = vector.load %arg10[%c0_151, %c0_152] : memref<2x16xf32, #tpu.memory_space<vmem>>, vector<2x16xf32>
    tpu.vector_store %arg10[%c0_151, %c0_152], %366 {strides = array<i32>} : memref<2x16xf32, #tpu.memory_space<vmem>>, vector<2x16xf32>,
    %c0_153 = arith.constant 0 : index
    %c4_154 = arith.constant 4 : index
    %c0_155 = arith.constant 0 : index
    %368 = vector.load %arg8[%c0_153, %c4_154, %c0_155] : memref<2x8x16xf32, #tpu.memory_space<vmem>>, vector<2x1x16xf32>
    %369 = vector.shape_cast %368 : vector<2x1x16xf32> to vector<2x16xf32>
    %370 = vector.shape_cast %361 : vector<2x16xf32> to vector<2x1x16xf32>
    tpu.vector_store %arg8[%c0_153, %c4_154, %c0_155], %370 {strides = array<i32>} : memref<2x8x16xf32, #tpu.memory_space<vmem>>, vector<2x1x16xf32>,
    %c0_156 = arith.constant 0 : index
    %c4_157 = arith.constant 4 : index
    %c0_158 = arith.constant 0 : index
    %c0_159 = arith.constant 0 : index
    %371 = vector.load %arg1[%c0_156, %c4_157, %c0_158, %c0_159] : memref<1x8x2x48xf32, #tpu.memory_space<vmem>>, vector<1x1x2x48xf32>
    %372 = vector.shape_cast %371 : vector<1x1x2x48xf32> to vector<2x48xf32>
    %c0_160 = arith.constant 0 : index
    %c0_161 = arith.constant 0 : index
    %373 = vector.load %arg9[%c0_160, %c0_161] : memref<2x16xf32, #tpu.memory_space<vmem>>, vector<2x16xf32>
    %c4_162 = arith.constant 4 : index
    %c0_163 = arith.constant 0 : index
    %c0_164 = arith.constant 0 : index
    %374 = vector.load %arg3[%c4_162, %c0_163, %c0_164] : memref<8x2x1xf32, #tpu.memory_space<vmem>>, vector<1x2x1xf32>
    %375 = vector.shape_cast %374 : vector<1x2x1xf32> to vector<2x1xf32>
    %cst_165 = arith.constant dense<0.000000e+00> : vector<2x48xf32>
    %376 = tpu.matmul %373, %4, %cst_165 {dimension_numbers = #tpu.dot_dimension_numbers<[1], [0], [0], [1], [0, 0, 1, 1], [], []>} : vector<2x16xf32>, vector<16x48xf32>, vector<2x48xf32> -> vector<2x48xf32>
    %377 = vector.broadcast %8 : vector<1x48xf32> to vector<2x48xf32>
    %378 = arith.addf %376, %377 : vector<2x48xf32>
    %379 = vector.extract_strided_slice %372 {offsets = [0, 0], sizes = [2, 16], strides = [1, 1]} : vector<2x48xf32> to vector<2x16xf32>
    %380 = vector.extract_strided_slice %378 {offsets = [0, 0], sizes = [2, 16], strides = [1, 1]} : vector<2x48xf32> to vector<2x16xf32>
    %381 = arith.addf %379, %380 : vector<2x16xf32>
    %382 = arith.negf %381 : vector<2x16xf32>
    %383 = math.exp %382 : vector<2x16xf32>
    %cst_166 = arith.constant 1.000000e+00 : f32
    %384 = vector.broadcast %cst_166 : f32 to vector<2x16xf32>
    %385 = arith.addf %384, %383 : vector<2x16xf32>
    %386 = arith.divf %384, %385 : vector<2x16xf32>
    %387 = vector.extract_strided_slice %372 {offsets = [0, 16], sizes = [2, 16], strides = [1, 1]} : vector<2x48xf32> to vector<2x16xf32>
    %388 = vector.extract_strided_slice %378 {offsets = [0, 16], sizes = [2, 16], strides = [1, 1]} : vector<2x48xf32> to vector<2x16xf32>
    %389 = arith.addf %387, %388 : vector<2x16xf32>
    %390 = arith.negf %389 : vector<2x16xf32>
    %391 = math.exp %390 : vector<2x16xf32>
    %cst_167 = arith.constant 1.000000e+00 : f32
    %392 = vector.broadcast %cst_167 : f32 to vector<2x16xf32>
    %393 = arith.addf %392, %391 : vector<2x16xf32>
    %394 = arith.divf %392, %393 : vector<2x16xf32>
    %395 = vector.extract_strided_slice %372 {offsets = [0, 32], sizes = [2, 16], strides = [1, 1]} : vector<2x48xf32> to vector<2x16xf32>
    %396 = vector.extract_strided_slice %378 {offsets = [0, 32], sizes = [2, 16], strides = [1, 1]} : vector<2x48xf32> to vector<2x16xf32>
    %397 = arith.mulf %386, %396 : vector<2x16xf32>
    %398 = arith.addf %395, %397 : vector<2x16xf32>
    %399 = math.tanh %398 : vector<2x16xf32>
    %cst_168 = arith.constant 1.000000e+00 : f32
    %400 = vector.broadcast %cst_168 : f32 to vector<2x16xf32>
    %401 = arith.subf %400, %394 : vector<2x16xf32>
    %402 = arith.mulf %401, %399 : vector<2x16xf32>
    %403 = arith.mulf %394, %373 : vector<2x16xf32>
    %404 = arith.addf %402, %403 : vector<2x16xf32>
    %405 = vector.broadcast %375 : vector<2x1xf32> to vector<2x16xf32>
    %406 = arith.mulf %404, %405 : vector<2x16xf32>
    %cst_169 = arith.constant 0.000000e+00 : f32
    %407 = vector.broadcast %cst_169 : f32 to vector<2x1xf32>
    %408 = arith.cmpf ogt, %375, %407 : vector<2x1xf32>
    %409 = vector.shape_cast %408 : vector<2x1xi1> to vector<2x1xi1>
    %410 = vector.broadcast %409 : vector<2x1xi1> to vector<2x16xi1>
    %411 = arith.select %410, %404, %373 : vector<2x16xi1>, vector<2x16xf32>
    %c0_170 = arith.constant 0 : index
    %c0_171 = arith.constant 0 : index
    %412 = vector.load %arg9[%c0_170, %c0_171] : memref<2x16xf32, #tpu.memory_space<vmem>>, vector<2x16xf32>
    tpu.vector_store %arg9[%c0_170, %c0_171], %411 {strides = array<i32>} : memref<2x16xf32, #tpu.memory_space<vmem>>, vector<2x16xf32>,
    %c0_172 = arith.constant 0 : index
    %c4_173 = arith.constant 4 : index
    %c0_174 = arith.constant 0 : index
    %413 = vector.load %arg7[%c0_172, %c4_173, %c0_174] : memref<2x8x16xf32, #tpu.memory_space<vmem>>, vector<2x1x16xf32>
    %414 = vector.shape_cast %413 : vector<2x1x16xf32> to vector<2x16xf32>
    %415 = vector.shape_cast %406 : vector<2x16xf32> to vector<2x1x16xf32>
    tpu.vector_store %arg7[%c0_172, %c4_173, %c0_174], %415 {strides = array<i32>} : memref<2x8x16xf32, #tpu.memory_space<vmem>>, vector<2x1x16xf32>,
    %c0_175 = arith.constant 0 : index
    %c3_176 = arith.constant 3 : index
    %c0_177 = arith.constant 0 : index
    %c0_178 = arith.constant 0 : index
    %416 = vector.load %arg2[%c0_175, %c3_176, %c0_177, %c0_178] : memref<1x8x2x48xf32, #tpu.memory_space<vmem>>, vector<1x1x2x48xf32>
    %417 = vector.shape_cast %416 : vector<1x1x2x48xf32> to vector<2x48xf32>
    %c0_179 = arith.constant 0 : index
    %c0_180 = arith.constant 0 : index
    %418 = vector.load %arg10[%c0_179, %c0_180] : memref<2x16xf32, #tpu.memory_space<vmem>>, vector<2x16xf32>
    %c3_181 = arith.constant 3 : index
    %c0_182 = arith.constant 0 : index
    %c0_183 = arith.constant 0 : index
    %419 = vector.load %arg4[%c3_181, %c0_182, %c0_183] : memref<8x2x1xf32, #tpu.memory_space<vmem>>, vector<1x2x1xf32>
    %420 = vector.shape_cast %419 : vector<1x2x1xf32> to vector<2x1xf32>
    %cst_184 = arith.constant dense<0.000000e+00> : vector<2x48xf32>
    %421 = tpu.matmul %418, %6, %cst_184 {dimension_numbers = #tpu.dot_dimension_numbers<[1], [0], [0], [1], [0, 0, 1, 1], [], []>} : vector<2x16xf32>, vector<16x48xf32>, vector<2x48xf32> -> vector<2x48xf32>
    %422 = vector.broadcast %10 : vector<1x48xf32> to vector<2x48xf32>
    %423 = arith.addf %421, %422 : vector<2x48xf32>
    %424 = vector.extract_strided_slice %417 {offsets = [0, 0], sizes = [2, 16], strides = [1, 1]} : vector<2x48xf32> to vector<2x16xf32>
    %425 = vector.extract_strided_slice %423 {offsets = [0, 0], sizes = [2, 16], strides = [1, 1]} : vector<2x48xf32> to vector<2x16xf32>
    %426 = arith.addf %424, %425 : vector<2x16xf32>
    %427 = arith.negf %426 : vector<2x16xf32>
    %428 = math.exp %427 : vector<2x16xf32>
    %cst_185 = arith.constant 1.000000e+00 : f32
    %429 = vector.broadcast %cst_185 : f32 to vector<2x16xf32>
    %430 = arith.addf %429, %428 : vector<2x16xf32>
    %431 = arith.divf %429, %430 : vector<2x16xf32>
    %432 = vector.extract_strided_slice %417 {offsets = [0, 16], sizes = [2, 16], strides = [1, 1]} : vector<2x48xf32> to vector<2x16xf32>
    %433 = vector.extract_strided_slice %423 {offsets = [0, 16], sizes = [2, 16], strides = [1, 1]} : vector<2x48xf32> to vector<2x16xf32>
    %434 = arith.addf %432, %433 : vector<2x16xf32>
    %435 = arith.negf %434 : vector<2x16xf32>
    %436 = math.exp %435 : vector<2x16xf32>
    %cst_186 = arith.constant 1.000000e+00 : f32
    %437 = vector.broadcast %cst_186 : f32 to vector<2x16xf32>
    %438 = arith.addf %437, %436 : vector<2x16xf32>
    %439 = arith.divf %437, %438 : vector<2x16xf32>
    %440 = vector.extract_strided_slice %417 {offsets = [0, 32], sizes = [2, 16], strides = [1, 1]} : vector<2x48xf32> to vector<2x16xf32>
    %441 = vector.extract_strided_slice %423 {offsets = [0, 32], sizes = [2, 16], strides = [1, 1]} : vector<2x48xf32> to vector<2x16xf32>
    %442 = arith.mulf %431, %441 : vector<2x16xf32>
    %443 = arith.addf %440, %442 : vector<2x16xf32>
    %444 = math.tanh %443 : vector<2x16xf32>
    %cst_187 = arith.constant 1.000000e+00 : f32
    %445 = vector.broadcast %cst_187 : f32 to vector<2x16xf32>
    %446 = arith.subf %445, %439 : vector<2x16xf32>
    %447 = arith.mulf %446, %444 : vector<2x16xf32>
    %448 = arith.mulf %439, %418 : vector<2x16xf32>
    %449 = arith.addf %447, %448 : vector<2x16xf32>
    %450 = vector.broadcast %420 : vector<2x1xf32> to vector<2x16xf32>
    %451 = arith.mulf %449, %450 : vector<2x16xf32>
    %cst_188 = arith.constant 0.000000e+00 : f32
    %452 = vector.broadcast %cst_188 : f32 to vector<2x1xf32>
    %453 = arith.cmpf ogt, %420, %452 : vector<2x1xf32>
    %454 = vector.shape_cast %453 : vector<2x1xi1> to vector<2x1xi1>
    %455 = vector.broadcast %454 : vector<2x1xi1> to vector<2x16xi1>
    %456 = arith.select %455, %449, %418 : vector<2x16xi1>, vector<2x16xf32>
    %c0_189 = arith.constant 0 : index
    %c0_190 = arith.constant 0 : index
    %457 = vector.load %arg10[%c0_189, %c0_190] : memref<2x16xf32, #tpu.memory_space<vmem>>, vector<2x16xf32>
    tpu.vector_store %arg10[%c0_189, %c0_190], %456 {strides = array<i32>} : memref<2x16xf32, #tpu.memory_space<vmem>>, vector<2x16xf32>,
    %c0_191 = arith.constant 0 : index
    %c3_192 = arith.constant 3 : index
    %c0_193 = arith.constant 0 : index
    %458 = vector.load %arg8[%c0_191, %c3_192, %c0_193] : memref<2x8x16xf32, #tpu.memory_space<vmem>>, vector<2x1x16xf32>
    %459 = vector.shape_cast %458 : vector<2x1x16xf32> to vector<2x16xf32>
    %460 = vector.shape_cast %451 : vector<2x16xf32> to vector<2x1x16xf32>
    tpu.vector_store %arg8[%c0_191, %c3_192, %c0_193], %460 {strides = array<i32>} : memref<2x8x16xf32, #tpu.memory_space<vmem>>, vector<2x1x16xf32>,
    %c0_194 = arith.constant 0 : index
    %c5_195 = arith.constant 5 : index
    %c0_196 = arith.constant 0 : index
    %c0_197 = arith.constant 0 : index
    %461 = vector.load %arg1[%c0_194, %c5_195, %c0_196, %c0_197] : memref<1x8x2x48xf32, #tpu.memory_space<vmem>>, vector<1x1x2x48xf32>
    %462 = vector.shape_cast %461 : vector<1x1x2x48xf32> to vector<2x48xf32>
    %c0_198 = arith.constant 0 : index
    %c0_199 = arith.constant 0 : index
    %463 = vector.load %arg9[%c0_198, %c0_199] : memref<2x16xf32, #tpu.memory_space<vmem>>, vector<2x16xf32>
    %c5_200 = arith.constant 5 : index
    %c0_201 = arith.constant 0 : index
    %c0_202 = arith.constant 0 : index
    %464 = vector.load %arg3[%c5_200, %c0_201, %c0_202] : memref<8x2x1xf32, #tpu.memory_space<vmem>>, vector<1x2x1xf32>
    %465 = vector.shape_cast %464 : vector<1x2x1xf32> to vector<2x1xf32>
    %cst_203 = arith.constant dense<0.000000e+00> : vector<2x48xf32>
    %466 = tpu.matmul %463, %4, %cst_203 {dimension_numbers = #tpu.dot_dimension_numbers<[1], [0], [0], [1], [0, 0, 1, 1], [], []>} : vector<2x16xf32>, vector<16x48xf32>, vector<2x48xf32> -> vector<2x48xf32>
    %467 = vector.broadcast %8 : vector<1x48xf32> to vector<2x48xf32>
    %468 = arith.addf %466, %467 : vector<2x48xf32>
    %469 = vector.extract_strided_slice %462 {offsets = [0, 0], sizes = [2, 16], strides = [1, 1]} : vector<2x48xf32> to vector<2x16xf32>
    %470 = vector.extract_strided_slice %468 {offsets = [0, 0], sizes = [2, 16], strides = [1, 1]} : vector<2x48xf32> to vector<2x16xf32>
    %471 = arith.addf %469, %470 : vector<2x16xf32>
    %472 = arith.negf %471 : vector<2x16xf32>
    %473 = math.exp %472 : vector<2x16xf32>
    %cst_204 = arith.constant 1.000000e+00 : f32
    %474 = vector.broadcast %cst_204 : f32 to vector<2x16xf32>
    %475 = arith.addf %474, %473 : vector<2x16xf32>
    %476 = arith.divf %474, %475 : vector<2x16xf32>
    %477 = vector.extract_strided_slice %462 {offsets = [0, 16], sizes = [2, 16], strides = [1, 1]} : vector<2x48xf32> to vector<2x16xf32>
    %478 = vector.extract_strided_slice %468 {offsets = [0, 16], sizes = [2, 16], strides = [1, 1]} : vector<2x48xf32> to vector<2x16xf32>
    %479 = arith.addf %477, %478 : vector<2x16xf32>
    %480 = arith.negf %479 : vector<2x16xf32>
    %481 = math.exp %480 : vector<2x16xf32>
    %cst_205 = arith.constant 1.000000e+00 : f32
    %482 = vector.broadcast %cst_205 : f32 to vector<2x16xf32>
    %483 = arith.addf %482, %481 : vector<2x16xf32>
    %484 = arith.divf %482, %483 : vector<2x16xf32>
    %485 = vector.extract_strided_slice %462 {offsets = [0, 32], sizes = [2, 16], strides = [1, 1]} : vector<2x48xf32> to vector<2x16xf32>
    %486 = vector.extract_strided_slice %468 {offsets = [0, 32], sizes = [2, 16], strides = [1, 1]} : vector<2x48xf32> to vector<2x16xf32>
    %487 = arith.mulf %476, %486 : vector<2x16xf32>
    %488 = arith.addf %485, %487 : vector<2x16xf32>
    %489 = math.tanh %488 : vector<2x16xf32>
    %cst_206 = arith.constant 1.000000e+00 : f32
    %490 = vector.broadcast %cst_206 : f32 to vector<2x16xf32>
    %491 = arith.subf %490, %484 : vector<2x16xf32>
    %492 = arith.mulf %491, %489 : vector<2x16xf32>
    %493 = arith.mulf %484, %463 : vector<2x16xf32>
    %494 = arith.addf %492, %493 : vector<2x16xf32>
    %495 = vector.broadcast %465 : vector<2x1xf32> to vector<2x16xf32>
    %496 = arith.mulf %494, %495 : vector<2x16xf32>
    %cst_207 = arith.constant 0.000000e+00 : f32
    %497 = vector.broadcast %cst_207 : f32 to vector<2x1xf32>
    %498 = arith.cmpf ogt, %465, %497 : vector<2x1xf32>
    %499 = vector.shape_cast %498 : vector<2x1xi1> to vector<2x1xi1>
    %500 = vector.broadcast %499 : vector<2x1xi1> to vector<2x16xi1>
    %501 = arith.select %500, %494, %463 : vector<2x16xi1>, vector<2x16xf32>
    %c0_208 = arith.constant 0 : index
    %c0_209 = arith.constant 0 : index
    %502 = vector.load %arg9[%c0_208, %c0_209] : memref<2x16xf32, #tpu.memory_space<vmem>>, vector<2x16xf32>
    tpu.vector_store %arg9[%c0_208, %c0_209], %501 {strides = array<i32>} : memref<2x16xf32, #tpu.memory_space<vmem>>, vector<2x16xf32>,
    %c0_210 = arith.constant 0 : index
    %c5_211 = arith.constant 5 : index
    %c0_212 = arith.constant 0 : index
    %503 = vector.load %arg7[%c0_210, %c5_211, %c0_212] : memref<2x8x16xf32, #tpu.memory_space<vmem>>, vector<2x1x16xf32>
    %504 = vector.shape_cast %503 : vector<2x1x16xf32> to vector<2x16xf32>
    %505 = vector.shape_cast %496 : vector<2x16xf32> to vector<2x1x16xf32>
    tpu.vector_store %arg7[%c0_210, %c5_211, %c0_212], %505 {strides = array<i32>} : memref<2x8x16xf32, #tpu.memory_space<vmem>>, vector<2x1x16xf32>,
    %c0_213 = arith.constant 0 : index
    %c2_214 = arith.constant 2 : index
    %c0_215 = arith.constant 0 : index
    %c0_216 = arith.constant 0 : index
    %506 = vector.load %arg2[%c0_213, %c2_214, %c0_215, %c0_216] : memref<1x8x2x48xf32, #tpu.memory_space<vmem>>, vector<1x1x2x48xf32>
    %507 = vector.shape_cast %506 : vector<1x1x2x48xf32> to vector<2x48xf32>
    %c0_217 = arith.constant 0 : index
    %c0_218 = arith.constant 0 : index
    %508 = vector.load %arg10[%c0_217, %c0_218] : memref<2x16xf32, #tpu.memory_space<vmem>>, vector<2x16xf32>
    %c2_219 = arith.constant 2 : index
    %c0_220 = arith.constant 0 : index
    %c0_221 = arith.constant 0 : index
    %509 = vector.load %arg4[%c2_219, %c0_220, %c0_221] : memref<8x2x1xf32, #tpu.memory_space<vmem>>, vector<1x2x1xf32>
    %510 = vector.shape_cast %509 : vector<1x2x1xf32> to vector<2x1xf32>
    %cst_222 = arith.constant dense<0.000000e+00> : vector<2x48xf32>
    %511 = tpu.matmul %508, %6, %cst_222 {dimension_numbers = #tpu.dot_dimension_numbers<[1], [0], [0], [1], [0, 0, 1, 1], [], []>} : vector<2x16xf32>, vector<16x48xf32>, vector<2x48xf32> -> vector<2x48xf32>
    %512 = vector.broadcast %10 : vector<1x48xf32> to vector<2x48xf32>
    %513 = arith.addf %511, %512 : vector<2x48xf32>
    %514 = vector.extract_strided_slice %507 {offsets = [0, 0], sizes = [2, 16], strides = [1, 1]} : vector<2x48xf32> to vector<2x16xf32>
    %515 = vector.extract_strided_slice %513 {offsets = [0, 0], sizes = [2, 16], strides = [1, 1]} : vector<2x48xf32> to vector<2x16xf32>
    %516 = arith.addf %514, %515 : vector<2x16xf32>
    %517 = arith.negf %516 : vector<2x16xf32>
    %518 = math.exp %517 : vector<2x16xf32>
    %cst_223 = arith.constant 1.000000e+00 : f32
    %519 = vector.broadcast %cst_223 : f32 to vector<2x16xf32>
    %520 = arith.addf %519, %518 : vector<2x16xf32>
    %521 = arith.divf %519, %520 : vector<2x16xf32>
    %522 = vector.extract_strided_slice %507 {offsets = [0, 16], sizes = [2, 16], strides = [1, 1]} : vector<2x48xf32> to vector<2x16xf32>
    %523 = vector.extract_strided_slice %513 {offsets = [0, 16], sizes = [2, 16], strides = [1, 1]} : vector<2x48xf32> to vector<2x16xf32>
    %524 = arith.addf %522, %523 : vector<2x16xf32>
    %525 = arith.negf %524 : vector<2x16xf32>
    %526 = math.exp %525 : vector<2x16xf32>
    %cst_224 = arith.constant 1.000000e+00 : f32
    %527 = vector.broadcast %cst_224 : f32 to vector<2x16xf32>
    %528 = arith.addf %527, %526 : vector<2x16xf32>
    %529 = arith.divf %527, %528 : vector<2x16xf32>
    %530 = vector.extract_strided_slice %507 {offsets = [0, 32], sizes = [2, 16], strides = [1, 1]} : vector<2x48xf32> to vector<2x16xf32>
    %531 = vector.extract_strided_slice %513 {offsets = [0, 32], sizes = [2, 16], strides = [1, 1]} : vector<2x48xf32> to vector<2x16xf32>
    %532 = arith.mulf %521, %531 : vector<2x16xf32>
    %533 = arith.addf %530, %532 : vector<2x16xf32>
    %534 = math.tanh %533 : vector<2x16xf32>
    %cst_225 = arith.constant 1.000000e+00 : f32
    %535 = vector.broadcast %cst_225 : f32 to vector<2x16xf32>
    %536 = arith.subf %535, %529 : vector<2x16xf32>
    %537 = arith.mulf %536, %534 : vector<2x16xf32>
    %538 = arith.mulf %529, %508 : vector<2x16xf32>
    %539 = arith.addf %537, %538 : vector<2x16xf32>
    %540 = vector.broadcast %510 : vector<2x1xf32> to vector<2x16xf32>
    %541 = arith.mulf %539, %540 : vector<2x16xf32>
    %cst_226 = arith.constant 0.000000e+00 : f32
    %542 = vector.broadcast %cst_226 : f32 to vector<2x1xf32>
    %543 = arith.cmpf ogt, %510, %542 : vector<2x1xf32>
    %544 = vector.shape_cast %543 : vector<2x1xi1> to vector<2x1xi1>
    %545 = vector.broadcast %544 : vector<2x1xi1> to vector<2x16xi1>
    %546 = arith.select %545, %539, %508 : vector<2x16xi1>, vector<2x16xf32>
    %c0_227 = arith.constant 0 : index
    %c0_228 = arith.constant 0 : index
    %547 = vector.load %arg10[%c0_227, %c0_228] : memref<2x16xf32, #tpu.memory_space<vmem>>, vector<2x16xf32>
    tpu.vector_store %arg10[%c0_227, %c0_228], %546 {strides = array<i32>} : memref<2x16xf32, #tpu.memory_space<vmem>>, vector<2x16xf32>,
    %c0_229 = arith.constant 0 : index
    %c2_230 = arith.constant 2 : index
    %c0_231 = arith.constant 0 : index
    %548 = vector.load %arg8[%c0_229, %c2_230, %c0_231] : memref<2x8x16xf32, #tpu.memory_space<vmem>>, vector<2x1x16xf32>
    %549 = vector.shape_cast %548 : vector<2x1x16xf32> to vector<2x16xf32>
    %550 = vector.shape_cast %541 : vector<2x16xf32> to vector<2x1x16xf32>
    tpu.vector_store %arg8[%c0_229, %c2_230, %c0_231], %550 {strides = array<i32>} : memref<2x8x16xf32, #tpu.memory_space<vmem>>, vector<2x1x16xf32>,
    %c0_232 = arith.constant 0 : index
    %c6_233 = arith.constant 6 : index
    %c0_234 = arith.constant 0 : index
    %c0_235 = arith.constant 0 : index
    %551 = vector.load %arg1[%c0_232, %c6_233, %c0_234, %c0_235] : memref<1x8x2x48xf32, #tpu.memory_space<vmem>>, vector<1x1x2x48xf32>
    %552 = vector.shape_cast %551 : vector<1x1x2x48xf32> to vector<2x48xf32>
    %c0_236 = arith.constant 0 : index
    %c0_237 = arith.constant 0 : index
    %553 = vector.load %arg9[%c0_236, %c0_237] : memref<2x16xf32, #tpu.memory_space<vmem>>, vector<2x16xf32>
    %c6_238 = arith.constant 6 : index
    %c0_239 = arith.constant 0 : index
    %c0_240 = arith.constant 0 : index
    %554 = vector.load %arg3[%c6_238, %c0_239, %c0_240] : memref<8x2x1xf32, #tpu.memory_space<vmem>>, vector<1x2x1xf32>
    %555 = vector.shape_cast %554 : vector<1x2x1xf32> to vector<2x1xf32>
    %cst_241 = arith.constant dense<0.000000e+00> : vector<2x48xf32>
    %556 = tpu.matmul %553, %4, %cst_241 {dimension_numbers = #tpu.dot_dimension_numbers<[1], [0], [0], [1], [0, 0, 1, 1], [], []>} : vector<2x16xf32>, vector<16x48xf32>, vector<2x48xf32> -> vector<2x48xf32>
    %557 = vector.broadcast %8 : vector<1x48xf32> to vector<2x48xf32>
    %558 = arith.addf %556, %557 : vector<2x48xf32>
    %559 = vector.extract_strided_slice %552 {offsets = [0, 0], sizes = [2, 16], strides = [1, 1]} : vector<2x48xf32> to vector<2x16xf32>
    %560 = vector.extract_strided_slice %558 {offsets = [0, 0], sizes = [2, 16], strides = [1, 1]} : vector<2x48xf32> to vector<2x16xf32>
    %561 = arith.addf %559, %560 : vector<2x16xf32>
    %562 = arith.negf %561 : vector<2x16xf32>
    %563 = math.exp %562 : vector<2x16xf32>
    %cst_242 = arith.constant 1.000000e+00 : f32
    %564 = vector.broadcast %cst_242 : f32 to vector<2x16xf32>
    %565 = arith.addf %564, %563 : vector<2x16xf32>
    %566 = arith.divf %564, %565 : vector<2x16xf32>
    %567 = vector.extract_strided_slice %552 {offsets = [0, 16], sizes = [2, 16], strides = [1, 1]} : vector<2x48xf32> to vector<2x16xf32>
    %568 = vector.extract_strided_slice %558 {offsets = [0, 16], sizes = [2, 16], strides = [1, 1]} : vector<2x48xf32> to vector<2x16xf32>
    %569 = arith.addf %567, %568 : vector<2x16xf32>
    %570 = arith.negf %569 : vector<2x16xf32>
    %571 = math.exp %570 : vector<2x16xf32>
    %cst_243 = arith.constant 1.000000e+00 : f32
    %572 = vector.broadcast %cst_243 : f32 to vector<2x16xf32>
    %573 = arith.addf %572, %571 : vector<2x16xf32>
    %574 = arith.divf %572, %573 : vector<2x16xf32>
    %575 = vector.extract_strided_slice %552 {offsets = [0, 32], sizes = [2, 16], strides = [1, 1]} : vector<2x48xf32> to vector<2x16xf32>
    %576 = vector.extract_strided_slice %558 {offsets = [0, 32], sizes = [2, 16], strides = [1, 1]} : vector<2x48xf32> to vector<2x16xf32>
    %577 = arith.mulf %566, %576 : vector<2x16xf32>
    %578 = arith.addf %575, %577 : vector<2x16xf32>
    %579 = math.tanh %578 : vector<2x16xf32>
    %cst_244 = arith.constant 1.000000e+00 : f32
    %580 = vector.broadcast %cst_244 : f32 to vector<2x16xf32>
    %581 = arith.subf %580, %574 : vector<2x16xf32>
    %582 = arith.mulf %581, %579 : vector<2x16xf32>
    %583 = arith.mulf %574, %553 : vector<2x16xf32>
    %584 = arith.addf %582, %583 : vector<2x16xf32>
    %585 = vector.broadcast %555 : vector<2x1xf32> to vector<2x16xf32>
    %586 = arith.mulf %584, %585 : vector<2x16xf32>
    %cst_245 = arith.constant 0.000000e+00 : f32
    %587 = vector.broadcast %cst_245 : f32 to vector<2x1xf32>
    %588 = arith.cmpf ogt, %555, %587 : vector<2x1xf32>
    %589 = vector.shape_cast %588 : vector<2x1xi1> to vector<2x1xi1>
    %590 = vector.broadcast %589 : vector<2x1xi1> to vector<2x16xi1>
    %591 = arith.select %590, %584, %553 : vector<2x16xi1>, vector<2x16xf32>
    %c0_246 = arith.constant 0 : index
    %c0_247 = arith.constant 0 : index
    %592 = vector.load %arg9[%c0_246, %c0_247] : memref<2x16xf32, #tpu.memory_space<vmem>>, vector<2x16xf32>
    tpu.vector_store %arg9[%c0_246, %c0_247], %591 {strides = array<i32>} : memref<2x16xf32, #tpu.memory_space<vmem>>, vector<2x16xf32>,
    %c0_248 = arith.constant 0 : index
    %c6_249 = arith.constant 6 : index
    %c0_250 = arith.constant 0 : index
    %593 = vector.load %arg7[%c0_248, %c6_249, %c0_250] : memref<2x8x16xf32, #tpu.memory_space<vmem>>, vector<2x1x16xf32>
    %594 = vector.shape_cast %593 : vector<2x1x16xf32> to vector<2x16xf32>
    %595 = vector.shape_cast %586 : vector<2x16xf32> to vector<2x1x16xf32>
    tpu.vector_store %arg7[%c0_248, %c6_249, %c0_250], %595 {strides = array<i32>} : memref<2x8x16xf32, #tpu.memory_space<vmem>>, vector<2x1x16xf32>,
    %c0_251 = arith.constant 0 : index
    %c1_252 = arith.constant 1 : index
    %c0_253 = arith.constant 0 : index
    %c0_254 = arith.constant 0 : index
    %596 = vector.load %arg2[%c0_251, %c1_252, %c0_253, %c0_254] : memref<1x8x2x48xf32, #tpu.memory_space<vmem>>, vector<1x1x2x48xf32>
    %597 = vector.shape_cast %596 : vector<1x1x2x48xf32> to vector<2x48xf32>
    %c0_255 = arith.constant 0 : index
    %c0_256 = arith.constant 0 : index
    %598 = vector.load %arg10[%c0_255, %c0_256] : memref<2x16xf32, #tpu.memory_space<vmem>>, vector<2x16xf32>
    %c1_257 = arith.constant 1 : index
    %c0_258 = arith.constant 0 : index
    %c0_259 = arith.constant 0 : index
    %599 = vector.load %arg4[%c1_257, %c0_258, %c0_259] : memref<8x2x1xf32, #tpu.memory_space<vmem>>, vector<1x2x1xf32>
    %600 = vector.shape_cast %599 : vector<1x2x1xf32> to vector<2x1xf32>
    %cst_260 = arith.constant dense<0.000000e+00> : vector<2x48xf32>
    %601 = tpu.matmul %598, %6, %cst_260 {dimension_numbers = #tpu.dot_dimension_numbers<[1], [0], [0], [1], [0, 0, 1, 1], [], []>} : vector<2x16xf32>, vector<16x48xf32>, vector<2x48xf32> -> vector<2x48xf32>
    %602 = vector.broadcast %10 : vector<1x48xf32> to vector<2x48xf32>
    %603 = arith.addf %601, %602 : vector<2x48xf32>
    %604 = vector.extract_strided_slice %597 {offsets = [0, 0], sizes = [2, 16], strides = [1, 1]} : vector<2x48xf32> to vector<2x16xf32>
    %605 = vector.extract_strided_slice %603 {offsets = [0, 0], sizes = [2, 16], strides = [1, 1]} : vector<2x48xf32> to vector<2x16xf32>
    %606 = arith.addf %604, %605 : vector<2x16xf32>
    %607 = arith.negf %606 : vector<2x16xf32>
    %608 = math.exp %607 : vector<2x16xf32>
    %cst_261 = arith.constant 1.000000e+00 : f32
    %609 = vector.broadcast %cst_261 : f32 to vector<2x16xf32>
    %610 = arith.addf %609, %608 : vector<2x16xf32>
    %611 = arith.divf %609, %610 : vector<2x16xf32>
    %612 = vector.extract_strided_slice %597 {offsets = [0, 16], sizes = [2, 16], strides = [1, 1]} : vector<2x48xf32> to vector<2x16xf32>
    %613 = vector.extract_strided_slice %603 {offsets = [0, 16], sizes = [2, 16], strides = [1, 1]} : vector<2x48xf32> to vector<2x16xf32>
    %614 = arith.addf %612, %613 : vector<2x16xf32>
    %615 = arith.negf %614 : vector<2x16xf32>
    %616 = math.exp %615 : vector<2x16xf32>
    %cst_262 = arith.constant 1.000000e+00 : f32
    %617 = vector.broadcast %cst_262 : f32 to vector<2x16xf32>
    %618 = arith.addf %617, %616 : vector<2x16xf32>
    %619 = arith.divf %617, %618 : vector<2x16xf32>
    %620 = vector.extract_strided_slice %597 {offsets = [0, 32], sizes = [2, 16], strides = [1, 1]} : vector<2x48xf32> to vector<2x16xf32>
    %621 = vector.extract_strided_slice %603 {offsets = [0, 32], sizes = [2, 16], strides = [1, 1]} : vector<2x48xf32> to vector<2x16xf32>
    %622 = arith.mulf %611, %621 : vector<2x16xf32>
    %623 = arith.addf %620, %622 : vector<2x16xf32>
    %624 = math.tanh %623 : vector<2x16xf32>
    %cst_263 = arith.constant 1.000000e+00 : f32
    %625 = vector.broadcast %cst_263 : f32 to vector<2x16xf32>
    %626 = arith.subf %625, %619 : vector<2x16xf32>
    %627 = arith.mulf %626, %624 : vector<2x16xf32>
    %628 = arith.mulf %619, %598 : vector<2x16xf32>
    %629 = arith.addf %627, %628 : vector<2x16xf32>
    %630 = vector.broadcast %600 : vector<2x1xf32> to vector<2x16xf32>
    %631 = arith.mulf %629, %630 : vector<2x16xf32>
    %cst_264 = arith.constant 0.000000e+00 : f32
    %632 = vector.broadcast %cst_264 : f32 to vector<2x1xf32>
    %633 = arith.cmpf ogt, %600, %632 : vector<2x1xf32>
    %634 = vector.shape_cast %633 : vector<2x1xi1> to vector<2x1xi1>
    %635 = vector.broadcast %634 : vector<2x1xi1> to vector<2x16xi1>
    %636 = arith.select %635, %629, %598 : vector<2x16xi1>, vector<2x16xf32>
    %c0_265 = arith.constant 0 : index
    %c0_266 = arith.constant 0 : index
    %637 = vector.load %arg10[%c0_265, %c0_266] : memref<2x16xf32, #tpu.memory_space<vmem>>, vector<2x16xf32>
    tpu.vector_store %arg10[%c0_265, %c0_266], %636 {strides = array<i32>} : memref<2x16xf32, #tpu.memory_space<vmem>>, vector<2x16xf32>,
    %c0_267 = arith.constant 0 : index
    %c1_268 = arith.constant 1 : index
    %c0_269 = arith.constant 0 : index
    %638 = vector.load %arg8[%c0_267, %c1_268, %c0_269] : memref<2x8x16xf32, #tpu.memory_space<vmem>>, vector<2x1x16xf32>
    %639 = vector.shape_cast %638 : vector<2x1x16xf32> to vector<2x16xf32>
    %640 = vector.shape_cast %631 : vector<2x16xf32> to vector<2x1x16xf32>
    tpu.vector_store %arg8[%c0_267, %c1_268, %c0_269], %640 {strides = array<i32>} : memref<2x8x16xf32, #tpu.memory_space<vmem>>, vector<2x1x16xf32>,
    %c0_270 = arith.constant 0 : index
    %c7_271 = arith.constant 7 : index
    %c0_272 = arith.constant 0 : index
    %c0_273 = arith.constant 0 : index
    %641 = vector.load %arg1[%c0_270, %c7_271, %c0_272, %c0_273] : memref<1x8x2x48xf32, #tpu.memory_space<vmem>>, vector<1x1x2x48xf32>
    %642 = vector.shape_cast %641 : vector<1x1x2x48xf32> to vector<2x48xf32>
    %c0_274 = arith.constant 0 : index
    %c0_275 = arith.constant 0 : index
    %643 = vector.load %arg9[%c0_274, %c0_275] : memref<2x16xf32, #tpu.memory_space<vmem>>, vector<2x16xf32>
    %c7_276 = arith.constant 7 : index
    %c0_277 = arith.constant 0 : index
    %c0_278 = arith.constant 0 : index
    %644 = vector.load %arg3[%c7_276, %c0_277, %c0_278] : memref<8x2x1xf32, #tpu.memory_space<vmem>>, vector<1x2x1xf32>
    %645 = vector.shape_cast %644 : vector<1x2x1xf32> to vector<2x1xf32>
    %cst_279 = arith.constant dense<0.000000e+00> : vector<2x48xf32>
    %646 = tpu.matmul %643, %4, %cst_279 {dimension_numbers = #tpu.dot_dimension_numbers<[1], [0], [0], [1], [0, 0, 1, 1], [], []>} : vector<2x16xf32>, vector<16x48xf32>, vector<2x48xf32> -> vector<2x48xf32>
    %647 = vector.broadcast %8 : vector<1x48xf32> to vector<2x48xf32>
    %648 = arith.addf %646, %647 : vector<2x48xf32>
    %649 = vector.extract_strided_slice %642 {offsets = [0, 0], sizes = [2, 16], strides = [1, 1]} : vector<2x48xf32> to vector<2x16xf32>
    %650 = vector.extract_strided_slice %648 {offsets = [0, 0], sizes = [2, 16], strides = [1, 1]} : vector<2x48xf32> to vector<2x16xf32>
    %651 = arith.addf %649, %650 : vector<2x16xf32>
    %652 = arith.negf %651 : vector<2x16xf32>
    %653 = math.exp %652 : vector<2x16xf32>
    %cst_280 = arith.constant 1.000000e+00 : f32
    %654 = vector.broadcast %cst_280 : f32 to vector<2x16xf32>
    %655 = arith.addf %654, %653 : vector<2x16xf32>
    %656 = arith.divf %654, %655 : vector<2x16xf32>
    %657 = vector.extract_strided_slice %642 {offsets = [0, 16], sizes = [2, 16], strides = [1, 1]} : vector<2x48xf32> to vector<2x16xf32>
    %658 = vector.extract_strided_slice %648 {offsets = [0, 16], sizes = [2, 16], strides = [1, 1]} : vector<2x48xf32> to vector<2x16xf32>
    %659 = arith.addf %657, %658 : vector<2x16xf32>
    %660 = arith.negf %659 : vector<2x16xf32>
    %661 = math.exp %660 : vector<2x16xf32>
    %cst_281 = arith.constant 1.000000e+00 : f32
    %662 = vector.broadcast %cst_281 : f32 to vector<2x16xf32>
    %663 = arith.addf %662, %661 : vector<2x16xf32>
    %664 = arith.divf %662, %663 : vector<2x16xf32>
    %665 = vector.extract_strided_slice %642 {offsets = [0, 32], sizes = [2, 16], strides = [1, 1]} : vector<2x48xf32> to vector<2x16xf32>
    %666 = vector.extract_strided_slice %648 {offsets = [0, 32], sizes = [2, 16], strides = [1, 1]} : vector<2x48xf32> to vector<2x16xf32>
    %667 = arith.mulf %656, %666 : vector<2x16xf32>
    %668 = arith.addf %665, %667 : vector<2x16xf32>
    %669 = math.tanh %668 : vector<2x16xf32>
    %cst_282 = arith.constant 1.000000e+00 : f32
    %670 = vector.broadcast %cst_282 : f32 to vector<2x16xf32>
    %671 = arith.subf %670, %664 : vector<2x16xf32>
    %672 = arith.mulf %671, %669 : vector<2x16xf32>
    %673 = arith.mulf %664, %643 : vector<2x16xf32>
    %674 = arith.addf %672, %673 : vector<2x16xf32>
    %675 = vector.broadcast %645 : vector<2x1xf32> to vector<2x16xf32>
    %676 = arith.mulf %674, %675 : vector<2x16xf32>
    %cst_283 = arith.constant 0.000000e+00 : f32
    %677 = vector.broadcast %cst_283 : f32 to vector<2x1xf32>
    %678 = arith.cmpf ogt, %645, %677 : vector<2x1xf32>
    %679 = vector.shape_cast %678 : vector<2x1xi1> to vector<2x1xi1>
    %680 = vector.broadcast %679 : vector<2x1xi1> to vector<2x16xi1>
    %681 = arith.select %680, %674, %643 : vector<2x16xi1>, vector<2x16xf32>
    %c0_284 = arith.constant 0 : index
    %c0_285 = arith.constant 0 : index
    %682 = vector.load %arg9[%c0_284, %c0_285] : memref<2x16xf32, #tpu.memory_space<vmem>>, vector<2x16xf32>
    tpu.vector_store %arg9[%c0_284, %c0_285], %681 {strides = array<i32>} : memref<2x16xf32, #tpu.memory_space<vmem>>, vector<2x16xf32>,
    %c0_286 = arith.constant 0 : index
    %c7_287 = arith.constant 7 : index
    %c0_288 = arith.constant 0 : index
    %683 = vector.load %arg7[%c0_286, %c7_287, %c0_288] : memref<2x8x16xf32, #tpu.memory_space<vmem>>, vector<2x1x16xf32>
    %684 = vector.shape_cast %683 : vector<2x1x16xf32> to vector<2x16xf32>
    %685 = vector.shape_cast %676 : vector<2x16xf32> to vector<2x1x16xf32>
    tpu.vector_store %arg7[%c0_286, %c7_287, %c0_288], %685 {strides = array<i32>} : memref<2x8x16xf32, #tpu.memory_space<vmem>>, vector<2x1x16xf32>,
    %c0_289 = arith.constant 0 : index
    %c0_290 = arith.constant 0 : index
    %c0_291 = arith.constant 0 : index
    %c0_292 = arith.constant 0 : index
    %686 = vector.load %arg2[%c0_289, %c0_290, %c0_291, %c0_292] : memref<1x8x2x48xf32, #tpu.memory_space<vmem>>, vector<1x1x2x48xf32>
    %687 = vector.shape_cast %686 : vector<1x1x2x48xf32> to vector<2x48xf32>
    %c0_293 = arith.constant 0 : index
    %c0_294 = arith.constant 0 : index
    %688 = vector.load %arg10[%c0_293, %c0_294] : memref<2x16xf32, #tpu.memory_space<vmem>>, vector<2x16xf32>
    %c0_295 = arith.constant 0 : index
    %c0_296 = arith.constant 0 : index
    %c0_297 = arith.constant 0 : index
    %689 = vector.load %arg4[%c0_295, %c0_296, %c0_297] : memref<8x2x1xf32, #tpu.memory_space<vmem>>, vector<1x2x1xf32>
    %690 = vector.shape_cast %689 : vector<1x2x1xf32> to vector<2x1xf32>
    %cst_298 = arith.constant dense<0.000000e+00> : vector<2x48xf32>
    %691 = tpu.matmul %688, %6, %cst_298 {dimension_numbers = #tpu.dot_dimension_numbers<[1], [0], [0], [1], [0, 0, 1, 1], [], []>} : vector<2x16xf32>, vector<16x48xf32>, vector<2x48xf32> -> vector<2x48xf32>
    %692 = vector.broadcast %10 : vector<1x48xf32> to vector<2x48xf32>
    %693 = arith.addf %691, %692 : vector<2x48xf32>
    %694 = vector.extract_strided_slice %687 {offsets = [0, 0], sizes = [2, 16], strides = [1, 1]} : vector<2x48xf32> to vector<2x16xf32>
    %695 = vector.extract_strided_slice %693 {offsets = [0, 0], sizes = [2, 16], strides = [1, 1]} : vector<2x48xf32> to vector<2x16xf32>
    %696 = arith.addf %694, %695 : vector<2x16xf32>
    %697 = arith.negf %696 : vector<2x16xf32>
    %698 = math.exp %697 : vector<2x16xf32>
    %cst_299 = arith.constant 1.000000e+00 : f32
    %699 = vector.broadcast %cst_299 : f32 to vector<2x16xf32>
    %700 = arith.addf %699, %698 : vector<2x16xf32>
    %701 = arith.divf %699, %700 : vector<2x16xf32>
    %702 = vector.extract_strided_slice %687 {offsets = [0, 16], sizes = [2, 16], strides = [1, 1]} : vector<2x48xf32> to vector<2x16xf32>
    %703 = vector.extract_strided_slice %693 {offsets = [0, 16], sizes = [2, 16], strides = [1, 1]} : vector<2x48xf32> to vector<2x16xf32>
    %704 = arith.addf %702, %703 : vector<2x16xf32>
    %705 = arith.negf %704 : vector<2x16xf32>
    %706 = math.exp %705 : vector<2x16xf32>
    %cst_300 = arith.constant 1.000000e+00 : f32
    %707 = vector.broadcast %cst_300 : f32 to vector<2x16xf32>
    %708 = arith.addf %707, %706 : vector<2x16xf32>
    %709 = arith.divf %707, %708 : vector<2x16xf32>
    %710 = vector.extract_strided_slice %687 {offsets = [0, 32], sizes = [2, 16], strides = [1, 1]} : vector<2x48xf32> to vector<2x16xf32>
    %711 = vector.extract_strided_slice %693 {offsets = [0, 32], sizes = [2, 16], strides = [1, 1]} : vector<2x48xf32> to vector<2x16xf32>
    %712 = arith.mulf %701, %711 : vector<2x16xf32>
    %713 = arith.addf %710, %712 : vector<2x16xf32>
    %714 = math.tanh %713 : vector<2x16xf32>
    %cst_301 = arith.constant 1.000000e+00 : f32
    %715 = vector.broadcast %cst_301 : f32 to vector<2x16xf32>
    %716 = arith.subf %715, %709 : vector<2x16xf32>
    %717 = arith.mulf %716, %714 : vector<2x16xf32>
    %718 = arith.mulf %709, %688 : vector<2x16xf32>
    %719 = arith.addf %717, %718 : vector<2x16xf32>
    %720 = vector.broadcast %690 : vector<2x1xf32> to vector<2x16xf32>
    %721 = arith.mulf %719, %720 : vector<2x16xf32>
    %cst_302 = arith.constant 0.000000e+00 : f32
    %722 = vector.broadcast %cst_302 : f32 to vector<2x1xf32>
    %723 = arith.cmpf ogt, %690, %722 : vector<2x1xf32>
    %724 = vector.shape_cast %723 : vector<2x1xi1> to vector<2x1xi1>
    %725 = vector.broadcast %724 : vector<2x1xi1> to vector<2x16xi1>
    %726 = arith.select %725, %719, %688 : vector<2x16xi1>, vector<2x16xf32>
    %c0_303 = arith.constant 0 : index
    %c0_304 = arith.constant 0 : index
    %727 = vector.load %arg10[%c0_303, %c0_304] : memref<2x16xf32, #tpu.memory_space<vmem>>, vector<2x16xf32>
    tpu.vector_store %arg10[%c0_303, %c0_304], %726 {strides = array<i32>} : memref<2x16xf32, #tpu.memory_space<vmem>>, vector<2x16xf32>,
    %c0_305 = arith.constant 0 : index
    %c0_306 = arith.constant 0 : index
    %c0_307 = arith.constant 0 : index
    %728 = vector.load %arg8[%c0_305, %c0_306, %c0_307] : memref<2x8x16xf32, #tpu.memory_space<vmem>>, vector<2x1x16xf32>
    %729 = vector.shape_cast %728 : vector<2x1x16xf32> to vector<2x16xf32>
    %730 = vector.shape_cast %721 : vector<2x16xf32> to vector<2x1x16xf32>
    tpu.vector_store %arg8[%c0_305, %c0_306, %c0_307], %730 {strides = array<i32>} : memref<2x8x16xf32, #tpu.memory_space<vmem>>, vector<2x1x16xf32>,
    return
  }
  func.func @transform_0(%arg0: i32) -> (i32, i32, i32, i32) {
    %c0_i32 = arith.constant 0 : i32
    %c0_i32_0 = arith.constant 0 : i32
    %c0_i32_1 = arith.constant 0 : i32
    %c0_i32_2 = arith.constant 0 : i32
    return %c0_i32, %arg0, %c0_i32_0, %c0_i32_1 : i32, i32, i32, i32
  }
  func.func @transform_1(%arg0: i32) -> (i32, i32, i32, i32) {
    %c0_i32 = arith.constant 0 : i32
    %0 = arith.subi %c0_i32, %arg0 : i32
    %c1_i32 = arith.constant 1 : i32
    %c0_i32_0 = arith.constant 0 : i32
    %c0_i32_1 = arith.constant 0 : i32
    %c0_i32_2 = arith.constant 0 : i32
    return %c1_i32, %0, %c0_i32_0, %c0_i32_1 : i32, i32, i32, i32
  }
  func.func @transform_2(%arg0: i32) -> (i32, i32, i32) {
    %c0_i32 = arith.constant 0 : i32
    %c0_i32_0 = arith.constant 0 : i32
    %c0_i32_1 = arith.constant 0 : i32
    return %arg0, %c0_i32, %c0_i32_0 : i32, i32, i32
  }
  func.func @transform_3(%arg0: i32) -> (i32, i32, i32) {
    %c0_i32 = arith.constant 0 : i32
    %0 = arith.subi %c0_i32, %arg0 : i32
    %c0_i32_0 = arith.constant 0 : i32
    %c0_i32_1 = arith.constant 0 : i32
    %c0_i32_2 = arith.constant 0 : i32
    return %0, %c0_i32_0, %c0_i32_1 : i32, i32, i32
  }
  func.func @transform_4(%arg0: i32) -> (i32, i32, i32) {
    %c0_i32 = arith.constant 0 : i32
    %c0_i32_0 = arith.constant 0 : i32
    %c0_i32_1 = arith.constant 0 : i32
    %c0_i32_2 = arith.constant 0 : i32
    return %c0_i32, %c0_i32_0, %c0_i32_1 : i32, i32, i32
  }
  func.func @transform_5(%arg0: i32) -> (i32, i32, i32) {
    %c0_i32 = arith.constant 0 : i32
    %c0_i32_0 = arith.constant 0 : i32
    %c0_i32_1 = arith.constant 0 : i32
    %c0_i32_2 = arith.constant 0 : i32
    return %c0_i32, %c0_i32_0, %c0_i32_1 : i32, i32, i32
  }
  func.func @transform_6(%arg0: i32) -> (i32, i32, i32) {
    %c0_i32 = arith.constant 0 : i32
    %c0_i32_0 = arith.constant 0 : i32
    %c0_i32_1 = arith.constant 0 : i32
    return %c0_i32, %arg0, %c0_i32_0 : i32, i32, i32
  }
  func.func @transform_7(%arg0: i32) -> (i32, i32, i32) {
    %c0_i32 = arith.constant 0 : i32
    %0 = arith.subi %c0_i32, %arg0 : i32
    %c0_i32_0 = arith.constant 0 : i32
    %c0_i32_1 = arith.constant 0 : i32
    %c0_i32_2 = arith.constant 0 : i32
    return %c0_i32_0, %0, %c0_i32_1 : i32, i32, i32
  }
}

</mosaic_0001>

<bundles_post_ra>
// kernel: tpu_custom_call.1
= control target key start
LH: loop header
LB: loop body
LE: loop exit
PB: predicated region body
PF: predicated region fallthrough
CT: control target
= control target key end

     0   :  { %13 = vsyncpa [#allocation5], 0  ;;  %s3976_s0 = inlined_call_operand.vmem [shape: f32[2,8,2,48], index: 0, kind: input, shape index: {}]   ;;  %s3977_s1 = inlined_call_operand.hbm [shape: f32[2,8,2,48], index: 1, kind: input, shape index: {}]   ;;  %s3978_s2 = inlined_call_operand.vmem [shape: f32[8,2,1], index: 2, kind: input, shape index: {}]   ;;  %s3979_s3 = inlined_call_operand.vmem [shape: f32[8,2,1], index: 3, kind: input, shape index: {}]   ;;  %s3980_s4 = inlined_call_operand.hbm [shape: f32[2,16,48], index: 4, kind: input, shape index: {}]   ;;  %s3981_s5 = inlined_call_operand.vmem [shape: f32[2,1,48], index: 5, kind: input, shape index: {}]   ;;  %s3982_s6 = inlined_call_operand.hbm [shape: f32[2,8,16], index: 6, kind: output, shape index: {0}]   ;;  %s3983_s7 = inlined_call_operand.hbm [shape: f32[2,8,16], index: 7, kind: output, shape index: {1}]  }
   0x1   :  { %14 = vsyncpa [#allocation8], 0 }
   0x2   :  { %15 = vsyncpa [#allocation6], 0 }
   0x3   :  { %16 = vsyncpa [#allocation11], 0  ;;  %s2775_s26 = scalar_lea.hbm %s3977_s1, 256  ;;  %s3267_s27 = smov [#allocation4]  }
   0x4   :  { %s29_s28 = sshll.u32 %s3267_s27, 4  ;;  %s3192_s8 = scalar_lea.hbm %s3977_s1, 512  ;;  %s30_s28 = int_to_ptr.vmem [resolvable:$true] %s29_s28 }
   0x5   :  { %p3169_p0 = scmp.ne.s32.totalorder %s2775_s26, %s3192_s8  ;;  %p3171_p1 = scmp.lt.u32.totalorder %s2775_s26, %s3977_s1 }
   0x6   :  { %p3172_p2 = scmp.lt.u32.totalorder %s3192_s8, %s3192_s8  ;;  %p3174_p4 = scmp.lt.u32.totalorder %s3192_s8, %s2775_s26 }
   0x8   :  { %p3173_p3 = por %p3172_p2, %p3171_p1 }
   0xa   :  { %p3175_p5 = por %p3174_p4, %p3173_p3 }
   0xc   :  { %p3176_p6 = pnand %p3175_p5, %p3169_p0 }
   0xe   :  { %3179 = shalt.err (!%p3176_p6)
}
   0xf   :  { %s3180_s11 = scalar_lea.vmem %s30_s28, 256  ;;  %p3185_p8 = scmp.lt.s32.totalorder %s30_s28, %s30_s28 }
  0x10   :  { %p3181_p7 = scmp.ne.s32.totalorder %s30_s28, %s3180_s11  ;;  %p3186_p9 = scmp.lt.s32.totalorder %s3180_s11, %s3180_s11 }
  0x12   :  { %p3187_p10 = por %p3186_p9, %p3185_p8 }
  0x14   :  { %p3188_p11 = pnand %p3187_p10, %p3181_p7 }
  0x16   :  { %3191 = shalt.err (!%p3188_p11)
}
  0x17   :  { %s3268_s12 = smov 32   ;;  %s3269_s13 = smov 2  }
  0x18   :  { %35 = dma.hbm_to_vmem [thread:$0]  %s2775_s26, 256, %s30_s28, [#allocation5], %s3268_s12, %s3268_s12, %s3269_s13  }
  0x19   :  { %s3270_s14 = smov [#allocation7]   ;;  %s3193_s17 = scalar_lea.hbm %s3980_s4, 512 }
  0x1a   :  { %s53_s1 = sshll.u32 %s3270_s14, 4  ;;  %p3194_p12 = scmp.ne.s32.totalorder %s3980_s4, %s3193_s17  ;;  %s54_s1 = int_to_ptr.vmem [resolvable:$true] %s53_s1 }
  0x1b   :  { %p3197_p13 = scmp.lt.u32.totalorder %s3193_s17, %s3980_s4 }
  0x1d   :  { %p3199_p0 = pnand %p3197_p13, %p3194_p12 }
  0x1f   :  { %3202 = shalt.err (!%p3199_p0)
}
  0x20   :  { %s3203_s22 = scalar_lea.vmem %s54_s1, 512  ;;  %p3208_p2 = scmp.lt.s32.totalorder %s54_s1, %s54_s1 }
  0x21   :  { %p3204_p1 = scmp.ne.s32.totalorder %s54_s1, %s3203_s22  ;;  %p3209_p3 = scmp.lt.s32.totalorder %s3203_s22, %s3203_s22 }
  0x23   :  { %p3210_p4 = por %p3209_p3, %p3208_p2 }
  0x25   :  { %p3211_p5 = pnand %p3210_p4, %p3204_p1 }
  0x27   :  { %3214 = shalt.err (!%p3211_p5)
}
  0x28   :  { %s3271_s23 = smov 128   ;;  %s3272_s24 = smov 8  }
  0x29   :  { %59 = dma.hbm_to_vmem [thread:$0]  %s3980_s4, 512, %s54_s1, [#allocation8], %s3271_s23, %s3271_s23, %s3272_s24  }
  0x2a   :  { %3259 = dma.done.wait [#allocation5], 256  }
  0x2b   :  { %3260 = vsyncadd [#allocation5], 4294967040 }
  0x2c   :  { %3261 = dma.done.wait [#allocation8], 512  }
  0x2d   :  { %3262 = vsyncadd [#allocation8], 4294966784  ;;  %vm89_vm0 = vcmask 123904   ;;  %v3273_v0 = vmov 0.0|0.0   ;;  %vm3274_vm1 = vmmov 0   ;;  %v3275_v1 = vmov 0.0  }
  0x2e   :  { %3000 = vmatprep.subr.bf16.mxu0 %v3273_v0  ;;  %2892 = vmatprep.mubr.msk.f32.mxu0 %vm3274_vm1, %v3275_v1  ;;  %90 = vst.msk [vmem:[#allocation2] sm:$0x3] %vm89_vm0, %v3275_v1  ;;  %91 = vst.msk [vmem:[#allocation3] sm:$0x3] %vm89_vm0, %v3275_v1  ;;  %v92_v2 = vld [vmem:[#allocation7] sm:$0xff]  ;;  %v93_v3 = vld [vmem:[#allocation7 + $0x8] sm:$0xff] }
  0x2f   :  { %3003 = vmatprep.subr.bf16.mxu1 %v3273_v0  ;;  %2899 = vmatprep.mubr.msk.f32.mxu1 %vm3274_vm1, %v3275_v1  ;;  %v95_v4 = vld [vmem:[#allocation7 + $0x10] sm:$0xff]  ;;  %v3359_v5 = vpack.c.bf16 %v93_v3, %v92_v2  ;;  %v96_v6 = vld [vmem:[#allocation7 + $0x18] sm:$0xff]  ;;  %vm109_vm2 = vcmask 130048   ;;  %v3276_v10 = vmov 0   ;;  %v3382_v11 = vld [vmem:[%s3981_s5] ss:$0 sm:$0xff] }
  0x30   :  { %v3361_v7 = vpack.c.bf16 %v96_v6, %v95_v4  ;;  %3064 = vset.pattern.permute.xlu0 %v3276_v10  ;;  %3065 = vset.pattern.permute.xlu1 %v3276_v10  ;;  %v3387_v13 = vld [vmem:[%s3981_s5 + $0x1] ss:$0 sm:$0xff]  ;;  %s3277_s9 = smov 96   ;;  %s3278_s10 = smov 16   ;;  %v272_v22 = vld [vmem:[#allocation4 + $0xe] sm:$0x3] }
  0x31   :  { %3002 = vmatpush3.bf16.msra.mxu0 %v3359_v5  ;;  %v102_v17 = vld [vmem:[%s3978_s2] sm:$0x3]  ;;  %v2788_v35 = vld [vmem:[%s3979_s3 + $0xe] sm:$0x3]  ;;  %s3279_s15 = smov 112  }
  0x32   :  { %3005 = vmatpush3.bf16.msra.mxu1 %v3361_v7  ;;  %3006 = vmatprep.subr.bf16.mxu0 %v3273_v0  ;;  %vm218_vm3 = vcmp.gt.f32.partialorder %v102_v17, 0.0  ;;  %v100_v21 = vld [vmem:[%s3976_s0] sm:$0x3]  ;;  %vm390_vm4 = vcmp.gt.f32.partialorder %v2788_v35, 0.0 }
  0x33   :  { %3009 = vmatprep.subr.bf16.mxu1 %v3273_v0  ;;  %v219_v20 = vsel %vm218_vm3, 1, %v3276_v10  ;;  %v391_v38 = vsel %vm390_vm4, 1, %v3276_v10 }
  0x35   :  { %v101_v8 = vld [vmem:[#allocation2] sm:$0x3]  ;;  %v273_v9 = vld [vmem:[#allocation3] sm:$0x3] }
  0x36   :  { %2893 = vmatmul.mubr.msk.f32.vlgmr.msra.gmra.mrb[0].mxu0 %vm109_vm2, %v101_v8  ;;  %2900 = vmatmul.mubr.msk.f32.vlgmr.msra.gmra.mrb[0].mxu1 %vm109_vm2, %v273_v9 }
  0x37   :  { %3008 = vmatpush3.bf16.msra.mxu0 %v3359_v5  ;;  %2906 = vmatprep.mubr.msk.f32.mxu0 %vm3274_vm1, %v3275_v1 }
  0x38   :  { %3011 = vmatpush3.bf16.msra.mxu1 %v3361_v7  ;;  %2913 = vmatprep.mubr.msk.f32.mxu1 %vm3274_vm1, %v3275_v1 }
  0x39   :  { %3012 = vmatprep.subr.bf16.mxu0 %v3273_v0  ;;  %3015 = vmatprep.subr.bf16.mxu1 %v3273_v0 }
 0x109   :  { %v179_v12 = vpop.f32.mrb[0].mxu0  ;;  %v351_v16 = vpop.f32.mrb[0].mxu1 }
 0x10a   :  { %v180_v14 = vadd.f32 %v3382_v11, %v179_v12  ;;  %v2894_v15 = vpop.f32.mrb[1].mxu0  ;;  %v2901_v18 = vpop.f32.mrb[1].mxu1  ;;  %v352_v19 = vadd.f32 %v3387_v13, %v351_v16  ;;  %v606_v16 = vld [vmem:[#allocation4 + $0xc] sm:$0x3] }
 0x10c   :  { %191 = vrot.lane.b32.xlu0 %v180_v14, %s3277_s9  ;;  %v183_v23 = vadd.f32 %v180_v14, %v100_v21  ;;  %v355_v24 = vadd.f32 %v352_v19, %v272_v22  ;;  %v2792_v14 = vld [vmem:[%s3976_s0 + $0x2] sm:$0x3] }
 0x10e   :  { %v2787_v25 = vmul.f32 -1.442695, %v183_v23  ;;  %v2791_v26 = vmul.f32 -1.442695, %v355_v24  ;;  %v2793_v24 = vld [vmem:[%s3978_s2 + $0x2] sm:$0x3] }
 0x10f   :  { %vm554_vm7 = vcmp.gt.f32.partialorder %v2793_v24, 0.0 }
 0x110   :  { %363 = vrot.lane.b32.xlu0 %v352_v19, %s3277_s9  ;;  %3066 = vpow2.f32 %v2787_v25 }
 0x111   :  { %3068 = vpow2.f32 %v2791_v26 }
 0x114   :  { %221 = vperm.xlu0 %3064, %v219_v20  }
 0x118   :  { %207 = vrot.lane.b32.xlu0 %v101_v8, %s3278_s10 }
 0x11a   :  { %v3067_v27 = vpop.eup %3066 }
 0x11b   :  { %v3069_v28 = vpop.eup %3068  ;;  %v187_v29 = vadd.f32 1.0, %v3067_v27 }
 0x11c   :  { %379 = vrot.lane.b32.xlu0 %v273_v9, %s3278_s10  ;;  %v359_v30 = vadd.f32 1.0, %v3069_v28  ;;  %v2796_v28 = vld [vmem:[%s3979_s3 + $0xc] sm:$0x3] }
 0x11d   :  { %3070 = vrcp.f32 %v187_v29  ;;  %vm718_vm8 = vcmp.gt.f32.partialorder %v2796_v28, 0.0 }
 0x11e   :  { %3072 = vrcp.f32 %v359_v30 }
 0x127   :  { %v3071_v31 = vpop.eup %3070 }
 0x128   :  { %v3073_v34 = vpop.eup %3072  ;;  %v201_v48 = vsub.f32 1.0, %v3071_v31 }
 0x129   :  { %v373_v54 = vsub.f32 1.0, %v3073_v34 }
 0x17e   :  { %v192_v32 = vpop.permute.xlu0 %191 }
 0x17f   :  { %v194_v33 = vmul.f32 %v3071_v31, %v192_v32 }
 0x181   :  { %196 = vrot.lane.b32.xlu1 %v194_v33, %s3268_s12  ;;  %v719_v33 = vsel %vm718_vm8, 1, %v3276_v10 }
 0x182   :  { %v364_v36 = vpop.permute.xlu0 %363 }
 0x183   :  { %v366_v37 = vmul.f32 %v3073_v34, %v364_v36 }
 0x185   :  { %368 = vrot.lane.b32.xlu1 %v366_v37, %s3268_s12 }
 0x189   :  { %393 = vperm.xlu1 %3065, %v391_v38  }
 0x193   :  { %v222_v45 = vpop.permute.xlu0 %221 }
 0x194   :  { %vm223_vm5 = vcmp.eq.s32.totalorder %v222_v45, 1 }
 0x197   :  { %v208_v47 = vpop.permute.xlu0 %207 }
 0x198   :  { %v210_v50 = vmul.f32 %v3071_v31, %v208_v47  ;;  %v555_v31 = vsel %vm554_vm7, 1, %v3276_v10 }
 0x19b   :  { %v380_v52 = vpop.permute.xlu0 %379 }
 0x19c   :  { %v382_v56 = vmul.f32 %v3073_v34, %v380_v52 }
 0x1f3   :  { %v197_v39 = vpop.permute.xlu1 %196 }
 0x1f4   :  { %v199_v40 = vadd.f32 %v197_v39, %v100_v21 }
 0x1f6   :  { %3074 = vtanh.f32 %v199_v40 }
 0x1f7   :  { %v369_v41 = vpop.permute.xlu1 %368 }
 0x1f8   :  { %v371_v42 = vadd.f32 %v369_v41, %v272_v22 }
 0x1fa   :  { %3076 = vtanh.f32 %v371_v42 }
 0x200   :  { %v3075_v43 = vpop.eup %3074 }
 0x201   :  { %203 = vrot.lane.b32.xlu1 %v3075_v43, %s3279_s15 }
 0x204   :  { %v3077_v44 = vpop.eup %3076 }
 0x205   :  { %375 = vrot.lane.b32.xlu1 %v3077_v44, %s3279_s15 }
 0x208   :  { %v394_v46 = vpop.permute.xlu1 %393 }
 0x209   :  { %vm395_vm6 = vcmp.eq.s32.totalorder %v394_v46, 1 }
 0x273   :  { %v204_v49 = vpop.permute.xlu1 %203 }
 0x274   :  { %v206_v51 = vmul.f32 %v204_v49, %v201_v48 }
 0x276   :  { %v3410_v53 = vadd.f32 %v210_v50, %v206_v51 }
 0x277   :  { %v376_v55 = vpop.permute.xlu1 %375 }
 0x278   :  { %v378_v57 = vmul.f32 %v376_v55, %v373_v54  ;;  %v224_v58 = vsel %vm223_vm5, %v3410_v53, %v208_v47 }
 0x279   :  { %226 = vrot.lane.b32.xlu1 %v224_v58, %s3279_s15 }
 0x27a   :  { %v3414_v59 = vadd.f32 %v382_v56, %v378_v57 }
 0x27c   :  { %v396_v60 = vsel %vm395_vm6, %v3414_v59, %v380_v52 }
 0x27d   :  { %398 = vrot.lane.b32.xlu0 %v396_v60, %s3279_s15 }
 0x2eb   :  { %v227_v61 = vpop.permute.xlu1 %226 }
 0x2ec   :  { %230 = vst.msk [vmem:[#allocation2] sm:$0x3] %vm89_vm0, %v227_v61 }
 0x2ef   :  { %v399_v62 = vpop.permute.xlu0 %398 }
 0x2f0   :  { %401 = vst.msk [vmem:[#allocation3] sm:$0x3] %vm89_vm0, %v399_v62 }
 0x2f3   :  { %v443_v63 = vld [vmem:[#allocation2] sm:$0x3] }
 0x2f4   :  { %2907 = vmatmul.mubr.msk.f32.vlgmr.msra.gmra.mrb[2].mxu0 %vm109_vm2, %v443_v63 }
 0x2f5   :  { %3014 = vmatpush3.bf16.msra.mxu0 %v3359_v5  ;;  %2920 = vmatprep.mubr.msk.f32.mxu0 %vm3274_vm1, %v3275_v1 }
 0x2f6   :  { %3018 = vmatprep.subr.bf16.mxu0 %v3273_v0 }
 0x2f7   :  { %v607_v2 = vld [vmem:[#allocation3] sm:$0x3] }
 0x2f8   :  { %2914 = vmatmul.mubr.msk.f32.vlgmr.msra.gmra.mrb[2].mxu1 %vm109_vm2, %v607_v2 }
 0x2f9   :  { %3017 = vmatpush3.bf16.msra.mxu1 %v3361_v7  ;;  %2927 = vmatprep.mubr.msk.f32.mxu1 %vm3274_vm1, %v3275_v1 }
 0x2fa   :  { %3021 = vmatprep.subr.bf16.mxu1 %v3273_v0 }
 0x3c7   :  { %v515_v3 = vpop.f32.mrb[2].mxu0 }
 0x3c8   :  { %v516_v4 = vadd.f32 %v3382_v11, %v515_v3  ;;  %v2908_v6 = vpop.f32.mrb[3].mxu0 }
 0x3ca   :  { %527 = vrot.lane.b32.xlu1 %v516_v4, %s3277_s9  ;;  %v519_v15 = vadd.f32 %v2792_v14, %v516_v4 }
 0x3cb   :  { %v679_v8 = vpop.f32.mrb[2].mxu1 }
 0x3cc   :  { %v680_v9 = vadd.f32 %v3387_v13, %v679_v8  ;;  %v2915_v12 = vpop.f32.mrb[3].mxu1  ;;  %v2795_v17 = vmul.f32 -1.442695, %v519_v15  ;;  %v2799_v8 = vld [vmem:[%s3976_s0 + $0x4] sm:$0x3] }
 0x3cd   :  { %v934_v12 = vld [vmem:[#allocation4 + $0xa] sm:$0x3] }
 0x3ce   :  { %691 = vrot.lane.b32.xlu0 %v680_v9, %s3277_s9  ;;  %v683_v18 = vadd.f32 %v680_v9, %v606_v16  ;;  %3078 = vpow2.f32 %v2795_v17 }
 0x3d0   :  { %v2798_v19 = vmul.f32 -1.442695, %v683_v18 }
 0x3d2   :  { %3080 = vpow2.f32 %v2798_v19 }
 0x3d8   :  { %v3079_v20 = vpop.eup %3078 }
 0x3d9   :  { %v523_v21 = vadd.f32 1.0, %v3079_v20 }
 0x3db   :  { %3082 = vrcp.f32 %v523_v21  ;;  %v3481_v21 = vld [vmem:[%s3978_s2 + $0x4] sm:$0x3] }
 0x3dc   :  { %v3081_v22 = vpop.eup %3080  ;;  %vm882_vm11 = vcmp.gt.f32.partialorder %v3481_v21, 0.0 }
 0x3dd   :  { %v687_v23 = vadd.f32 1.0, %v3081_v22  ;;  %v883_v28 = vsel %vm882_vm11, 1, %v3276_v10 }
 0x3df   :  { %3084 = vrcp.f32 %v687_v23 }
 0x3e5   :  { %v3083_v25 = vpop.eup %3082 }
 0x3e6   :  { %v537_v43 = vsub.f32 1.0, %v3083_v25 }
 0x3e9   :  { %v3085_v29 = vpop.eup %3084 }
 0x3ea   :  { %v701_v49 = vsub.f32 1.0, %v3085_v29 }
 0x43c   :  { %v528_v26 = vpop.permute.xlu1 %527 }
 0x43d   :  { %v530_v27 = vmul.f32 %v3083_v25, %v528_v26 }
 0x43f   :  { %532 = vrot.lane.b32.xlu1 %v530_v27, %s3268_s12 }
 0x440   :  { %v692_v30 = vpop.permute.xlu0 %691 }
 0x441   :  { %v694_v32 = vmul.f32 %v3085_v29, %v692_v30 }
 0x443   :  { %696 = vrot.lane.b32.xlu0 %v694_v32, %s3268_s12  ;;  %557 = vperm.xlu1 %3065, %v555_v31  }
 0x447   :  { %721 = vperm.xlu0 %3064, %v719_v33  }
 0x44b   :  { %543 = vrot.lane.b32.xlu0 %v443_v63, %s3278_s10 }
 0x44f   :  { %707 = vrot.lane.b32.xlu0 %v607_v2, %s3278_s10 }
 0x4b1   :  { %v533_v34 = vpop.permute.xlu1 %532 }
 0x4b2   :  { %v535_v35 = vadd.f32 %v2792_v14, %v533_v34 }
 0x4b4   :  { %3086 = vtanh.f32 %v535_v35 }
 0x4b5   :  { %v697_v36 = vpop.permute.xlu0 %696 }
 0x4b6   :  { %v699_v37 = vadd.f32 %v697_v36, %v606_v16 }
 0x4b8   :  { %3088 = vtanh.f32 %v699_v37 }
 0x4be   :  { %v3087_v38 = vpop.eup %3086 }
 0x4bf   :  { %539 = vrot.lane.b32.xlu1 %v3087_v38, %s3279_s15 }
 0x4c2   :  { %v3089_v39 = vpop.eup %3088  ;;  %v558_v41 = vpop.permute.xlu1 %557 }
 0x4c3   :  { %703 = vrot.lane.b32.xlu1 %v3089_v39, %s3279_s15  ;;  %vm559_vm9 = vcmp.eq.s32.totalorder %v558_v41, 1 }
 0x4c6   :  { %v722_v40 = vpop.permute.xlu0 %721 }
 0x4c7   :  { %vm723_vm10 = vcmp.eq.s32.totalorder %v722_v40, 1 }
 0x4ca   :  { %v544_v42 = vpop.permute.xlu0 %543 }
 0x4cb   :  { %v546_v45 = vmul.f32 %v3083_v25, %v544_v42  ;;  %v3487_v25 = vld [vmem:[%s3979_s3 + $0xa] sm:$0x3] }
 0x4cc   :  { %vm1046_vm12 = vcmp.gt.f32.partialorder %v3487_v25, 0.0 }
 0x4cd   :  { %v1047_v30 = vsel %vm1046_vm12, 1, %v3276_v10 }
 0x4ce   :  { %v708_v47 = vpop.permute.xlu0 %707 }
 0x4cf   :  { %v710_v51 = vmul.f32 %v3085_v29, %v708_v47 }
 0x531   :  { %v540_v44 = vpop.permute.xlu1 %539 }
 0x532   :  { %v542_v46 = vmul.f32 %v540_v44, %v537_v43 }
 0x534   :  { %v3451_v48 = vadd.f32 %v546_v45, %v542_v46 }
 0x535   :  { %v704_v50 = vpop.permute.xlu1 %703 }
 0x536   :  { %v706_v52 = vmul.f32 %v704_v50, %v701_v49  ;;  %v560_v54 = vsel %vm559_vm9, %v3451_v48, %v544_v42 }
 0x537   :  { %562 = vrot.lane.b32.xlu1 %v560_v54, %s3279_s15 }
 0x538   :  { %v3455_v55 = vadd.f32 %v710_v51, %v706_v52 }
 0x53a   :  { %v724_v56 = vsel %vm723_vm10, %v3455_v55, %v708_v47 }
 0x53b   :  { %726 = vrot.lane.b32.xlu0 %v724_v56, %s3279_s15 }
 0x5a9   :  { %v563_v57 = vpop.permute.xlu1 %562 }
 0x5aa   :  { %565 = vst.msk [vmem:[#allocation2] sm:$0x3] %vm89_vm0, %v563_v57 }
 0x5ad   :  { %v727_v58 = vpop.permute.xlu0 %726 }
 0x5ae   :  { %729 = vst.msk [vmem:[#allocation3] sm:$0x3] %vm89_vm0, %v727_v58 }
 0x5b1   :  { %v771_v60 = vld [vmem:[#allocation2] sm:$0x3] }
 0x5b2   :  { %2921 = vmatmul.mubr.msk.f32.vlgmr.msra.gmra.mrb[4].mxu0 %vm109_vm2, %v771_v60 }
 0x5b3   :  { %3020 = vmatpush3.bf16.msra.mxu0 %v3359_v5  ;;  %2934 = vmatprep.mubr.msk.f32.mxu0 %vm3274_vm1, %v3275_v1 }
 0x5b4   :  { %3024 = vmatprep.subr.bf16.mxu0 %v3273_v0 }
 0x5b5   :  { %v935_v61 = vld [vmem:[#allocation3] sm:$0x3] }
 0x5b6   :  { %2928 = vmatmul.mubr.msk.f32.vlgmr.msra.gmra.mrb[4].mxu1 %vm109_vm2, %v935_v61 }
 0x5b7   :  { %3023 = vmatpush3.bf16.msra.mxu1 %v3361_v7  ;;  %2941 = vmatprep.mubr.msk.f32.mxu1 %vm3274_vm1, %v3275_v1 }
 0x5b8   :  { %3027 = vmatprep.subr.bf16.mxu1 %v3273_v0 }
 0x685   :  { %v843_v62 = vpop.f32.mrb[4].mxu0 }
 0x686   :  { %v844_v63 = vadd.f32 %v3382_v11, %v843_v62  ;;  %v2922_v2 = vpop.f32.mrb[5].mxu0 }
 0x688   :  { %855 = vrot.lane.b32.xlu1 %v844_v63, %s3277_s9  ;;  %v847_v9 = vadd.f32 %v2799_v8, %v844_v63 }
 0x689   :  { %v1007_v3 = vpop.f32.mrb[4].mxu1 }
 0x68a   :  { %v1008_v4 = vadd.f32 %v3387_v13, %v1007_v3  ;;  %v2929_v6 = vpop.f32.mrb[5].mxu1  ;;  %v2802_v14 = vmul.f32 -1.442695, %v847_v9  ;;  %v1262_v9 = vld [vmem:[#allocation4 + $0x8] sm:$0x3] }
 0x68b   :  { %v2806_v6 = vld [vmem:[%s3976_s0 + $0x6] sm:$0x3] }
 0x68c   :  { %1019 = vrot.lane.b32.xlu0 %v1008_v4, %s3277_s9  ;;  %v1011_v15 = vadd.f32 %v1008_v4, %v934_v12  ;;  %3090 = vpow2.f32 %v2802_v14 }
 0x68e   :  { %v2805_v16 = vmul.f32 -1.442695, %v1011_v15 }
 0x690   :  { %3092 = vpow2.f32 %v2805_v16 }
 0x696   :  { %v3091_v17 = vpop.eup %3090 }
 0x697   :  { %v851_v18 = vadd.f32 1.0, %v3091_v17 }
 0x699   :  { %3094 = vrcp.f32 %v851_v18 }
 0x69a   :  { %v3093_v19 = vpop.eup %3092 }
 0x69b   :  { %v1015_v20 = vadd.f32 1.0, %v3093_v19 }
 0x69d   :  { %3096 = vrcp.f32 %v1015_v20  ;;  %v3528_v20 = vld [vmem:[%s3978_s2 + $0x6] sm:$0x3] }
 0x69e   :  { %vm1210_vm15 = vcmp.gt.f32.partialorder %v3528_v20, 0.0 }
 0x6a3   :  { %v3095_v22 = vpop.eup %3094 }
 0x6a4   :  { %v865_v40 = vsub.f32 1.0, %v3095_v22 }
 0x6a7   :  { %v3097_v26 = vpop.eup %3096 }
 0x6a8   :  { %v1029_v46 = vsub.f32 1.0, %v3097_v26 }
 0x6fa   :  { %v856_v23 = vpop.permute.xlu1 %855 }
 0x6fb   :  { %v858_v24 = vmul.f32 %v3095_v22, %v856_v23 }
 0x6fd   :  { %860 = vrot.lane.b32.xlu1 %v858_v24, %s3268_s12 }
 0x6fe   :  { %v1020_v27 = vpop.permute.xlu0 %1019 }
 0x6ff   :  { %v1022_v29 = vmul.f32 %v3097_v26, %v1020_v27 }
 0x701   :  { %1024 = vrot.lane.b32.xlu0 %v1022_v29, %s3268_s12  ;;  %885 = vperm.xlu1 %3065, %v883_v28   ;;  %v1211_v29 = vsel %vm1210_vm15, 1, %v3276_v10 }
 0x705   :  { %1049 = vperm.xlu0 %3064, %v1047_v30  }
 0x709   :  { %871 = vrot.lane.b32.xlu0 %v771_v60, %s3278_s10 }
 0x70d   :  { %1035 = vrot.lane.b32.xlu0 %v935_v61, %s3278_s10 }
 0x76f   :  { %v861_v31 = vpop.permute.xlu1 %860 }
 0x770   :  { %v863_v32 = vadd.f32 %v2799_v8, %v861_v31 }
 0x772   :  { %3098 = vtanh.f32 %v863_v32 }
 0x773   :  { %v1025_v33 = vpop.permute.xlu0 %1024 }
 0x774   :  { %v1027_v34 = vadd.f32 %v1025_v33, %v934_v12 }
 0x776   :  { %3100 = vtanh.f32 %v1027_v34 }
 0x77c   :  { %v3099_v35 = vpop.eup %3098 }
 0x77d   :  { %867 = vrot.lane.b32.xlu1 %v3099_v35, %s3279_s15 }
 0x780   :  { %v3101_v36 = vpop.eup %3100  ;;  %v886_v38 = vpop.permute.xlu1 %885 }
 0x781   :  { %1031 = vrot.lane.b32.xlu1 %v3101_v36, %s3279_s15  ;;  %vm887_vm13 = vcmp.eq.s32.totalorder %v886_v38, 1 }
 0x784   :  { %v1050_v37 = vpop.permute.xlu0 %1049 }
 0x785   :  { %vm1051_vm14 = vcmp.eq.s32.totalorder %v1050_v37, 1 }
 0x788   :  { %v872_v39 = vpop.permute.xlu0 %871 }
 0x789   :  { %v874_v42 = vmul.f32 %v3095_v22, %v872_v39 }
 0x78c   :  { %v1036_v44 = vpop.permute.xlu0 %1035 }
 0x78d   :  { %v1038_v49 = vmul.f32 %v3097_v26, %v1036_v44  ;;  %v3534_v26 = vld [vmem:[%s3979_s3 + $0x8] sm:$0x3] }
 0x78e   :  { %vm1374_vm3 = vcmp.gt.f32.partialorder %v3534_v26, 0.0 }
 0x78f   :  { %v1375_v31 = vsel %vm1374_vm3, 1, %v3276_v10 }
 0x7ef   :  { %v868_v41 = vpop.permute.xlu1 %867 }
 0x7f0   :  { %v870_v43 = vmul.f32 %v868_v41, %v865_v40 }
 0x7f2   :  { %v3498_v45 = vadd.f32 %v874_v42, %v870_v43 }
 0x7f3   :  { %v1032_v47 = vpop.permute.xlu1 %1031 }
 0x7f4   :  { %v1034_v50 = vmul.f32 %v1032_v47, %v1029_v46  ;;  %v888_v51 = vsel %vm887_vm13, %v3498_v45, %v872_v39 }
 0x7f5   :  { %890 = vrot.lane.b32.xlu1 %v888_v51, %s3279_s15 }
 0x7f6   :  { %v3502_v52 = vadd.f32 %v1038_v49, %v1034_v50 }
 0x7f8   :  { %v1052_v54 = vsel %vm1051_vm14, %v3502_v52, %v1036_v44 }
 0x7f9   :  { %1054 = vrot.lane.b32.xlu0 %v1052_v54, %s3279_s15 }
 0x867   :  { %v891_v56 = vpop.permute.xlu1 %890 }
 0x868   :  { %893 = vst.msk [vmem:[#allocation2] sm:$0x3] %vm89_vm0, %v891_v56 }
 0x86b   :  { %v1055_v57 = vpop.permute.xlu0 %1054 }
 0x86c   :  { %1057 = vst.msk [vmem:[#allocation3] sm:$0x3] %vm89_vm0, %v1055_v57 }
 0x86f   :  { %v1099_v58 = vld [vmem:[#allocation2] sm:$0x3] }
 0x870   :  { %2935 = vmatmul.mubr.msk.f32.vlgmr.msra.gmra.mrb[6].mxu0 %vm109_vm2, %v1099_v58 }
 0x871   :  { %3026 = vmatpush3.bf16.msra.mxu0 %v3359_v5  ;;  %2948 = vmatprep.mubr.msk.f32.mxu0 %vm3274_vm1, %v3275_v1 }
 0x872   :  { %3030 = vmatprep.subr.bf16.mxu0 %v3273_v0 }
 0x873   :  { %v1263_v60 = vld [vmem:[#allocation3] sm:$0x3] }
 0x874   :  { %2942 = vmatmul.mubr.msk.f32.vlgmr.msra.gmra.mrb[6].mxu1 %vm109_vm2, %v1263_v60 }
 0x875   :  { %3029 = vmatpush3.bf16.msra.mxu1 %v3361_v7  ;;  %2955 = vmatprep.mubr.msk.f32.mxu1 %vm3274_vm1, %v3275_v1 }
 0x876   :  { %3033 = vmatprep.subr.bf16.mxu1 %v3273_v0 }
 0x943   :  { %v1171_v61 = vpop.f32.mrb[6].mxu0 }
 0x944   :  { %v1172_v62 = vadd.f32 %v3382_v11, %v1171_v61  ;;  %v2936_v63 = vpop.f32.mrb[7].mxu0 }
 0x946   :  { %1183 = vrot.lane.b32.xlu1 %v1172_v62, %s3277_s9  ;;  %v1175_v8 = vadd.f32 %v2806_v6, %v1172_v62 }
 0x947   :  { %v1335_v2 = vpop.f32.mrb[6].mxu1 }
 0x948   :  { %v1336_v3 = vadd.f32 %v3387_v13, %v1335_v2  ;;  %v2943_v4 = vpop.f32.mrb[7].mxu1  ;;  %v2809_v12 = vmul.f32 -1.442695, %v1175_v8 }
 0x94a   :  { %1347 = vrot.lane.b32.xlu0 %v1336_v3, %s3277_s9  ;;  %v1339_v14 = vadd.f32 %v1336_v3, %v1262_v9  ;;  %3102 = vpow2.f32 %v2809_v12  ;;  %v2813_v12 = vld [vmem:[%s3976_s0 + $0x8] sm:$0x3] }
 0x94c   :  { %v2812_v15 = vmul.f32 -1.442695, %v1339_v14 }
 0x94e   :  { %3104 = vpow2.f32 %v2812_v15  ;;  %v1590_v15 = vld [vmem:[#allocation4 + $0x6] sm:$0x3] }
 0x954   :  { %v3103_v16 = vpop.eup %3102 }
 0x955   :  { %v1179_v17 = vadd.f32 1.0, %v3103_v16 }
 0x957   :  { %3106 = vrcp.f32 %v1179_v17 }
 0x958   :  { %v3105_v18 = vpop.eup %3104 }
 0x959   :  { %v1343_v19 = vadd.f32 1.0, %v3105_v18 }
 0x95b   :  { %3108 = vrcp.f32 %v1343_v19 }
 0x961   :  { %v3107_v22 = vpop.eup %3106 }
 0x962   :  { %v1193_v41 = vsub.f32 1.0, %v3107_v22 }
 0x965   :  { %v3109_v27 = vpop.eup %3108 }
 0x966   :  { %v1357_v49 = vsub.f32 1.0, %v3109_v27 }
 0x9b8   :  { %v1184_v23 = vpop.permute.xlu1 %1183 }
 0x9b9   :  { %v1186_v24 = vmul.f32 %v3107_v22, %v1184_v23 }
 0x9bb   :  { %1188 = vrot.lane.b32.xlu1 %v1186_v24, %s3268_s12 }
 0x9bc   :  { %v1348_v28 = vpop.permute.xlu0 %1347 }
 0x9bd   :  { %v1350_v30 = vmul.f32 %v3109_v27, %v1348_v28 }
 0x9bf   :  { %1352 = vrot.lane.b32.xlu0 %v1350_v30, %s3268_s12  ;;  %1213 = vperm.xlu1 %3065, %v1211_v29  }
 0x9c3   :  { %1377 = vperm.xlu0 %3064, %v1375_v31   ;;  %v3581_v31 = vld [vmem:[%s3979_s3 + $0x6] sm:$0x3] }
 0x9c4   :  { %vm1702_vm7 = vcmp.gt.f32.partialorder %v3581_v31, 0.0 }
 0x9c7   :  { %1199 = vrot.lane.b32.xlu0 %v1099_v58, %s3278_s10 }
 0x9cb   :  { %1363 = vrot.lane.b32.xlu0 %v1263_v60, %s3278_s10 }
 0xa2d   :  { %v1189_v32 = vpop.permute.xlu1 %1188 }
 0xa2e   :  { %v1191_v33 = vadd.f32 %v2806_v6, %v1189_v32 }
 0xa30   :  { %3110 = vtanh.f32 %v1191_v33 }
 0xa31   :  { %v1353_v34 = vpop.permute.xlu0 %1352 }
 0xa32   :  { %v1355_v35 = vadd.f32 %v1353_v34, %v1262_v9 }
 0xa34   :  { %3112 = vtanh.f32 %v1355_v35 }
 0xa3a   :  { %v3111_v36 = vpop.eup %3110 }
 0xa3b   :  { %1195 = vrot.lane.b32.xlu1 %v3111_v36, %s3279_s15  ;;  %v1703_v36 = vsel %vm1702_vm7, 1, %v3276_v10 }
 0xa3e   :  { %v3113_v37 = vpop.eup %3112  ;;  %v1214_v39 = vpop.permute.xlu1 %1213 }
 0xa3f   :  { %1359 = vrot.lane.b32.xlu1 %v3113_v37, %s3279_s15  ;;  %vm1215_vm4 = vcmp.eq.s32.totalorder %v1214_v39, 1 }
 0xa42   :  { %v1378_v38 = vpop.permute.xlu0 %1377 }
 0xa43   :  { %vm1379_vm5 = vcmp.eq.s32.totalorder %v1378_v38, 1 }
 0xa46   :  { %v1200_v40 = vpop.permute.xlu0 %1199 }
 0xa47   :  { %v1202_v43 = vmul.f32 %v3107_v22, %v1200_v40 }
 0xa4a   :  { %v1364_v46 = vpop.permute.xlu0 %1363 }
 0xa4b   :  { %v1366_v51 = vmul.f32 %v3109_v27, %v1364_v46  ;;  %v3575_v27 = vld [vmem:[%s3978_s2 + $0x8] sm:$0x3] }
 0xa4c   :  { %vm1538_vm6 = vcmp.gt.f32.partialorder %v3575_v27, 0.0 }
 0xa4d   :  { %v1539_v34 = vsel %vm1538_vm6, 1, %v3276_v10 }
 0xaad   :  { %v1196_v42 = vpop.permute.xlu1 %1195 }
 0xaae   :  { %v1198_v44 = vmul.f32 %v1196_v42, %v1193_v41 }
 0xab0   :  { %v3545_v47 = vadd.f32 %v1202_v43, %v1198_v44 }
 0xab1   :  { %v1360_v50 = vpop.permute.xlu1 %1359 }
 0xab2   :  { %v1362_v54 = vmul.f32 %v1360_v50, %v1357_v49  ;;  %v1216_v56 = vsel %vm1215_vm4, %v3545_v47, %v1200_v40  ;;  %vm268_vm4 = vcmask 122880  }
 0xab3   :  { %1218 = vrot.lane.b32.xlu1 %v1216_v56, %s3279_s15 }
 0xab4   :  { %v3549_v57 = vadd.f32 %v1366_v51, %v1362_v54 }
 0xab6   :  { %v1380_v58 = vsel %vm1379_vm5, %v3549_v57, %v1364_v46 }
 0xab7   :  { %1382 = vrot.lane.b32.xlu0 %v1380_v58, %s3279_s15 }
 0xb25   :  { %v1219_v60 = vpop.permute.xlu1 %1218 }
 0xb26   :  { %1221 = vst.msk [vmem:[#allocation2] sm:$0x3] %vm89_vm0, %v1219_v60 }
 0xb29   :  { %v1383_v61 = vpop.permute.xlu0 %1382 }
 0xb2a   :  { %1385 = vst.msk [vmem:[#allocation3] sm:$0x3] %vm89_vm0, %v1383_v61 }
 0xb2d   :  { %v1427_v62 = vld [vmem:[#allocation2] sm:$0x3] }
 0xb2e   :  { %2949 = vmatmul.mubr.msk.f32.vlgmr.msra.gmra.mrb[8].mxu0 %vm109_vm2, %v1427_v62 }
 0xb2f   :  { %3032 = vmatpush3.bf16.msra.mxu0 %v3359_v5  ;;  %2962 = vmatprep.mubr.msk.f32.mxu0 %vm3274_vm1, %v3275_v1 }
 0xb30   :  { %3036 = vmatprep.subr.bf16.mxu0 %v3273_v0 }
 0xb31   :  { %v1591_v63 = vld [vmem:[#allocation3] sm:$0x3] }
 0xb32   :  { %2956 = vmatmul.mubr.msk.f32.vlgmr.msra.gmra.mrb[8].mxu1 %vm109_vm2, %v1591_v63 }
 0xb33   :  { %3035 = vmatpush3.bf16.msra.mxu1 %v3361_v7  ;;  %2969 = vmatprep.mubr.msk.f32.mxu1 %vm3274_vm1, %v3275_v1 }
 0xb34   :  { %3039 = vmatprep.subr.bf16.mxu1 %v3273_v0 }
 0xc01   :  { %v1499_v2 = vpop.f32.mrb[8].mxu0 }
 0xc02   :  { %v1500_v3 = vadd.f32 %v3382_v11, %v1499_v2  ;;  %v2950_v4 = vpop.f32.mrb[9].mxu0 }
 0xc04   :  { %1511 = vrot.lane.b32.xlu1 %v1500_v3, %s3277_s9  ;;  %v1503_v14 = vadd.f32 %v2813_v12, %v1500_v3 }
 0xc05   :  { %v1663_v6 = vpop.f32.mrb[8].mxu1 }
 0xc06   :  { %v1664_v8 = vadd.f32 %v3387_v13, %v1663_v6  ;;  %v2957_v9 = vpop.f32.mrb[9].mxu1  ;;  %v2816_v16 = vmul.f32 -1.442695, %v1503_v14 }
 0xc08   :  { %1675 = vrot.lane.b32.xlu0 %v1664_v8, %s3277_s9  ;;  %v1667_v17 = vadd.f32 %v1664_v8, %v1590_v15  ;;  %3114 = vpow2.f32 %v2816_v16 }
 0xc0a   :  { %v2819_v18 = vmul.f32 -1.442695, %v1667_v17 }
 0xc0c   :  { %3116 = vpow2.f32 %v2819_v18 }
 0xc12   :  { %v3115_v19 = vpop.eup %3114 }
 0xc13   :  { %v1507_v22 = vadd.f32 1.0, %v3115_v19 }
 0xc15   :  { %3118 = vrcp.f32 %v1507_v22  ;;  %v2820_v22 = vld [vmem:[%s3976_s0 + $0xa] sm:$0x3] }
 0xc16   :  { %v3117_v23 = vpop.eup %3116 }
 0xc17   :  { %v1671_v24 = vadd.f32 1.0, %v3117_v23 }
 0xc19   :  { %3120 = vrcp.f32 %v1671_v24  ;;  %v1918_v24 = vld [vmem:[#allocation4 + $0x4] sm:$0x3] }
 0xc1f   :  { %v3119_v28 = vpop.eup %3118 }
 0xc20   :  { %v1521_v49 = vsub.f32 1.0, %v3119_v28 }
 0xc23   :  { %v3121_v32 = vpop.eup %3120 }
 0xc24   :  { %v1685_v60 = vsub.f32 1.0, %v3121_v32 }
 0xc76   :  { %v1512_v29 = vpop.permute.xlu1 %1511 }
 0xc77   :  { %v1514_v30 = vmul.f32 %v3119_v28, %v1512_v29 }
 0xc79   :  { %1516 = vrot.lane.b32.xlu1 %v1514_v30, %s3268_s12 }
 0xc7a   :  { %v1676_v33 = vpop.permute.xlu0 %1675 }
 0xc7b   :  { %v1678_v35 = vmul.f32 %v3121_v32, %v1676_v33 }
 0xc7d   :  { %1680 = vrot.lane.b32.xlu0 %v1678_v35, %s3268_s12  ;;  %1541 = vperm.xlu1 %3065, %v1539_v34   ;;  %v3622_v35 = vld [vmem:[%s3978_s2 + $0xa] sm:$0x3] }
 0xc7e   :  { %vm1866_vm10 = vcmp.gt.f32.partialorder %v3622_v35, 0.0 }
 0xc81   :  { %1705 = vperm.xlu0 %3064, %v1703_v36  }
 0xc85   :  { %1527 = vrot.lane.b32.xlu0 %v1427_v62, %s3278_s10 }
 0xc89   :  { %1691 = vrot.lane.b32.xlu0 %v1591_v63, %s3278_s10 }
 0xceb   :  { %v1517_v37 = vpop.permute.xlu1 %1516 }
 0xcec   :  { %v1519_v38 = vadd.f32 %v2813_v12, %v1517_v37 }
 0xcee   :  { %3122 = vtanh.f32 %v1519_v38 }
 0xcef   :  { %v1681_v39 = vpop.permute.xlu0 %1680 }
 0xcf0   :  { %v1683_v40 = vadd.f32 %v1681_v39, %v1590_v15  ;;  %v3628_v39 = vld [vmem:[%s3979_s3 + $0x4] sm:$0x3] }
 0xcf1   :  { %vm2030_vm11 = vcmp.gt.f32.partialorder %v3628_v39, 0.0 }
 0xcf2   :  { %3124 = vtanh.f32 %v1683_v40 }
 0xcf8   :  { %v3123_v41 = vpop.eup %3122 }
 0xcf9   :  { %1523 = vrot.lane.b32.xlu1 %v3123_v41, %s3279_s15 }
 0xcfc   :  { %v3125_v42 = vpop.eup %3124  ;;  %v1542_v44 = vpop.permute.xlu1 %1541 }
 0xcfd   :  { %1687 = vrot.lane.b32.xlu1 %v3125_v42, %s3279_s15  ;;  %vm1543_vm8 = vcmp.eq.s32.totalorder %v1542_v44, 1  ;;  %v1867_v42 = vsel %vm1866_vm10, 1, %v3276_v10  ;;  %v2031_v44 = vsel %vm2030_vm11, 1, %v3276_v10 }
 0xd00   :  { %v1706_v43 = vpop.permute.xlu0 %1705 }
 0xd01   :  { %vm1707_vm9 = vcmp.eq.s32.totalorder %v1706_v43, 1 }
 0xd04   :  { %v1528_v46 = vpop.permute.xlu0 %1527 }
 0xd05   :  { %v1530_v51 = vmul.f32 %v3119_v28, %v1528_v46 }
 0xd08   :  { %v1692_v56 = vpop.permute.xlu0 %1691 }
 0xd09   :  { %v1694_v62 = vmul.f32 %v3121_v32, %v1692_v56 }
 0xd6b   :  { %v1524_v50 = vpop.permute.xlu1 %1523 }
 0xd6c   :  { %v1526_v54 = vmul.f32 %v1524_v50, %v1521_v49 }
 0xd6e   :  { %v3592_v58 = vadd.f32 %v1530_v51, %v1526_v54 }
 0xd6f   :  { %v1688_v61 = vpop.permute.xlu1 %1687 }
 0xd70   :  { %v1690_v63 = vmul.f32 %v1688_v61, %v1685_v60  ;;  %v1544_v2 = vsel %vm1543_vm8, %v3592_v58, %v1528_v46 }
 0xd71   :  { %1546 = vrot.lane.b32.xlu1 %v1544_v2, %s3279_s15 }
 0xd72   :  { %v3596_v3 = vadd.f32 %v1694_v62, %v1690_v63 }
 0xd74   :  { %v1708_v4 = vsel %vm1707_vm9, %v3596_v3, %v1692_v56 }
 0xd75   :  { %1710 = vrot.lane.b32.xlu0 %v1708_v4, %s3279_s15 }
 0xde3   :  { %v1547_v6 = vpop.permute.xlu1 %1546 }
 0xde4   :  { %1549 = vst.msk [vmem:[#allocation2] sm:$0x3] %vm89_vm0, %v1547_v6 }
 0xde7   :  { %v1711_v8 = vpop.permute.xlu0 %1710 }
 0xde8   :  { %1713 = vst.msk [vmem:[#allocation3] sm:$0x3] %vm89_vm0, %v1711_v8 }
 0xdeb   :  { %v1755_v9 = vld [vmem:[#allocation2] sm:$0x3] }
 0xdec   :  { %2963 = vmatmul.mubr.msk.f32.vlgmr.msra.gmra.mrb[10].mxu0 %vm109_vm2, %v1755_v9 }
 0xded   :  { %3038 = vmatpush3.bf16.msra.mxu0 %v3359_v5  ;;  %2976 = vmatprep.mubr.msk.f32.mxu0 %vm3274_vm1, %v3275_v1 }
 0xdee   :  { %3042 = vmatprep.subr.bf16.mxu0 %v3273_v0 }
 0xdef   :  { %v1919_v12 = vld [vmem:[#allocation3] sm:$0x3] }
 0xdf0   :  { %2970 = vmatmul.mubr.msk.f32.vlgmr.msra.gmra.mrb[10].mxu1 %vm109_vm2, %v1919_v12 }
 0xdf1   :  { %3041 = vmatpush3.bf16.msra.mxu1 %v3361_v7  ;;  %2983 = vmatprep.mubr.msk.f32.mxu1 %vm3274_vm1, %v3275_v1 }
 0xdf2   :  { %3045 = vmatprep.subr.bf16.mxu1 %v3273_v0 }
 0xebf   :  { %v1827_v14 = vpop.f32.mrb[10].mxu0 }
 0xec0   :  { %v1828_v15 = vadd.f32 %v3382_v11, %v1827_v14  ;;  %v2964_v16 = vpop.f32.mrb[11].mxu0 }
 0xec2   :  { %1839 = vrot.lane.b32.xlu1 %v1828_v15, %s3277_s9  ;;  %v1831_v23 = vadd.f32 %v2820_v22, %v1828_v15 }
 0xec3   :  { %v1991_v17 = vpop.f32.mrb[10].mxu1 }
 0xec4   :  { %v1992_v18 = vadd.f32 %v3387_v13, %v1991_v17  ;;  %v2971_v19 = vpop.f32.mrb[11].mxu1  ;;  %v2823_v28 = vmul.f32 -1.442695, %v1831_v23 }
 0xec6   :  { %2003 = vrot.lane.b32.xlu0 %v1992_v18, %s3277_s9  ;;  %v1995_v0 = vadd.f32 %v1992_v18, %v1918_v24  ;;  %3126 = vpow2.f32 %v2823_v28 }
 0xec8   :  { %v2826_v29 = vmul.f32 -1.442695, %v1995_v0 }
 0xeca   :  { %3128 = vpow2.f32 %v2826_v29 }
 0xed0   :  { %v3127_v30 = vpop.eup %3126 }
 0xed1   :  { %v1835_v32 = vadd.f32 1.0, %v3127_v30 }
 0xed3   :  { %3130 = vrcp.f32 %v1835_v32 }
 0xed4   :  { %v3129_v33 = vpop.eup %3128 }
 0xed5   :  { %v1999_v34 = vadd.f32 1.0, %v3129_v33 }
 0xed7   :  { %3132 = vrcp.f32 %v1999_v34  ;;  %v2827_v34 = vld [vmem:[%s3976_s0 + $0xc] sm:$0x3] }
 0xedd   :  { %v3131_v36 = vpop.eup %3130 }
 0xede   :  { %v1849_v63 = vsub.f32 1.0, %v3131_v36 }
 0xee1   :  { %v3133_v40 = vpop.eup %3132 }
 0xf34   :  { %v1840_v37 = vpop.permute.xlu1 %1839 }
 0xf35   :  { %v1842_v38 = vmul.f32 %v3131_v36, %v1840_v37 }
 0xf37   :  { %1844 = vrot.lane.b32.xlu1 %v1842_v38, %s3268_s12 }
 0xf38   :  { %v2004_v41 = vpop.permute.xlu0 %2003 }
 0xf39   :  { %v2006_v43 = vmul.f32 %v3133_v40, %v2004_v41 }
 0xf3b   :  { %2008 = vrot.lane.b32.xlu0 %v2006_v43, %s3268_s12  ;;  %1869 = vperm.xlu1 %3065, %v1867_v42  }
 0xf3f   :  { %2033 = vperm.xlu0 %3064, %v2031_v44  }
 0xf43   :  { %1855 = vrot.lane.b32.xlu0 %v1755_v9, %s3278_s10 }
 0xf47   :  { %2019 = vrot.lane.b32.xlu0 %v1919_v12, %s3278_s10  ;;  %v2013_v12 = vsub.f32 1.0, %v3133_v40 }
 0xfa9   :  { %v1845_v46 = vpop.permute.xlu1 %1844 }
 0xfaa   :  { %v1847_v49 = vadd.f32 %v2820_v22, %v1845_v46 }
 0xfac   :  { %3134 = vtanh.f32 %v1847_v49  ;;  %v3673_v49 = vld [vmem:[%s3979_s3 + $0x2] sm:$0x3] }
 0xfad   :  { %v2009_v50 = vpop.permute.xlu0 %2008  ;;  %vm2358_vm14 = vcmp.gt.f32.partialorder %v3673_v49, 0.0 }
 0xfae   :  { %v2011_v51 = vadd.f32 %v2009_v50, %v1918_v24 }
 0xfb0   :  { %3136 = vtanh.f32 %v2011_v51 }
 0xfb6   :  { %v3135_v54 = vpop.eup %3134 }
 0xfb7   :  { %1851 = vrot.lane.b32.xlu1 %v3135_v54, %s3279_s15 }
 0xfba   :  { %v3137_v56 = vpop.eup %3136  ;;  %v1870_v61 = vpop.permute.xlu1 %1869 }
 0xfbb   :  { %2015 = vrot.lane.b32.xlu1 %v3137_v56, %s3279_s15  ;;  %vm1871_vm12 = vcmp.eq.s32.totalorder %v1870_v61, 1 }
 0xfbe   :  { %v2034_v60 = vpop.permute.xlu0 %2033 }
 0xfbf   :  { %vm2035_vm13 = vcmp.eq.s32.totalorder %v2034_v60, 1  ;;  %v2359_v60 = vsel %vm2358_vm14, 1, %v3276_v10 }
 0xfc2   :  { %v1856_v62 = vpop.permute.xlu0 %1855 }
 0xfc3   :  { %v1858_v4 = vmul.f32 %v3131_v36, %v1856_v62  ;;  %v2246_v36 = vld [vmem:[#allocation4 + $0x2] sm:$0x3] }
 0xfc6   :  { %v2020_v8 = vpop.permute.xlu0 %2019 }
 0xfc7   :  { %v2022_v15 = vmul.f32 %v3133_v40, %v2020_v8 }
0x1029   :  { %v1852_v2 = vpop.permute.xlu1 %1851 }
0x102a   :  { %v1854_v6 = vmul.f32 %v1852_v2, %v1849_v63 }
0x102c   :  { %v3639_v9 = vadd.f32 %v1858_v4, %v1854_v6 }
0x102d   :  { %v2016_v14 = vpop.permute.xlu1 %2015 }
0x102e   :  { %v2018_v16 = vmul.f32 %v2016_v14, %v2013_v12  ;;  %v1872_v17 = vsel %vm1871_vm12, %v3639_v9, %v1856_v62 }
0x102f   :  { %1874 = vrot.lane.b32.xlu1 %v1872_v17, %s3279_s15 }
0x1030   :  { %v3643_v18 = vadd.f32 %v2022_v15, %v2018_v16 }
0x1032   :  { %v2036_v19 = vsel %vm2035_vm13, %v3643_v18, %v2020_v8 }
0x1033   :  { %2038 = vrot.lane.b32.xlu0 %v2036_v19, %s3279_s15 }
0x10a1   :  { %v1875_v22 = vpop.permute.xlu1 %1874 }
0x10a2   :  { %1877 = vst.msk [vmem:[#allocation2] sm:$0x3] %vm89_vm0, %v1875_v22 }
0x10a5   :  { %v2039_v23 = vpop.permute.xlu0 %2038 }
0x10a6   :  { %2041 = vst.msk [vmem:[#allocation3] sm:$0x3] %vm89_vm0, %v2039_v23 }
0x10a9   :  { %v2083_v24 = vld [vmem:[#allocation2] sm:$0x3] }
0x10aa   :  { %2977 = vmatmul.mubr.msk.f32.vlgmr.msra.gmra.mrb[12].mxu0 %vm109_vm2, %v2083_v24 }
0x10ab   :  { %3044 = vmatpush3.bf16.msra.mxu0 %v3359_v5  ;;  %2990 = vmatprep.mubr.msk.f32.mxu0 %vm3274_vm1, %v3275_v1 }
0x10ad   :  { %v2247_v28 = vld [vmem:[#allocation3] sm:$0x3] }
0x10ae   :  { %2984 = vmatmul.mubr.msk.f32.vlgmr.msra.gmra.mrb[12].mxu1 %vm109_vm2, %v2247_v28 }
0x10af   :  { %3047 = vmatpush3.bf16.msra.mxu1 %v3361_v7  ;;  %2997 = vmatprep.mubr.msk.f32.mxu1 %vm3274_vm1, %v3275_v1 }
0x117d   :  { %v2155_v0 = vpop.f32.mrb[12].mxu0 }
0x117e   :  { %v2156_v29 = vadd.f32 %v3382_v11, %v2155_v0  ;;  %v2978_v30 = vpop.f32.mrb[13].mxu0 }
0x1180   :  { %2167 = vrot.lane.b32.xlu1 %v2156_v29, %s3277_s9  ;;  %v2159_v7 = vadd.f32 %v2827_v34, %v2156_v29 }
0x1181   :  { %v2319_v32 = vpop.f32.mrb[12].mxu1 }
0x1182   :  { %v2320_v5 = vadd.f32 %v3387_v13, %v2319_v32  ;;  %v2985_v33 = vpop.f32.mrb[13].mxu1  ;;  %v2830_v37 = vmul.f32 -1.442695, %v2159_v7  ;;  %v3667_v13 = vld [vmem:[%s3978_s2 + $0xc] sm:$0x3] }
0x1183   :  { %vm2194_vm1 = vcmp.gt.f32.partialorder %v3667_v13, 0.0 }
0x1184   :  { %2331 = vrot.lane.b32.xlu0 %v2320_v5, %s3277_s9  ;;  %v2323_v1 = vadd.f32 %v2320_v5, %v2246_v36  ;;  %3138 = vpow2.f32 %v2830_v37  ;;  %v2195_v54 = vsel %vm2194_vm1, 1, %v3276_v10 }
0x1186   :  { %v2833_v38 = vmul.f32 -1.442695, %v2323_v1  ;;  %v3162_v1 = vld [vmem:[%s3981_s5] ss:$0 sm:$0xff] }
0x1188   :  { %3140 = vpow2.f32 %v2833_v38 }
0x118e   :  { %v3139_v11 = vpop.eup %3138 }
0x118f   :  { %v2163_v40 = vadd.f32 1.0, %v3139_v11 }
0x1191   :  { %3142 = vrcp.f32 %v2163_v40 }
0x1192   :  { %v3141_v41 = vpop.eup %3140 }
0x1193   :  { %v2327_v42 = vadd.f32 1.0, %v3141_v41  ;;  %v3163_v41 = vld [vmem:[%s3981_s5 + $0x1] ss:$0 sm:$0xff] }
0x1195   :  { %3144 = vrcp.f32 %v2327_v42 }
0x119b   :  { %v3143_v43 = vpop.eup %3142 }
0x119c   :  { %v2177_v15 = vsub.f32 1.0, %v3143_v43 }
0x119f   :  { %v3145_v50 = vpop.eup %3144 }
0x11f2   :  { %v2168_v44 = vpop.permute.xlu1 %2167 }
0x11f3   :  { %v2170_v46 = vmul.f32 %v3143_v43, %v2168_v44  ;;  %v2834_v44 = vld [vmem:[%s3976_s0 + $0xe] sm:$0x3] }
0x11f5   :  { %2172 = vrot.lane.b32.xlu1 %v2170_v46, %s3268_s12 }
0x11f6   :  { %v2332_v51 = vpop.permute.xlu0 %2331 }
0x11f7   :  { %v2334_v56 = vmul.f32 %v3145_v50, %v2332_v51 }
0x11f9   :  { %2336 = vrot.lane.b32.xlu0 %v2334_v56, %s3268_s12  ;;  %2197 = vperm.xlu1 %3065, %v2195_v54  }
0x11fd   :  { %2361 = vperm.xlu0 %3064, %v2359_v60  }
0x1201   :  { %2183 = vrot.lane.b32.xlu0 %v2083_v24, %s3278_s10  ;;  %v2341_v24 = vsub.f32 1.0, %v3145_v50 }
0x1205   :  { %2347 = vrot.lane.b32.xlu0 %v2247_v28, %s3278_s10 }
0x1267   :  { %v2173_v61 = vpop.permute.xlu1 %2172 }
0x1268   :  { %v2175_v62 = vadd.f32 %v2827_v34, %v2173_v61 }
0x126a   :  { %3146 = vtanh.f32 %v2175_v62 }
0x126b   :  { %v2337_v63 = vpop.permute.xlu0 %2336 }
0x126c   :  { %v2339_v2 = vadd.f32 %v2337_v63, %v2246_v36 }
0x126e   :  { %3148 = vtanh.f32 %v2339_v2 }
0x1274   :  { %v3147_v4 = vpop.eup %3146 }
0x1275   :  { %2179 = vrot.lane.b32.xlu1 %v3147_v4, %s3279_s15 }
0x1278   :  { %v3149_v6 = vpop.eup %3148  ;;  %v2198_v12 = vpop.permute.xlu1 %2197 }
0x1279   :  { %2343 = vrot.lane.b32.xlu1 %v3149_v6, %s3279_s15  ;;  %vm2199_vm15 = vcmp.eq.s32.totalorder %v2198_v12, 1 }
0x127c   :  { %v2362_v8 = vpop.permute.xlu0 %2361 }
0x127d   :  { %vm2363_vm3 = vcmp.eq.s32.totalorder %v2362_v8, 1 }
0x1280   :  { %v2184_v14 = vpop.permute.xlu0 %2183 }
0x1281   :  { %v2186_v17 = vmul.f32 %v3143_v43, %v2184_v14 }
0x1284   :  { %v2348_v22 = vpop.permute.xlu0 %2347 }
0x1285   :  { %v2350_v0 = vmul.f32 %v3145_v50, %v2348_v22  ;;  %v2573_v50 = vld [vmem:[#allocation4] sm:$0x3] }
0x12e7   :  { %v2180_v16 = vpop.permute.xlu1 %2179 }
0x12e8   :  { %v2182_v19 = vmul.f32 %v2180_v16, %v2177_v15  ;;  %v3164_v15 = vld [vmem:[%s3978_s2] sm:$0x3]  ;;  %v3280_v16 = vmov 1966171168  }
0x12ea   :  { %v3684_v23 = vadd.f32 %v2186_v17, %v2182_v19  ;;  %v233_v17 = vunpack.c.l.s4 %v3280_v16  ;;  %v235_v19 = vlaneseq }
0x12eb   :  { %v2344_v28 = vpop.permute.xlu1 %2343 }
0x12ec   :  { %v2346_v29 = vmul.f32 %v2344_v28, %v2341_v24  ;;  %v2200_v30 = vsel %vm2199_vm15, %v3684_v23, %v2184_v14  ;;  %v236_v24 = vshrl.u32 %v235_v19, 7 }
0x12ed   :  { %2202 = vrot.lane.b32.xlu1 %v2200_v30, %s3279_s15 }
0x12ee   :  { %v3688_v32 = vadd.f32 %v2350_v0, %v2346_v29 }
0x12f0   :  { %v2364_v5 = vsel %vm2363_vm3, %v3688_v32, %v2348_v22  ;;  %v234_v22 = vunpack.c.0.s8 %v233_v17 }
0x12f1   :  { %2366 = vrot.lane.b32.xlu0 %v2364_v5, %s3279_s15 }
0x12f2   :  { %v3724_v0 = vsub.s32 %v234_v22, %v236_v24 }
0x135f   :  { %v2203_v33 = vpop.permute.xlu1 %2202 }
0x1360   :  { %2205 = vst.msk [vmem:[#allocation2] sm:$0x3] %vm89_vm0, %v2203_v33  ;;  %v3728_v33 = vsub.s32 0, %v236_v24 }
0x1363   :  { %v2367_v34 = vpop.permute.xlu0 %2366 }
0x1364   :  { %2369 = vst.msk [vmem:[#allocation3] sm:$0x3] %vm89_vm0, %v2367_v34 }
0x1367   :  { %v3694_v7 = vld [vmem:[#allocation2] sm:$0x3] }
0x1368   :  { %2991 = vmatmul.mubr.msk.f32.vlgmr.msra.gmra.mrb[14].mxu0 %vm109_vm2, %v3694_v7 }
0x136b   :  { %v3698_v36 = vld [vmem:[#allocation3] sm:$0x3] }
0x136c   :  { %2998 = vmatmul.mubr.msk.f32.vlgmr.msra.gmra.mrb[14].mxu1 %vm109_vm2, %v3698_v36 }
0x143b   :  { %v2483_v37 = vpop.f32.mrb[14].mxu0 }
0x143c   :  { %v2484_v38 = vadd.f32 %v3162_v1, %v2483_v37  ;;  %v2992_v11 = vpop.f32.mrb[15].mxu0 }
0x143e   :  { %2495 = vrot.lane.b32.xlu1 %v2484_v38, %s3277_s9  ;;  %v2487_v46 = vadd.f32 %v2834_v44, %v2484_v38 }
0x143f   :  { %v2645_v40 = vpop.f32.mrb[14].mxu1 }
0x1440   :  { %v2646_v42 = vadd.f32 %v3163_v41, %v2645_v40  ;;  %v2999_v43 = vpop.f32.mrb[15].mxu1  ;;  %v2837_v51 = vmul.f32 -1.442695, %v2487_v46  ;;  %v3166_v40 = vld [vmem:[%s3978_s2 + $0x2] sm:$0x3] }
0x1441   :  { %v2835_v46 = vld [vmem:[%s3978_s2 + $0xe] sm:$0x3] }
0x1442   :  { %2657 = vrot.lane.b32.xlu0 %v2646_v42, %s3277_s9  ;;  %v2649_v54 = vadd.f32 %v2646_v42, %v2573_v50  ;;  %3150 = vpow2.f32 %v2837_v51  ;;  %vm2522_vm2 = vcmp.gt.f32.partialorder %v2835_v46, 0.0 }
0x1444   :  { %v2839_v56 = vmul.f32 -1.442695, %v2649_v54 }
0x1446   :  { %3152 = vpow2.f32 %v2839_v56 }
0x144c   :  { %v3151_v60 = vpop.eup %3150 }
0x144d   :  { %v2491_v61 = vadd.f32 1.0, %v3151_v60 }
0x144f   :  { %3154 = vrcp.f32 %v2491_v61 }
0x1450   :  { %v3153_v62 = vpop.eup %3152 }
0x1451   :  { %v2653_v63 = vadd.f32 1.0, %v3153_v62 }
0x1453   :  { %3156 = vrcp.f32 %v2653_v63 }
0x1459   :  { %v3713_v2 = vpop.eup %3154 }
0x145d   :  { %v3717_v8 = vpop.eup %3156 }
0x14b0   :  { %v2496_v4 = vpop.permute.xlu1 %2495 }
0x14b1   :  { %v2498_v6 = vmul.f32 %v3713_v2, %v2496_v4 }
0x14b3   :  { %2500 = vrot.lane.b32.xlu1 %v2498_v6, %s3268_s12 }
0x14b4   :  { %v2658_v12 = vpop.permute.xlu0 %2657 }
0x14b5   :  { %v2660_v14 = vmul.f32 %v3717_v8, %v2658_v12 }
0x14b7   :  { %2662 = vrot.lane.b32.xlu0 %v2660_v14, %s3268_s12  ;;  %214 = vperm.xlu1 %3065, %v3164_v15   ;;  %v3167_v14 = vld [vmem:[%s3979_s3 + $0xc] sm:$0x3]  ;;  %v2575_v15 = vld [vmem:[%s3979_s3] sm:$0x3] }
0x14b8   :  { %vm2684_vm5 = vcmp.gt.f32.partialorder %v2575_v15, 0.0 }
0x1525   :  { %v2501_v28 = vpop.permute.xlu1 %2500 }
0x1526   :  { %v2503_v41 = vadd.f32 %v2834_v44, %v2501_v28 }
0x1528   :  { %3158 = vtanh.f32 %v2503_v41 }
0x1529   :  { %v2663_v42 = vpop.permute.xlu0 %2662 }
0x152a   :  { %v2665_v43 = vadd.f32 %v2663_v42, %v2573_v50 }
0x152c   :  { %3160 = vtanh.f32 %v2665_v43 }
0x1532   :  { %v3159_v51 = vpop.eup %3158 }
0x1536   :  { %v215_v29 = vpop.permute.xlu1 %214 }
0x1537   :  { %v217_v30 = vmul.f32 %v215_v29, %v3410_v53  ;;  %v3165_v53 = vld [vmem:[%s3979_s3 + $0xe] sm:$0x3]  ;;  %s3281_s3 = smov [#allocation9]  }
0x1539   :  { %v238_v5 = vrot.slane %v217_v30, %v3724_v0 }
0x153b   :  { %v239_v34 = vcombine.high %v238_v5, %v238_v5  ;;  %v246_v37 = vrot.slane %v238_v5, %v3724_v0 }
0x153d   :  { %v257_v1 = vrot.slane %v246_v37, %v3728_v33  ;;  %v253_v38 = vrot.slane %v239_v34, %v3724_v0 }
0x153f   :  { %262 = vrot.lane.b32.xlu0 %v257_v1, %s3279_s15  ;;  %v261_v11 = vrot.slane %v253_v38, %v3728_v33 }
0x1541   :  { %264 = vrot.lane.b32.xlu1 %v261_v11, %s3279_s15 }
0x1543   :  { %386 = vperm.xlu0 %3064, %v3165_v53  }
0x1547   :  { %550 = vperm.xlu0 %3064, %v3166_v40  }
0x154b   :  { %878 = vperm.xlu0 %3064, %v3481_v21   ;;  %v3161_v21 = vpop.eup %3160 }
0x154f   :  { %1206 = vperm.xlu0 %3064, %v3528_v20   ;;  %v2523_v20 = vsel %vm2522_vm2, 1, %v3276_v10 }
0x1553   :  { %1534 = vperm.xlu0 %3064, %v3575_v27  }
0x1557   :  { %1862 = vperm.xlu0 %3064, %v3622_v35  }
0x155b   :  { %2190 = vperm.xlu0 %3064, %v3667_v13  }
0x155f   :  { %2518 = vperm.xlu0 %3064, %v2835_v46  }
0x1563   :  { %2507 = vrot.lane.b32.xlu0 %v3159_v51, %s3279_s15 }
0x1567   :  { %2669 = vrot.lane.b32.xlu0 %v3161_v21, %s3279_s15 }
0x156b   :  { %2525 = vperm.xlu0 %3064, %v2523_v20  }
0x15b1   :  { %v263_v27 = vpop.permute.xlu0 %262 }
0x15b2   :  { %269 = vst.msk [vmem:[#allocation9] sm:$0x1] %vm268_vm4, %v263_v27 }
0x15b3   :  { %v265_v35 = vpop.permute.xlu1 %264 }
0x15b4   :  { %270 = vst.msk [vmem:[#allocation9 + $0x8] sm:$0x1] %vm268_vm4, %v265_v35 }
0x15c2   :  { %v387_v13 = vpop.permute.xlu0 %386 }
0x15c3   :  { %v389_v44 = vmul.f32 %v387_v13, %v3414_v59 }
0x15c5   :  { %v409_v50 = vrot.slane %v389_v44, %v3724_v0 }
0x15c6   :  { %v551_v54 = vpop.permute.xlu0 %550 }
0x15c7   :  { %v410_v56 = vcombine.high %v409_v50, %v409_v50  ;;  %v417_v60 = vrot.slane %v409_v50, %v3724_v0  ;;  %v553_v61 = vmul.f32 %v551_v54, %v3451_v48 }
0x15c9   :  { %v424_v62 = vrot.slane %v410_v56, %v3724_v0  ;;  %v573_v63 = vrot.slane %v553_v61, %v3724_v0  ;;  %v428_v4 = vrot.slane %v417_v60, %v3728_v33 }
0x15cb   :  { %v574_v6 = vcombine.high %v573_v63, %v573_v63  ;;  %433 = vrot.lane.b32.xlu1 %v428_v4, %s3279_s15  ;;  %v432_v12 = vrot.slane %v424_v62, %v3728_v33 }
0x15cd   :  { %v588_v59 = vrot.slane %v574_v6, %v3724_v0  ;;  %435 = vrot.lane.b32.xlu0 %v432_v12, %s3279_s15 }
0x15cf   :  { %714 = vperm.xlu1 %3065, %v3167_v14   ;;  %v596_v48 = vrot.slane %v588_v59, %v3728_v33 }
0x15d1   :  { %599 = vrot.lane.b32.xlu0 %v596_v48, %s3279_s15 }
0x15d3   :  { %1042 = vperm.xlu1 %3065, %v3487_v25   ;;  %v2685_v25 = vsel %vm2684_vm5, 1, %v3276_v10 }
0x15d7   :  { %1370 = vperm.xlu1 %3065, %v3534_v26   ;;  %v581_v26 = vrot.slane %v573_v63, %v3724_v0 }
0x15db   :  { %1698 = vperm.xlu1 %3065, %v3581_v31   ;;  %v592_v31 = vrot.slane %v581_v26, %v3728_v33 }
0x15df   :  { %2026 = vperm.xlu1 %3065, %v3628_v39   ;;  %v879_v39 = vpop.permute.xlu0 %878 }
0x15e0   :  { %v881_v30 = vmul.f32 %v879_v39, %v3498_v45 }
0x15e2   :  { %v901_v34 = vrot.slane %v881_v30, %v3724_v0 }
0x15e3   :  { %2354 = vperm.xlu1 %3065, %v3673_v49   ;;  %v1207_v49 = vpop.permute.xlu0 %1206 }
0x15e4   :  { %v1209_v38 = vmul.f32 %v1207_v49, %v3545_v47  ;;  %v902_v53 = vcombine.high %v901_v34, %v901_v34  ;;  %v909_v43 = vrot.slane %v901_v34, %v3724_v0 }
0x15e6   :  { %v916_v47 = vrot.slane %v902_v53, %v3724_v0  ;;  %v920_v35 = vrot.slane %v909_v43, %v3728_v33 }
0x15e7   :  { %2680 = vperm.xlu1 %3065, %v2575_v15   ;;  %v1535_v16 = vpop.permute.xlu0 %1534 }
0x15e8   :  { %v1537_v54 = vmul.f32 %v1535_v16, %v3592_v58 }
0x15ea   :  { %v1557_v6 = vrot.slane %v1537_v54, %v3724_v0 }
0x15eb   :  { %2511 = vrot.lane.b32.xlu1 %v3694_v7, %s3278_s10  ;;  %v1863_v17 = vpop.permute.xlu0 %1862 }
0x15ec   :  { %v1865_v15 = vmul.f32 %v1863_v17, %v3639_v9  ;;  %v1558_v26 = vcombine.high %v1557_v6, %v1557_v6  ;;  %v1565_v49 = vrot.slane %v1557_v6, %v3724_v0 }
0x15ef   :  { %2673 = vrot.lane.b32.xlu1 %v3698_v36, %s3278_s10  ;;  %v3787_v19 = vpop.permute.xlu0 %2190  ;;  %s2740_s10 = sshll.u32 %s3281_s3, 4  ;;  %s2741_s10 = int_to_ptr.vmem [resolvable:$true] %s2740_s10 }
0x15f0   :  { %s3215_s29 = scalar_lea.vmem %s2741_s10, 256  ;;  %p3220_p7 = scmp.lt.s32.totalorder %s2741_s10, %s2741_s10 }
0x15f1   :  { %p3216_p6 = scmp.ne.s32.totalorder %s2741_s10, %s3215_s29  ;;  %p3221_p8 = scmp.lt.s32.totalorder %s3215_s29, %s3215_s29 }
0x15f3   :  { %2687 = vperm.xlu1 %3065, %v2685_v25   ;;  %v3789_v7 = vpop.permute.xlu0 %2518  ;;  %p3222_p9 = por %p3221_p8, %p3220_p7 }
0x15f5   :  { %p3223_p10 = pnand %p3222_p9, %p3216_p6 }
0x15f7   :  { %597 = vrot.lane.b32.xlu1 %v592_v31, %s3279_s15  ;;  %v3791_v22 = vpop.permute.xlu0 %2507 }
0x15fb   :  { %v3793_v36 = vpop.permute.xlu0 %2669 }
0x15ff   :  { %v3795_v10 = vpop.permute.xlu0 %2525 }
0x1600   :  { %vm2527_vm6 = vcmp.eq.s32.totalorder %v3795_v10, 1 }
0x163d   :  { %v434_v24 = vpop.permute.xlu1 %433 }
0x163e   :  { %439 = vst.msk [vmem:[#allocation10 + $0x7] sm:$0x1] %vm268_vm4, %v434_v24  ;;  %v1885_v24 = vrot.slane %v1865_v15, %v3724_v0 }
0x163f   :  { %v436_v28 = vpop.permute.xlu0 %435 }
0x1640   :  { %440 = vst.msk [vmem:[#allocation10 + $0xf] sm:$0x1] %vm268_vm4, %v436_v28  ;;  %v1572_v28 = vrot.slane %v1558_v26, %v3724_v0 }
0x1643   :  { %v600_v29 = vpop.permute.xlu0 %599 }
0x1644   :  { %604 = vst.msk [vmem:[#allocation9 + $0x9] sm:$0x1] %vm268_vm4, %v600_v29 }
0x164e   :  { %v715_v5 = vpop.permute.xlu1 %714 }
0x164f   :  { %v717_v37 = vmul.f32 %v715_v5, %v3455_v55  ;;  %v1229_v55 = vrot.slane %v1209_v38, %v3724_v0  ;;  %v1576_v5 = vrot.slane %v1565_v49, %v3728_v33 }
0x1651   :  { %v737_v1 = vrot.slane %v717_v37, %v3724_v0  ;;  %v1230_v44 = vcombine.high %v1229_v55, %v1229_v55  ;;  %v1237_v61 = vrot.slane %v1229_v55, %v3724_v0  ;;  %v1886_v37 = vcombine.high %v1885_v24, %v1885_v24 }
0x1652   :  { %v1043_v11 = vpop.permute.xlu1 %1042 }
0x1653   :  { %v738_v40 = vcombine.high %v737_v1, %v737_v1  ;;  %v745_v41 = vrot.slane %v737_v1, %v3724_v0  ;;  %v1045_v42 = vmul.f32 %v1043_v11, %v3502_v52  ;;  %v1244_v63 = vrot.slane %v1230_v44, %v3724_v0 }
0x1654   :  { %v1248_v14 = vrot.slane %v1237_v61, %v3728_v33  ;;  %v2193_v1 = vmul.f32 %v3787_v19, %v3684_v23  ;;  %v2505_v11 = vsub.f32 1.0, %v3713_v2  ;;  %v1900_v19 = vrot.slane %v1886_v37, %v3724_v0 }
0x1655   :  { %v752_v45 = vrot.slane %v738_v40, %v3724_v0  ;;  %v756_v46 = vrot.slane %v745_v41, %v3728_v33  ;;  %v1065_v51 = vrot.slane %v1045_v42, %v3724_v0  ;;  %v1580_v41 = vrot.slane %v1572_v28, %v3728_v33 }
0x1656   :  { %v1371_v21 = vpop.permute.xlu1 %1370  ;;  %v1893_v42 = vrot.slane %v1885_v24, %v3724_v0  ;;  %v2510_v43 = vmul.f32 %v3791_v22, %v2505_v11  ;;  %v1908_v44 = vrot.slane %v1900_v19, %v3728_v33 }
0x1657   :  { %v1066_v20 = vcombine.high %v1065_v51, %v1065_v51  ;;  %v1373_v27 = vmul.f32 %v1371_v21, %v3549_v57  ;;  %761 = vrot.lane.b32.xlu1 %v756_v46, %s3279_s15  ;;  %v760_v52 = vrot.slane %v752_v45, %v3728_v33  ;;  %v1073_v13 = vrot.slane %v1065_v51, %v3724_v0 }
0x1658   :  { %v924_v57 = vrot.slane %v916_v47, %v3728_v33  ;;  %v2213_v45 = vrot.slane %v2193_v1, %v3724_v0  ;;  %v2667_v46 = vsub.f32 1.0, %v3717_v8 }
0x1659   :  { %763 = vrot.lane.b32.xlu0 %v760_v52, %s3279_s15  ;;  %v1080_v56 = vrot.slane %v1066_v20, %v3724_v0  ;;  %v1393_v60 = vrot.slane %v1373_v27, %v3724_v0  ;;  %v1084_v62 = vrot.slane %v1073_v13, %v3728_v33  ;;  %v1904_v20 = vrot.slane %v1893_v42, %v3728_v33 }
0x165a   :  { %v1699_v50 = vpop.permute.xlu1 %1698  ;;  %v2672_v27 = vmul.f32 %v3793_v36, %v2667_v46 }
0x165b   :  { %925 = vrot.lane.b32.xlu1 %v920_v35, %s3279_s15  ;;  %v1394_v58 = vcombine.high %v1393_v60, %v1393_v60  ;;  %v1701_v12 = vmul.f32 %v1699_v50, %v3596_v3  ;;  %v1088_v59 = vrot.slane %v1080_v56, %v3728_v33  ;;  %v1401_v48 = vrot.slane %v1393_v60, %v3724_v0 }
0x165c   :  { %v1252_v3 = vrot.slane %v1244_v63, %v3728_v33  ;;  %v2214_v35 = vcombine.high %v2213_v45, %v2213_v45  ;;  %v2221_v56 = vrot.slane %v2213_v45, %v3724_v0 }
0x165d   :  { %927 = vrot.lane.b32.xlu0 %v924_v57, %s3279_s15  ;;  %v1408_v31 = vrot.slane %v1394_v58, %v3724_v0  ;;  %v1721_v39 = vrot.slane %v1701_v12, %v3724_v0  ;;  %v1412_v16 = vrot.slane %v1401_v48, %v3728_v33 }
0x165e   :  { %v2027_v4 = vpop.permute.xlu1 %2026  ;;  %v2228_v60 = vrot.slane %v2214_v35, %v3724_v0 }
0x165f   :  { %1089 = vrot.lane.b32.xlu1 %v1084_v62, %s3279_s15  ;;  %v2029_v9 = vmul.f32 %v2027_v4, %v3643_v18  ;;  %v1722_v29 = vcombine.high %v1721_v39, %v1721_v39  ;;  %v1416_v30 = vrot.slane %v1408_v31, %v3728_v33  ;;  %v1729_v34 = vrot.slane %v1721_v39, %v3724_v0 }
0x1660   :  { %v2232_v4 = vrot.slane %v2221_v56, %v3728_v33 }
0x1661   :  { %1091 = vrot.lane.b32.xlu0 %v1088_v59, %s3279_s15  ;;  %v2049_v18 = vrot.slane %v2029_v9, %v3724_v0  ;;  %v1736_v53 = vrot.slane %v1722_v29, %v3724_v0  ;;  %v1740_v23 = vrot.slane %v1729_v34, %v3728_v33 }
0x1662   :  { %v2355_v25 = vpop.permute.xlu1 %2354 }
0x1663   :  { %1253 = vrot.lane.b32.xlu1 %v1248_v14, %s3279_s15  ;;  %v2050_v51 = vcombine.high %v2049_v18, %v2049_v18  ;;  %v2357_v55 = vmul.f32 %v2355_v25, %v3688_v32  ;;  %v1744_v22 = vrot.slane %v1736_v53, %v3728_v33  ;;  %v2057_v52 = vrot.slane %v2049_v18, %v3724_v0 }
0x1664   :  { %v2236_v14 = vrot.slane %v2228_v60, %v3728_v33 }
0x1665   :  { %1255 = vrot.lane.b32.xlu0 %v1252_v3, %s3279_s15  ;;  %v2064_v32 = vrot.slane %v2050_v51, %v3724_v0  ;;  %v2068_v36 = vrot.slane %v2057_v52, %v3728_v33 }
0x1666   :  { %v2681_v17 = vpop.permute.xlu1 %2680 }
0x1667   :  { %1417 = vrot.lane.b32.xlu1 %v1412_v16, %s3279_s15 }
0x1669   :  { %1419 = vrot.lane.b32.xlu0 %v1416_v30, %s3279_s15 }
0x166a   :  { %v3854_v38 = vpop.permute.xlu1 %2511 }
0x166b   :  { %v2514_v40 = vmul.f32 %v3713_v2, %v3854_v38  ;;  %1581 = vrot.lane.b32.xlu1 %v1576_v5, %s3279_s15 }
0x166d   :  { %1583 = vrot.lane.b32.xlu0 %v1580_v41, %s3279_s15  ;;  %v2515_v21 = vadd.f32 %v2514_v40, %v2510_v43 }
0x166e   :  { %v2674_v2 = vpop.permute.xlu1 %2673 }
0x166f   :  { %v2676_v47 = vmul.f32 %v3717_v8, %v2674_v2  ;;  %1745 = vrot.lane.b32.xlu1 %v1740_v23, %s3279_s15  ;;  %v2377_v8 = vrot.slane %v2357_v55, %v3724_v0  ;;  %v2521_v50 = vmul.f32 %v3789_v7, %v2515_v21  ;;  %v2072_v7 = vrot.slane %v2064_v32, %v3728_v33 }
0x1671   :  { %1747 = vrot.lane.b32.xlu0 %v1744_v22, %s3279_s15  ;;  %v2677_v54 = vadd.f32 %v2676_v47, %v2672_v27  ;;  %v2378_v61 = vcombine.high %v2377_v8, %v2377_v8  ;;  %v2541_v62 = vrot.slane %v2521_v50, %v3724_v0  ;;  %v2385_v6 = vrot.slane %v2377_v8, %v3724_v0 }
0x1672   :  { %v2688_v13 = vpop.permute.xlu1 %2687 }
0x1673   :  { %1909 = vrot.lane.b32.xlu1 %v1904_v20, %s3279_s15  ;;  %v2683_v63 = vmul.f32 %v2681_v17, %v2677_v54  ;;  %v2392_v58 = vrot.slane %v2378_v61, %v3724_v0  ;;  %v2542_v12 = vcombine.high %v2541_v62, %v2541_v62  ;;  %v2396_v48 = vrot.slane %v2385_v6, %v3728_v33 }
0x1674   :  { %v2549_v15 = vrot.slane %v2541_v62, %v3724_v0  ;;  %vm2689_vm7 = vcmp.eq.s32.totalorder %v2688_v13, 1  ;;  %v2528_v17 = vsel %vm2527_vm6, %v2515_v21, %v3854_v38 }
0x1675   :  { %1911 = vrot.lane.b32.xlu0 %v1908_v44, %s3279_s15  ;;  %v2703_v59 = vrot.slane %v2683_v63, %v3724_v0  ;;  %v2400_v26 = vrot.slane %v2392_v58, %v3728_v33  ;;  %v2556_v31 = vrot.slane %v2542_v12, %v3724_v0  ;;  %v2690_v28 = vsel %vm2689_vm7, %v2677_v54, %v2674_v2 }
0x1676   :  { %v598_v57 = vpop.permute.xlu1 %597  ;;  %v2560_v39 = vrot.slane %v2549_v15, %v3728_v33 }
0x1677   :  { %603 = vst.msk [vmem:[#allocation9 + $0x1] sm:$0x1] %vm268_vm4, %v598_v57  ;;  %2073 = vrot.lane.b32.xlu1 %v2068_v36, %s3279_s15  ;;  %v2704_v25 = vcombine.high %v2703_v59, %v2703_v59  ;;  %v2711_v3 = vrot.slane %v2703_v59, %v3724_v0  ;;  %v2564_v49 = vrot.slane %v2556_v31, %v3728_v33 }
0x1679   :  { %2075 = vrot.lane.b32.xlu0 %v2072_v7, %s3279_s15  ;;  %v2718_v16 = vrot.slane %v2704_v25, %v3724_v0  ;;  %v2722_v24 = vrot.slane %v2711_v3, %v3728_v33 }
0x167b   :  { %2237 = vrot.lane.b32.xlu1 %v2232_v4, %s3279_s15  ;;  %v2726_v9 = vrot.slane %v2718_v16, %v3728_v33 }
0x167d   :  { %2239 = vrot.lane.b32.xlu0 %v2236_v14, %s3279_s15 }
0x167f   :  { %2401 = vrot.lane.b32.xlu1 %v2396_v48, %s3279_s15 }
0x1681   :  { %2403 = vrot.lane.b32.xlu0 %v2400_v26, %s3279_s15 }
0x1683   :  { %2565 = vrot.lane.b32.xlu1 %v2560_v39, %s3279_s15 }
0x1685   :  { %2567 = vrot.lane.b32.xlu0 %v2564_v49, %s3279_s15 }
0x1687   :  { %2727 = vrot.lane.b32.xlu1 %v2722_v24, %s3279_s15 }
0x1689   :  { %2729 = vrot.lane.b32.xlu0 %v2726_v9, %s3279_s15 }
0x168b   :  { %2530 = vrot.lane.b32.xlu1 %v2528_v17, %s3279_s15 }
0x168d   :  { %2692 = vrot.lane.b32.xlu0 %v2690_v28, %s3279_s15  ;;  %s3282_s15 = smov [#allocation10]  }
0x168e   :  { %s2755_s28 = sshll.u32 %s3282_s15, 4  ;;  %s2756_s28 = int_to_ptr.vmem [resolvable:$true] %s2755_s28 }
0x16c9   :  { %v762_v0 = vpop.permute.xlu1 %761 }
0x16ca   :  { %767 = vst.msk [vmem:[#allocation10 + $0x6] sm:$0x1] %vm268_vm4, %v762_v0 }
0x16cb   :  { %v764_v29 = vpop.permute.xlu0 %763 }
0x16cc   :  { %768 = vst.msk [vmem:[#allocation10 + $0xe] sm:$0x1] %vm268_vm4, %v764_v29 }
0x16cd   :  { %v926_v30 = vpop.permute.xlu1 %925 }
0x16ce   :  { %931 = vst.msk [vmem:[#allocation9 + $0x2] sm:$0x1] %vm268_vm4, %v926_v30 }
0x16cf   :  { %v928_v33 = vpop.permute.xlu0 %927 }
0x16d0   :  { %932 = vst.msk [vmem:[#allocation9 + $0xa] sm:$0x1] %vm268_vm4, %v928_v33 }
0x16d1   :  { %v1090_v10 = vpop.permute.xlu1 %1089 }
0x16d2   :  { %1095 = vst.msk [vmem:[#allocation10 + $0x5] sm:$0x1] %vm268_vm4, %v1090_v10 }
0x16d3   :  { %v1092_v5 = vpop.permute.xlu0 %1091 }
0x16d4   :  { %1096 = vst.msk [vmem:[#allocation10 + $0xd] sm:$0x1] %vm268_vm4, %v1092_v5 }
0x16d5   :  { %v1254_v34 = vpop.permute.xlu1 %1253 }
0x16d6   :  { %1259 = vst.msk [vmem:[#allocation9 + $0x3] sm:$0x1] %vm268_vm4, %v1254_v34 }
0x16d7   :  { %v1256_v37 = vpop.permute.xlu0 %1255 }
0x16d8   :  { %1260 = vst.msk [vmem:[#allocation9 + $0xb] sm:$0x1] %vm268_vm4, %v1256_v37 }
0x16d9   :  { %v1418_v1 = vpop.permute.xlu1 %1417 }
0x16da   :  { %1423 = vst.msk [vmem:[#allocation10 + $0x4] sm:$0x1] %vm268_vm4, %v1418_v1 }
0x16db   :  { %v1420_v18 = vpop.permute.xlu0 %1419 }
0x16dc   :  { %1424 = vst.msk [vmem:[#allocation10 + $0xc] sm:$0x1] %vm268_vm4, %v1420_v18 }
0x16dd   :  { %v1582_v38 = vpop.permute.xlu1 %1581 }
0x16de   :  { %1587 = vst.msk [vmem:[#allocation9 + $0x4] sm:$0x1] %vm268_vm4, %v1582_v38 }
0x16df   :  { %v1584_v11 = vpop.permute.xlu0 %1583 }
0x16e0   :  { %1588 = vst.msk [vmem:[#allocation9 + $0xc] sm:$0x1] %vm268_vm4, %v1584_v11 }
0x16e1   :  { %v1746_v53 = vpop.permute.xlu1 %1745 }
0x16e2   :  { %1751 = vst.msk [vmem:[#allocation10 + $0x3] sm:$0x1] %vm268_vm4, %v1746_v53 }
0x16e3   :  { %v1748_v40 = vpop.permute.xlu0 %1747 }
0x16e4   :  { %1752 = vst.msk [vmem:[#allocation10 + $0xb] sm:$0x1] %vm268_vm4, %v1748_v40 }
0x16e5   :  { %v1910_v41 = vpop.permute.xlu1 %1909 }
0x16e6   :  { %1915 = vst.msk [vmem:[#allocation9 + $0x5] sm:$0x1] %vm268_vm4, %v1910_v41 }
0x16e7   :  { %v1912_v42 = vpop.permute.xlu0 %1911 }
0x16e8   :  { %1916 = vst.msk [vmem:[#allocation9 + $0xd] sm:$0x1] %vm268_vm4, %v1912_v42 }
0x16e9   :  { %v2074_v43 = vpop.permute.xlu1 %2073 }
0x16ea   :  { %2079 = vst.msk [vmem:[#allocation10 + $0x2] sm:$0x1] %vm268_vm4, %v2074_v43 }
0x16eb   :  { %v2076_v23 = vpop.permute.xlu0 %2075 }
0x16ec   :  { %2080 = vst.msk [vmem:[#allocation10 + $0xa] sm:$0x1] %vm268_vm4, %v2076_v23 }
0x16ed   :  { %v2238_v19 = vpop.permute.xlu1 %2237 }
0x16ee   :  { %2243 = vst.msk [vmem:[#allocation9 + $0x6] sm:$0x1] %vm268_vm4, %v2238_v19 }
0x16ef   :  { %v2240_v45 = vpop.permute.xlu0 %2239 }
0x16f0   :  { %2244 = vst.msk [vmem:[#allocation9 + $0xe] sm:$0x1] %vm268_vm4, %v2240_v45 }
0x16f1   :  { %v2402_v46 = vpop.permute.xlu1 %2401 }
0x16f2   :  { %2407 = vst.msk [vmem:[#allocation10 + $0x1] sm:$0x1] %vm268_vm4, %v2402_v46 }
0x16f3   :  { %v2404_v51 = vpop.permute.xlu0 %2403 }
0x16f4   :  { %2408 = vst.msk [vmem:[#allocation10 + $0x9] sm:$0x1] %vm268_vm4, %v2404_v51 }
0x16f5   :  { %v2566_v2 = vpop.permute.xlu1 %2565 }
0x16f6   :  { %2571 = vst.msk [vmem:[#allocation9 + $0x7] sm:$0x1] %vm268_vm4, %v2566_v2 }
0x16f7   :  { %v2568_v55 = vpop.permute.xlu0 %2567 }
0x16f8   :  { %2572 = vst.msk [vmem:[#allocation9 + $0xf] sm:$0x1] %vm268_vm4, %v2568_v55 }
0x16f9   :  { %v2728_v21 = vpop.permute.xlu1 %2727 }
0x16fa   :  { %3226 = shalt.err (!%p3223_p10)
}
0x16fb   :  { %s3227_s11 = scalar_lea.hbm %s3982_s6, 256 }
0x16fc   :  { %p3228_p11 = scmp.ne.s32.totalorder %s3982_s6, %s3227_s11  ;;  %p3231_p12 = scmp.lt.u32.totalorder %s3227_s11, %s3982_s6 }
0x16fe   :  { %p3233_p13 = pnand %p3231_p12, %p3228_p11 }
0x1700   :  { %3236 = shalt.err (!%p3233_p13)
}
0x1701   :  { %2746 = dma.vmem_to_hbm [thread:$0]  %s2741_s10, 256, %s3982_s6, [#allocation6], %s3271_s23, %s3271_s23, %s3272_s24   ;;  %2733 = vst.msk [vmem:[#allocation10] sm:$0x1] %vm268_vm4, %v2728_v21  ;;  %v2730_v47 = vpop.permute.xlu0 %2729  ;;  %v2531_v22 = vpop.permute.xlu1 %2530 }
0x1702   :  { %2734 = vst.msk [vmem:[#allocation10 + $0x8] sm:$0x1] %vm268_vm4, %v2730_v47  ;;  %s3237_s19 = scalar_lea.vmem %s2756_s28, 256  ;;  %p3242_p1 = scmp.lt.s32.totalorder %s2756_s28, %s2756_s28 }
0x1703   :  { %p3238_p0 = scmp.ne.s32.totalorder %s2756_s28, %s3237_s19  ;;  %p3243_p2 = scmp.lt.s32.totalorder %s3237_s19, %s3237_s19 }
0x1705   :  { %p3244_p3 = por %p3243_p2, %p3242_p1 }
0x1707   :  { %p3245_p4 = pnand %p3244_p3, %p3238_p0 }
0x1709   :  { %3248 = shalt.err (!%p3245_p4)
}
0x170a   :  { %s3249_s12 = scalar_lea.hbm %s3983_s7, 256 }
0x170b   :  { %p3250_p5 = scmp.ne.s32.totalorder %s3983_s7, %s3249_s12  ;;  %p3253_p6 = scmp.lt.u32.totalorder %s3249_s12, %s3983_s7 }
0x170d   :  { %p3255_p7 = pnand %p3253_p6, %p3250_p5 }
0x170f   :  { %3258 = shalt.err (!%p3255_p7)
}
0x1710   :  { %2761 = dma.vmem_to_hbm [thread:$0]  %s2756_s28, 256, %s3983_s7, [#allocation11], %s3271_s23, %s3271_s23, %s3272_s24   ;;  %2533 = vst.msk [vmem:[#allocation2] sm:$0x3] %vm89_vm0, %v2531_v22  ;;  %v2693_v20 = vpop.permute.xlu0 %2692 }
0x1711   :  { %2695 = vst.msk [vmem:[#allocation3] sm:$0x3] %vm89_vm0, %v2693_v20 }
0x1712   :  { %3263 = dma.done.wait [#allocation6], 256  }
0x1713   :  { %3264 = vsyncadd [#allocation6], 4294967040 }
0x1714   :  { %3265 = dma.done.wait [#allocation11], 256  }
0x1715   :  { %3266 = vsyncadd [#allocation11], 4294967040 }
0x1716   :  { %2768 = vsyncpa [#allocation5], 1 }
0x1717   :  { %2769 = vsyncpa [#allocation8], 1 }
0x1718   :  { %2770 = vsyncpa [#allocation6], 1 }
0x1719   :  { %2771 = vsyncpa [#allocation11], 1 }

</bundles_post_ra>
